<compile_context>
chip_gen: v7x
topology: tpu7x:2x2x1
jax: 0.10.0
libtpu: 0.0.40
codegen_flags: <defaults>
</compile_context>

<pallas_src>
import numpy as np
import jax
import jax.numpy as jnp
from jax import lax
from jax.experimental import pallas as pl
from jax.experimental.pallas import tpu as pltpu

N_HIDDEN = 32
N_HEAD = 4
DIM_HEAD = N_HIDDEN // N_HEAD
N_FF = 64
LN_EPS = 1e-5

PARAM_ORDER = [
    "wq", "bq", "wk", "bk", "we", "be",
    "woh", "boh", "woe", "boe",
    "ln1x_g", "ln1x_b", "ln1e_g", "ln1e_b",
    "ffx_w1", "ffx_b1", "ffx_w2", "ffx_b2",
    "ffe_w1", "ffe_b1", "ffe_w2", "ffe_b2",
]

# Edge-path weights carried in bf16 (f32 accumulation keeps accuracy well inside tolerance).
EDGE_BF16_PARAMS = ("we", "woe", "ffe_w1", "ffe_w2")


def _layer_norm(v, g, b):
    mu = jnp.mean(v, axis=-1, keepdims=True)
    var = jnp.mean((v - mu) ** 2, axis=-1, keepdims=True)
    return (v - mu) * lax.rsqrt(var + LN_EPS) * g + b


def transformer_layer_edges_kernel(
    x_ref, xq_ref, e_ref, am_ref, pm_ref,
    wq, bq, wk, bk, we, be,
    woh, boh, woe, boe,
    ln1x_g, ln1x_b, ln1e_g, ln1e_b,
    ffx_w1, ffx_b1, ffx_w2, ffx_b2,
    ffe_w1, ffe_b1, ffe_w2, ffe_b2,
    x_out, e_out, s_out,
):
    f32 = jnp.float32
    bf16 = jnp.bfloat16

    x_full = x_ref[0]          # (N, H)   all nodes (keys / values)
    x_tile = xq_ref[0]         # (TQ, H)  query rows handled by this grid step
    e_tile = e_ref[0]          # (TQ, N, H)
    am = am_ref[0, 0]          # (TQ, N)
    pm = pm_ref[0, 0]          # (1, N) -- multiplies along the key axis
    n, h = x_full.shape
    tq = x_tile.shape[0]

    # Projections (MXU matmuls). Scale folded into qx; V_x = K_x reproduces the PyTorch module.
    scale = 1.0 / np.sqrt(DIM_HEAD)
    kx = jnp.dot(x_full, wk[...], preferred_element_type=f32) + bk[...]        # (N, H)
    qx = (jnp.dot(x_tile, wq[...], preferred_element_type=f32) + bq[...]) * scale  # (TQ, H)

    e_flat = e_tile.reshape(tq * n, h)
    ee = (jnp.dot(e_flat.astype(bf16), we[...], preferred_element_type=f32)
          + be[...]).reshape(tq, n, h)

    # intermediate_scores, heads concatenated along the last dim
    # (== intermediate_scores.permute(0,2,3,1,4).view(B,N,N,H) in the torch code)
    inter = qx[:, None, :] * kx[None, :, :] * ee                                # (TQ, N, H)

    # Per-head softmax; attended values accumulated with full-width matmuls + static column
    # mask (no lane-axis concatenate of 8-wide chunks).
    col = lax.broadcasted_iota(jnp.int32, (1, h), 1)
    x_pre = jnp.zeros((tq, h), f32)
    for head in range(N_HEAD):
        lo = head * DIM_HEAD
        hi = lo + DIM_HEAD
        logits = am + inter[:, :, lo:hi].sum(-1)                                # (TQ, N)
        logits = logits - jnp.max(logits, axis=-1, keepdims=True)
        p = jnp.exp(logits)
        p = p * pl.reciprocal(jnp.sum(p, axis=-1, keepdims=True), approx=True)
        scores_h = p * pm                                                        # (TQ, N)
        s_out[0, head] = scores_h
        head_mask = ((col >= lo) & (col < hi)).astype(f32)                       # (1, H)
        x_pre = x_pre + jnp.dot(scores_h, kx, preferred_element_type=f32) * head_mask

    x_att = jnp.dot(x_pre, woh[...], preferred_element_type=f32) + boh[...]
    e_att = jnp.dot(inter.reshape(tq * n, h).astype(bf16), woe[...],
                    preferred_element_type=f32) + boe[...]

    # residual + LayerNorm #1
    x1 = _layer_norm(x_att + x_tile, ln1x_g[...], ln1x_b[...])
    e1 = _layer_norm(e_att + e_flat, ln1e_g[...], ln1e_b[...])

    # feedforward (Linear -> ReLU -> Linear); dropout=0 is identity
    x_ff = jnp.maximum(
        jnp.dot(x1, ffx_w1[...], preferred_element_type=f32) + ffx_b1[...], 0.0)
    x_ff = jnp.dot(x_ff, ffx_w2[...], preferred_element_type=f32) + ffx_b2[...]
    e_hid = jnp.maximum(
        jnp.dot(e1.astype(bf16), ffe_w1[...], preferred_element_type=f32) + ffe_b1[...], 0.0)
    e_ff = jnp.dot(e_hid.astype(bf16), ffe_w2[...], preferred_element_type=f32) + ffe_b2[...]

    # residual + norm #2 (the PyTorch module reuses normalization1_* here)
    x2 = _layer_norm(x_ff + x1, ln1x_g[...], ln1x_b[...])
    e2 = _layer_norm(e_ff + e1, ln1e_g[...], ln1e_b[...])

    x_out[0] = x2
    e_out[0] = e2.reshape(tq, n, h)


def _zero_map(nd):
    return lambda b, q: (0,) * nd


def _choose_tile_q(N, H, budget_bytes=40 << 20):
    """Largest query-tile size that (a) divides N, (b) satisfies the (8,128) block rule on the
    second-to-last dim (multiple of 8 or full N), and (c) keeps ~14 live f32 (TQ,N,H) buffers
    (e in/out double-buffered + temporaries + scores/mask tiles) under the VMEM budget."""
    candidates = [d for d in range(1, N + 1)
                  if N % d == 0 and (d == N or d % 8 == 0)]
    live = lambda tq: 14 * tq * N * H * 4
    fitting = [d for d in candidates if live(d) <= budget_bytes]
    return max(fitting) if fitting else min(candidates)


def transformer_layer_edges(x, e, attention_mask, padding_mask, params, tile_q=None):
    B, N, H = x.shape
    assert H == N_HIDDEN and e.shape == (B, N, N, H)
    if tile_q is None:
        tile_q = _choose_tile_q(N, H)
    assert N % tile_q == 0 and (tile_q == N or tile_q % 8 == 0)
    n_qt = N // tile_q

    p = dict(params)
    for k in EDGE_BF16_PARAMS:
        p[k] = p[k].astype(jnp.bfloat16)

    # x is passed twice: once full (keys/values) and once tiled over query rows
    # (Q projection + residual), avoiding any in-kernel dynamic row slicing.
    in_arrays = [x, x, e, attention_mask, padding_mask] + [p[k] for k in PARAM_ORDER]
    in_specs = [
        pl.BlockSpec((1, N, H), lambda b, q: (b, 0, 0)),             # x  (all rows)
        pl.BlockSpec((1, tile_q, H), lambda b, q: (b, q, 0)),        # x  (query rows)
        pl.BlockSpec((1, tile_q, N, H), lambda b, q: (b, q, 0, 0)),  # e  tile
        pl.BlockSpec((1, 1, tile_q, N), lambda b, q: (b, 0, q, 0)),  # attention_mask tile
        pl.BlockSpec((1, 1, 1, N), lambda b, q: (b, 0, 0, 0)),       # padding_mask
    ] + [pl.BlockSpec(p[k].shape, _zero_map(p[k].ndim)) for k in PARAM_ORDER]

    out_shape = (
        jax.ShapeDtypeStruct((B, N, H), jnp.float32),
        jax.ShapeDtypeStruct((B, N, N, H), jnp.float32),
        jax.ShapeDtypeStruct((B, N_HEAD, N, N), jnp.float32),
    )
    out_specs = (
        pl.BlockSpec((1, tile_q, H), lambda b, q: (b, q, 0)),
        pl.BlockSpec((1, tile_q, N, H), lambda b, q: (b, q, 0, 0)),
        pl.BlockSpec((1, N_HEAD, tile_q, N), lambda b, q: (b, 0, q, 0)),
    )

    # Explicit VMEM budget derived from the tile size (default scoped limit is too small for
    # realistic N); kept <= 56 MiB so it is valid on v7x's 64 MiB VMEM as well.
    tile_bytes = 14 * tile_q * N * H * 4
    vmem_limit = int(min(56 << 20, max(32 << 20, 2 * tile_bytes)))

    flops = 2 * B * (
        2 * N * H * H                      # Q, K projections
        + 2 * N * N * H * H                # E and Oe projections
        + N * H * H                        # Oh projection
        + N_HEAD * N * N * H               # attention @ V
        + 2 * N * H * N_FF                 # feedforward_x
        + 2 * N * N * H * N_FF)            # feedforward_e
    transcendentals = B * N_HEAD * N * N   # softmax exp
    bytes_accessed = 4 * (2 * x.size + 2 * e.size + attention_mask.size
                          + padding_mask.size + B * N_HEAD * N * N)
    cost = pl.CostEstimate(flops=flops, transcendentals=transcendentals,
                           bytes_accessed=bytes_accessed)

    return pl.pallas_call(
        transformer_layer_edges_kernel,
        out_shape=out_shape,
        grid_spec=pltpu.PrefetchScalarGridSpec(
            num_scalar_prefetch=0,
            grid=(B, n_qt),
            in_specs=in_specs,
            out_specs=out_specs,
        ),
        compiler_params=pltpu.CompilerParams(
            dimension_semantics=("parallel", "parallel"),
            vmem_limit_bytes=vmem_limit,
        ),
        cost_estimate=cost,
    )(*in_arrays)


def init_linear(key, fan_in, fan_out):
    k1, k2 = jax.random.split(key)
    bound = 1.0 / np.sqrt(fan_in)
    w = jax.random.uniform(k1, (fan_in, fan_out), jnp.float32, -bound, bound)
    b = jax.random.uniform(k2, (1, fan_out), jnp.float32, -bound, bound)
    return w, b


def init_params(key):
    ks = jax.random.split(key, 9)
    p = {}
    p["wq"], p["bq"] = init_linear(ks[0], N_HIDDEN, N_HIDDEN)
    p["wk"], p["bk"] = init_linear(ks[1], N_HIDDEN, N_HIDDEN)
    # The module's V linear is never used in forward (V_x = self.K(x)); omitted.
    p["we"], p["be"] = init_linear(ks[2], N_HIDDEN, N_HIDDEN)
    p["woh"], p["boh"] = init_linear(ks[3], N_HIDDEN, N_HIDDEN)
    p["woe"], p["boe"] = init_linear(ks[4], N_HIDDEN, N_HIDDEN)
    p["ln1x_g"] = jnp.ones((1, N_HIDDEN), jnp.float32)
    p["ln1x_b"] = jnp.zeros((1, N_HIDDEN), jnp.float32)
    p["ln1e_g"] = jnp.ones((1, N_HIDDEN), jnp.float32)
    p["ln1e_b"] = jnp.zeros((1, N_HIDDEN), jnp.float32)
    p["ffx_w1"], p["ffx_b1"] = init_linear(ks[5], N_HIDDEN, N_FF)
    p["ffx_w2"], p["ffx_b2"] = init_linear(ks[6], N_FF, N_HIDDEN)
    p["ffe_w1"], p["ffe_b1"] = init_linear(ks[7], N_HIDDEN, N_FF)
    p["ffe_w2"], p["ffe_b2"] = init_linear(ks[8], N_FF, N_HIDDEN)
    return p


def reference(x, e, am, pm, p):
    """Pure-JAX mirror of the PyTorch forward (including the V=K and norm1-reuse quirks)."""
    B, N, H = x.shape
    lin = lambda v, w, b: v @ w + b.reshape(-1)

    def ln(v, g, b):
        mu = jnp.mean(v, -1, keepdims=True)
        var = jnp.mean((v - mu) ** 2, -1, keepdims=True)
        return (v - mu) / jnp.sqrt(var + LN_EPS) * g.reshape(-1) + b.reshape(-1)

    Qx = lin(x, p["wq"], p["bq"]).reshape(B, N, N_HEAD, DIM_HEAD).transpose(0, 2, 1, 3)
    Kx = lin(x, p["wk"], p["bk"]).reshape(B, N, N_HEAD, DIM_HEAD).transpose(0, 2, 1, 3)
    Vx = Kx
    Ee = lin(e, p["we"], p["be"]).reshape(B, N, N, N_HEAD, DIM_HEAD).transpose(0, 3, 1, 2, 4)
    inter = Qx[:, :, :, None, :] * Kx[:, :, None, :, :] * Ee / np.sqrt(DIM_HEAD)
    scores = jax.nn.softmax(am + inter.sum(-1), axis=-1) * pm
    e_att = lin(inter.transpose(0, 2, 3, 1, 4).reshape(B, N, N, H), p["woe"], p["boe"])
    av = jnp.matmul(scores, Vx).transpose(0, 2, 1, 3).reshape(B, N, H)
    x_att = lin(av, p["woh"], p["boh"])
    x1 = ln(x_att + x, p["ln1x_g"], p["ln1x_b"])
    e1 = ln(e_att + e, p["ln1e_g"], p["ln1e_b"])
    x_ff = lin(jnp.maximum(lin(x1, p["ffx_w1"], p["ffx_b1"]), 0.0), p["ffx_w2"], p["ffx_b2"])
    e_ff = lin(jnp.maximum(lin(e1, p["ffe_w1"], p["ffe_b1"]), 0.0), p["ffe_w2"], p["ffe_b2"])
    x2 = ln(x_ff + x1, p["ln1x_g"], p["ln1x_b"])
    e2 = ln(e_ff + e1, p["ln1e_g"], p["ln1e_b"])
    return x2, e2, scores


if __name__ == "__main__":
    B, N = 2, 8
    key = jax.random.PRNGKey(0)
    keys = jax.random.split(key, 5)
    x = jax.random.normal(keys[0], (B, N, N_HIDDEN), jnp.float32)
    e = jax.random.normal(keys[1], (B, N, N, N_HIDDEN), jnp.float32)
    attention_mask = 0.1 * jax.random.normal(keys[2], (B, 1, N, N), jnp.float32)
    padding_mask = jnp.ones((B, 1, 1, N), jnp.float32).at[:, :, :, -2:].set(0.0)
    params = init_params(keys[3])

    x_out, e_out, scores = jax.block_until_ready(
        transformer_layer_edges(x, e, attention_mask, padding_mask, params))

    x_ref, e_ref, s_ref = reference(x, e, attention_mask, padding_mask, params)
    assert np.allclose(np.asarray(scores), np.asarray(s_ref), atol=5e-2, rtol=5e-2)
    assert np.allclose(np.asarray(x_out), np.asarray(x_ref), atol=5e-2, rtol=5e-2)
    assert np.allclose(np.asarray(e_out), np.asarray(e_ref), atol=5e-2, rtol=5e-2)
    print("KERNEL_OK")
</pallas_src>

<mosaic_0001>
module attributes {stable_mosaic.version = 11 : i64} {
  func.func @transformer_layer_edges_kernel(%arg0: i32, %arg1: i32, %arg2: memref<1x8x32xf32, #tpu.memory_space<vmem>>, %arg3: memref<1x8x32xf32, #tpu.memory_space<vmem>>, %arg4: memref<1x8x8x32xf32, #tpu.memory_space<vmem>>, %arg5: memref<1x1x8x8xf32, #tpu.memory_space<vmem>>, %arg6: memref<1x1x1x8xf32, #tpu.memory_space<vmem>>, %arg7: memref<32x32xf32, #tpu.memory_space<vmem>>, %arg8: memref<1x32xf32, #tpu.memory_space<vmem>>, %arg9: memref<32x32xf32, #tpu.memory_space<vmem>>, %arg10: memref<1x32xf32, #tpu.memory_space<vmem>>, %arg11: memref<32x32xbf16, #tpu.memory_space<vmem>>, %arg12: memref<1x32xf32, #tpu.memory_space<vmem>>, %arg13: memref<32x32xf32, #tpu.memory_space<vmem>>, %arg14: memref<1x32xf32, #tpu.memory_space<vmem>>, %arg15: memref<32x32xbf16, #tpu.memory_space<vmem>>, %arg16: memref<1x32xf32, #tpu.memory_space<vmem>>, %arg17: memref<1x32xf32, #tpu.memory_space<vmem>>, %arg18: memref<1x32xf32, #tpu.memory_space<vmem>>, %arg19: memref<1x32xf32, #tpu.memory_space<vmem>>, %arg20: memref<1x32xf32, #tpu.memory_space<vmem>>, %arg21: memref<32x64xf32, #tpu.memory_space<vmem>>, %arg22: memref<1x64xf32, #tpu.memory_space<vmem>>, %arg23: memref<64x32xf32, #tpu.memory_space<vmem>>, %arg24: memref<1x32xf32, #tpu.memory_space<vmem>>, %arg25: memref<32x64xbf16, #tpu.memory_space<vmem>>, %arg26: memref<1x64xf32, #tpu.memory_space<vmem>>, %arg27: memref<64x32xbf16, #tpu.memory_space<vmem>>, %arg28: memref<1x32xf32, #tpu.memory_space<vmem>>, %arg29: memref<1x8x32xf32, #tpu.memory_space<vmem>>, %arg30: memref<1x8x8x32xf32, #tpu.memory_space<vmem>>, %arg31: memref<1x4x8x8xf32, #tpu.memory_space<vmem>>) attributes {dimension_semantics = [#tpu.dimension_semantics<parallel>, #tpu.dimension_semantics<parallel>], iteration_bounds = array<i64: 2, 1>, scalar_prefetch = 0 : i64, scratch_operands = 0 : i64, tpu.core_type = #tpu.core_type<tc>, window_params = [{transform_indices = @transform_0, window_bounds = array<i64: 1, 8, 32>}, {transform_indices = @transform_1, window_bounds = array<i64: 1, 8, 32>}, {transform_indices = @transform_2, window_bounds = array<i64: 1, 8, 8, 32>}, {transform_indices = @transform_3, window_bounds = array<i64: 1, 1, 8, 8>}, {transform_indices = @transform_4, window_bounds = array<i64: 1, 1, 1, 8>}, {pipeline_mode = #tpu.pipeline_mode<synchronous>, transform_indices = @transform_5, window_bounds = array<i64: 32, 32>}, {pipeline_mode = #tpu.pipeline_mode<synchronous>, transform_indices = @transform_6, window_bounds = array<i64: 1, 32>}, {pipeline_mode = #tpu.pipeline_mode<synchronous>, transform_indices = @transform_7, window_bounds = array<i64: 32, 32>}, {pipeline_mode = #tpu.pipeline_mode<synchronous>, transform_indices = @transform_8, window_bounds = array<i64: 1, 32>}, {pipeline_mode = #tpu.pipeline_mode<synchronous>, transform_indices = @transform_9, window_bounds = array<i64: 32, 32>}, {pipeline_mode = #tpu.pipeline_mode<synchronous>, transform_indices = @transform_10, window_bounds = array<i64: 1, 32>}, {pipeline_mode = #tpu.pipeline_mode<synchronous>, transform_indices = @transform_11, window_bounds = array<i64: 32, 32>}, {pipeline_mode = #tpu.pipeline_mode<synchronous>, transform_indices = @transform_12, window_bounds = array<i64: 1, 32>}, {pipeline_mode = #tpu.pipeline_mode<synchronous>, transform_indices = @transform_13, window_bounds = array<i64: 32, 32>}, {pipeline_mode = #tpu.pipeline_mode<synchronous>, transform_indices = @transform_14, window_bounds = array<i64: 1, 32>}, {pipeline_mode = #tpu.pipeline_mode<synchronous>, transform_indices = @transform_15, window_bounds = array<i64: 1, 32>}, {pipeline_mode = #tpu.pipeline_mode<synchronous>, transform_indices = @transform_16, window_bounds = array<i64: 1, 32>}, {pipeline_mode = #tpu.pipeline_mode<synchronous>, transform_indices = @transform_17, window_bounds = array<i64: 1, 32>}, {pipeline_mode = #tpu.pipeline_mode<synchronous>, transform_indices = @transform_18, window_bounds = array<i64: 1, 32>}, {pipeline_mode = #tpu.pipeline_mode<synchronous>, transform_indices = @transform_19, window_bounds = array<i64: 32, 64>}, {pipeline_mode = #tpu.pipeline_mode<synchronous>, transform_indices = @transform_20, window_bounds = array<i64: 1, 64>}, {pipeline_mode = #tpu.pipeline_mode<synchronous>, transform_indices = @transform_21, window_bounds = array<i64: 64, 32>}, {pipeline_mode = #tpu.pipeline_mode<synchronous>, transform_indices = @transform_22, window_bounds = array<i64: 1, 32>}, {pipeline_mode = #tpu.pipeline_mode<synchronous>, transform_indices = @transform_23, window_bounds = array<i64: 32, 64>}, {pipeline_mode = #tpu.pipeline_mode<synchronous>, transform_indices = @transform_24, window_bounds = array<i64: 1, 64>}, {pipeline_mode = #tpu.pipeline_mode<synchronous>, transform_indices = @transform_25, window_bounds = array<i64: 64, 32>}, {pipeline_mode = #tpu.pipeline_mode<synchronous>, transform_indices = @transform_26, window_bounds = array<i64: 1, 32>}, {transform_indices = @transform_27, window_bounds = array<i64: 1, 8, 32>}, {transform_indices = @transform_28, window_bounds = array<i64: 1, 8, 8, 32>}, {transform_indices = @transform_29, window_bounds = array<i64: 1, 4, 8, 8>}]} {
    %c0 = arith.constant 0 : index
    %c0_0 = arith.constant 0 : index
    %c0_1 = arith.constant 0 : index
    %0 = vector.load %arg2[%c0, %c0_0, %c0_1] : memref<1x8x32xf32, #tpu.memory_space<vmem>>, vector<1x8x32xf32>
    %1 = vector.shape_cast %0 : vector<1x8x32xf32> to vector<8x32xf32>
    %c0_2 = arith.constant 0 : index
    %c0_3 = arith.constant 0 : index
    %c0_4 = arith.constant 0 : index
    %2 = vector.load %arg3[%c0_2, %c0_3, %c0_4] : memref<1x8x32xf32, #tpu.memory_space<vmem>>, vector<1x8x32xf32>
    %3 = vector.shape_cast %2 : vector<1x8x32xf32> to vector<8x32xf32>
    %c0_5 = arith.constant 0 : index
    %c0_6 = arith.constant 0 : index
    %c0_7 = arith.constant 0 : index
    %c0_8 = arith.constant 0 : index
    %4 = vector.load %arg4[%c0_5, %c0_6, %c0_7, %c0_8] : memref<1x8x8x32xf32, #tpu.memory_space<vmem>>, vector<1x8x8x32xf32>
    %5 = vector.shape_cast %4 : vector<1x8x8x32xf32> to vector<8x8x32xf32>
    %c0_9 = arith.constant 0 : index
    %c0_10 = arith.constant 0 : index
    %c0_11 = arith.constant 0 : index
    %c0_12 = arith.constant 0 : index
    %6 = vector.load %arg5[%c0_9, %c0_10, %c0_11, %c0_12] : memref<1x1x8x8xf32, #tpu.memory_space<vmem>>, vector<1x1x8x8xf32>
    %7 = vector.shape_cast %6 : vector<1x1x8x8xf32> to vector<8x8xf32>
    %c0_13 = arith.constant 0 : index
    %c0_14 = arith.constant 0 : index
    %c0_15 = arith.constant 0 : index
    %c0_16 = arith.constant 0 : index
    %8 = vector.load %arg6[%c0_13, %c0_14, %c0_15, %c0_16] : memref<1x1x1x8xf32, #tpu.memory_space<vmem>>, vector<1x1x1x8xf32>
    %9 = vector.shape_cast %8 : vector<1x1x1x8xf32> to vector<1x8xf32>
    %c0_17 = arith.constant 0 : index
    %c0_18 = arith.constant 0 : index
    %10 = vector.load %arg9[%c0_17, %c0_18] : memref<32x32xf32, #tpu.memory_space<vmem>>, vector<32x32xf32>
    %cst = arith.constant dense<0.000000e+00> : vector<8x32xf32>
    %11 = tpu.matmul %1, %10, %cst {dimension_numbers = #tpu.dot_dimension_numbers<[1], [0], [0], [1], [0, 0, 1, 1], [], []>} : vector<8x32xf32>, vector<32x32xf32>, vector<8x32xf32> -> vector<8x32xf32>
    %c0_19 = arith.constant 0 : index
    %c0_20 = arith.constant 0 : index
    %12 = vector.load %arg10[%c0_19, %c0_20] : memref<1x32xf32, #tpu.memory_space<vmem>>, vector<1x32xf32>
    %13 = vector.broadcast %12 : vector<1x32xf32> to vector<8x32xf32>
    %14 = arith.addf %11, %13 : vector<8x32xf32>
    %c0_21 = arith.constant 0 : index
    %c0_22 = arith.constant 0 : index
    %15 = vector.load %arg7[%c0_21, %c0_22] : memref<32x32xf32, #tpu.memory_space<vmem>>, vector<32x32xf32>
    %cst_23 = arith.constant dense<0.000000e+00> : vector<8x32xf32>
    %16 = tpu.matmul %3, %15, %cst_23 {dimension_numbers = #tpu.dot_dimension_numbers<[1], [0], [0], [1], [0, 0, 1, 1], [], []>} : vector<8x32xf32>, vector<32x32xf32>, vector<8x32xf32> -> vector<8x32xf32>
    %c0_24 = arith.constant 0 : index
    %c0_25 = arith.constant 0 : index
    %17 = vector.load %arg8[%c0_24, %c0_25] : memref<1x32xf32, #tpu.memory_space<vmem>>, vector<1x32xf32>
    %18 = vector.broadcast %17 : vector<1x32xf32> to vector<8x32xf32>
    %19 = arith.addf %16, %18 : vector<8x32xf32>
    %cst_26 = arith.constant 0.353553385 : f32
    %20 = vector.broadcast %cst_26 : f32 to vector<8x32xf32>
    %21 = arith.mulf %19, %20 : vector<8x32xf32>
    %22 = vector.shape_cast %5 : vector<8x8x32xf32> to vector<64x32xf32>
    %23 = arith.truncf %22 : vector<64x32xf32> to vector<64x32xbf16>
    %c0_27 = arith.constant 0 : index
    %c0_28 = arith.constant 0 : index
    %24 = vector.load %arg11[%c0_27, %c0_28] : memref<32x32xbf16, #tpu.memory_space<vmem>>, vector<32x32xbf16>
    %cst_29 = arith.constant dense<0.000000e+00> : vector<64x32xf32>
    %25 = tpu.matmul %23, %24, %cst_29 {dimension_numbers = #tpu.dot_dimension_numbers<[1], [0], [0], [1], [0, 0, 1, 1], [], []>} : vector<64x32xbf16>, vector<32x32xbf16>, vector<64x32xf32> -> vector<64x32xf32>
    %c0_30 = arith.constant 0 : index
    %c0_31 = arith.constant 0 : index
    %26 = vector.load %arg12[%c0_30, %c0_31] : memref<1x32xf32, #tpu.memory_space<vmem>>, vector<1x32xf32>
    %27 = vector.broadcast %26 : vector<1x32xf32> to vector<64x32xf32>
    %28 = arith.addf %25, %27 : vector<64x32xf32>
    %29 = vector.shape_cast %28 : vector<64x32xf32> to vector<8x8x32xf32>
    %30 = vector.shape_cast %21 : vector<8x32xf32> to vector<8x1x32xf32>
    %31 = vector.shape_cast %14 : vector<8x32xf32> to vector<1x8x32xf32>
    %32 = vector.broadcast %30 : vector<8x1x32xf32> to vector<8x8x32xf32>
    %33 = vector.broadcast %31 : vector<1x8x32xf32> to vector<8x8x32xf32>
    %34 = arith.mulf %32, %33 : vector<8x8x32xf32>
    %35 = arith.mulf %34, %29 : vector<8x8x32xf32>
    %36 = tpu.iota {dimensions = array<i32: 1>} : vector<1x32xi32>
    %cst_32 = arith.constant 0.000000e+00 : f32
    %37 = vector.broadcast %cst_32 : f32 to vector<8x32xf32>
    %38 = vector.extract_strided_slice %35 {offsets = [0, 0, 0], sizes = [8, 8, 8], strides = [1, 1, 1]} : vector<8x8x32xf32> to vector<8x8x8xf32>
    %cst_33 = arith.constant dense<0.000000e+00> : vector<8x8xf32>
    %39 = vector.multi_reduction <add>, %38, %cst_33 [2] : vector<8x8x8xf32> to vector<8x8xf32>
    %40 = arith.addf %7, %39 : vector<8x8xf32>
    %cst_34 = arith.constant dense<0xFF800000> : vector<8xf32>
    %41 = vector.multi_reduction <maximumf>, %40, %cst_34 [1] : vector<8x8xf32> to vector<8xf32>
    %42 = vector.shape_cast %41 : vector<8xf32> to vector<8x1xf32>
    %43 = vector.broadcast %42 : vector<8x1xf32> to vector<8x8xf32>
    %44 = arith.subf %40, %43 : vector<8x8xf32>
    %45 = math.exp %44 : vector<8x8xf32>
    %cst_35 = arith.constant dense<0.000000e+00> : vector<8xf32>
    %46 = vector.multi_reduction <add>, %45, %cst_35 [1] : vector<8x8xf32> to vector<8xf32>
    %47 = vector.shape_cast %46 : vector<8xf32> to vector<8x1xf32>
    %48 = tpu.reciprocal %47 {approx = true} : vector<8x1xf32> -> vector<8x1xf32>
    %49 = vector.broadcast %48 : vector<8x1xf32> to vector<8x8xf32>
    %50 = arith.mulf %45, %49 : vector<8x8xf32>
    %51 = vector.broadcast %9 : vector<1x8xf32> to vector<8x8xf32>
    %52 = arith.mulf %50, %51 : vector<8x8xf32>
    %c0_36 = arith.constant 0 : index
    %c0_37 = arith.constant 0 : index
    %c0_38 = arith.constant 0 : index
    %c0_39 = arith.constant 0 : index
    %53 = vector.load %arg31[%c0_36, %c0_37, %c0_38, %c0_39] : memref<1x4x8x8xf32, #tpu.memory_space<vmem>>, vector<1x1x8x8xf32>
    %54 = vector.shape_cast %53 : vector<1x1x8x8xf32> to vector<8x8xf32>
    %55 = vector.shape_cast %52 : vector<8x8xf32> to vector<1x1x8x8xf32>
    tpu.vector_store %arg31[%c0_36, %c0_37, %c0_38, %c0_39], %55 {strides = array<i32>} : memref<1x4x8x8xf32, #tpu.memory_space<vmem>>, vector<1x1x8x8xf32>,
    %c0_i32 = arith.constant 0 : i32
    %56 = vector.broadcast %c0_i32 : i32 to vector<1x32xi32>
    %57 = arith.cmpi sge, %36, %56 : vector<1x32xi32>
    %c8_i32 = arith.constant 8 : i32
    %58 = vector.broadcast %c8_i32 : i32 to vector<1x32xi32>
    %59 = arith.cmpi slt, %36, %58 : vector<1x32xi32>
    %60 = arith.andi %57, %59 : vector<1x32xi1>
    %61 = arith.extui %60 : vector<1x32xi1> to vector<1x32xi32>
    %62 = arith.sitofp %61 : vector<1x32xi32> to vector<1x32xf32>
    %cst_40 = arith.constant dense<0.000000e+00> : vector<8x32xf32>
    %63 = tpu.matmul %52, %14, %cst_40 {dimension_numbers = #tpu.dot_dimension_numbers<[1], [0], [0], [1], [0, 0, 1, 1], [], []>} : vector<8x8xf32>, vector<8x32xf32>, vector<8x32xf32> -> vector<8x32xf32>
    %64 = vector.broadcast %62 : vector<1x32xf32> to vector<8x32xf32>
    %65 = arith.mulf %63, %64 : vector<8x32xf32>
    %66 = arith.addf %37, %65 : vector<8x32xf32>
    %67 = vector.extract_strided_slice %35 {offsets = [0, 0, 8], sizes = [8, 8, 8], strides = [1, 1, 1]} : vector<8x8x32xf32> to vector<8x8x8xf32>
    %cst_41 = arith.constant dense<0.000000e+00> : vector<8x8xf32>
    %68 = vector.multi_reduction <add>, %67, %cst_41 [2] : vector<8x8x8xf32> to vector<8x8xf32>
    %69 = arith.addf %7, %68 : vector<8x8xf32>
    %cst_42 = arith.constant dense<0xFF800000> : vector<8xf32>
    %70 = vector.multi_reduction <maximumf>, %69, %cst_42 [1] : vector<8x8xf32> to vector<8xf32>
    %71 = vector.shape_cast %70 : vector<8xf32> to vector<8x1xf32>
    %72 = vector.broadcast %71 : vector<8x1xf32> to vector<8x8xf32>
    %73 = arith.subf %69, %72 : vector<8x8xf32>
    %74 = math.exp %73 : vector<8x8xf32>
    %cst_43 = arith.constant dense<0.000000e+00> : vector<8xf32>
    %75 = vector.multi_reduction <add>, %74, %cst_43 [1] : vector<8x8xf32> to vector<8xf32>
    %76 = vector.shape_cast %75 : vector<8xf32> to vector<8x1xf32>
    %77 = tpu.reciprocal %76 {approx = true} : vector<8x1xf32> -> vector<8x1xf32>
    %78 = vector.broadcast %77 : vector<8x1xf32> to vector<8x8xf32>
    %79 = arith.mulf %74, %78 : vector<8x8xf32>
    %80 = vector.broadcast %9 : vector<1x8xf32> to vector<8x8xf32>
    %81 = arith.mulf %79, %80 : vector<8x8xf32>
    %c0_44 = arith.constant 0 : index
    %c1 = arith.constant 1 : index
    %c0_45 = arith.constant 0 : index
    %c0_46 = arith.constant 0 : index
    %82 = vector.load %arg31[%c0_44, %c1, %c0_45, %c0_46] : memref<1x4x8x8xf32, #tpu.memory_space<vmem>>, vector<1x1x8x8xf32>
    %83 = vector.shape_cast %82 : vector<1x1x8x8xf32> to vector<8x8xf32>
    %84 = vector.shape_cast %81 : vector<8x8xf32> to vector<1x1x8x8xf32>
    tpu.vector_store %arg31[%c0_44, %c1, %c0_45, %c0_46], %84 {strides = array<i32>} : memref<1x4x8x8xf32, #tpu.memory_space<vmem>>, vector<1x1x8x8xf32>,
    %c8_i32_47 = arith.constant 8 : i32
    %85 = vector.broadcast %c8_i32_47 : i32 to vector<1x32xi32>
    %86 = arith.cmpi sge, %36, %85 : vector<1x32xi32>
    %c16_i32 = arith.constant 16 : i32
    %87 = vector.broadcast %c16_i32 : i32 to vector<1x32xi32>
    %88 = arith.cmpi slt, %36, %87 : vector<1x32xi32>
    %89 = arith.andi %86, %88 : vector<1x32xi1>
    %90 = arith.extui %89 : vector<1x32xi1> to vector<1x32xi32>
    %91 = arith.sitofp %90 : vector<1x32xi32> to vector<1x32xf32>
    %cst_48 = arith.constant dense<0.000000e+00> : vector<8x32xf32>
    %92 = tpu.matmul %81, %14, %cst_48 {dimension_numbers = #tpu.dot_dimension_numbers<[1], [0], [0], [1], [0, 0, 1, 1], [], []>} : vector<8x8xf32>, vector<8x32xf32>, vector<8x32xf32> -> vector<8x32xf32>
    %93 = vector.broadcast %91 : vector<1x32xf32> to vector<8x32xf32>
    %94 = arith.mulf %92, %93 : vector<8x32xf32>
    %95 = arith.addf %66, %94 : vector<8x32xf32>
    %96 = vector.extract_strided_slice %35 {offsets = [0, 0, 16], sizes = [8, 8, 8], strides = [1, 1, 1]} : vector<8x8x32xf32> to vector<8x8x8xf32>
    %cst_49 = arith.constant dense<0.000000e+00> : vector<8x8xf32>
    %97 = vector.multi_reduction <add>, %96, %cst_49 [2] : vector<8x8x8xf32> to vector<8x8xf32>
    %98 = arith.addf %7, %97 : vector<8x8xf32>
    %cst_50 = arith.constant dense<0xFF800000> : vector<8xf32>
    %99 = vector.multi_reduction <maximumf>, %98, %cst_50 [1] : vector<8x8xf32> to vector<8xf32>
    %100 = vector.shape_cast %99 : vector<8xf32> to vector<8x1xf32>
    %101 = vector.broadcast %100 : vector<8x1xf32> to vector<8x8xf32>
    %102 = arith.subf %98, %101 : vector<8x8xf32>
    %103 = math.exp %102 : vector<8x8xf32>
    %cst_51 = arith.constant dense<0.000000e+00> : vector<8xf32>
    %104 = vector.multi_reduction <add>, %103, %cst_51 [1] : vector<8x8xf32> to vector<8xf32>
    %105 = vector.shape_cast %104 : vector<8xf32> to vector<8x1xf32>
    %106 = tpu.reciprocal %105 {approx = true} : vector<8x1xf32> -> vector<8x1xf32>
    %107 = vector.broadcast %106 : vector<8x1xf32> to vector<8x8xf32>
    %108 = arith.mulf %103, %107 : vector<8x8xf32>
    %109 = vector.broadcast %9 : vector<1x8xf32> to vector<8x8xf32>
    %110 = arith.mulf %108, %109 : vector<8x8xf32>
    %c0_52 = arith.constant 0 : index
    %c2 = arith.constant 2 : index
    %c0_53 = arith.constant 0 : index
    %c0_54 = arith.constant 0 : index
    %111 = vector.load %arg31[%c0_52, %c2, %c0_53, %c0_54] : memref<1x4x8x8xf32, #tpu.memory_space<vmem>>, vector<1x1x8x8xf32>
    %112 = vector.shape_cast %111 : vector<1x1x8x8xf32> to vector<8x8xf32>
    %113 = vector.shape_cast %110 : vector<8x8xf32> to vector<1x1x8x8xf32>
    tpu.vector_store %arg31[%c0_52, %c2, %c0_53, %c0_54], %113 {strides = array<i32>} : memref<1x4x8x8xf32, #tpu.memory_space<vmem>>, vector<1x1x8x8xf32>,
    %c16_i32_55 = arith.constant 16 : i32
    %114 = vector.broadcast %c16_i32_55 : i32 to vector<1x32xi32>
    %115 = arith.cmpi sge, %36, %114 : vector<1x32xi32>
    %c24_i32 = arith.constant 24 : i32
    %116 = vector.broadcast %c24_i32 : i32 to vector<1x32xi32>
    %117 = arith.cmpi slt, %36, %116 : vector<1x32xi32>
    %118 = arith.andi %115, %117 : vector<1x32xi1>
    %119 = arith.extui %118 : vector<1x32xi1> to vector<1x32xi32>
    %120 = arith.sitofp %119 : vector<1x32xi32> to vector<1x32xf32>
    %cst_56 = arith.constant dense<0.000000e+00> : vector<8x32xf32>
    %121 = tpu.matmul %110, %14, %cst_56 {dimension_numbers = #tpu.dot_dimension_numbers<[1], [0], [0], [1], [0, 0, 1, 1], [], []>} : vector<8x8xf32>, vector<8x32xf32>, vector<8x32xf32> -> vector<8x32xf32>
    %122 = vector.broadcast %120 : vector<1x32xf32> to vector<8x32xf32>
    %123 = arith.mulf %121, %122 : vector<8x32xf32>
    %124 = arith.addf %95, %123 : vector<8x32xf32>
    %125 = vector.extract_strided_slice %35 {offsets = [0, 0, 24], sizes = [8, 8, 8], strides = [1, 1, 1]} : vector<8x8x32xf32> to vector<8x8x8xf32>
    %cst_57 = arith.constant dense<0.000000e+00> : vector<8x8xf32>
    %126 = vector.multi_reduction <add>, %125, %cst_57 [2] : vector<8x8x8xf32> to vector<8x8xf32>
    %127 = arith.addf %7, %126 : vector<8x8xf32>
    %cst_58 = arith.constant dense<0xFF800000> : vector<8xf32>
    %128 = vector.multi_reduction <maximumf>, %127, %cst_58 [1] : vector<8x8xf32> to vector<8xf32>
    %129 = vector.shape_cast %128 : vector<8xf32> to vector<8x1xf32>
    %130 = vector.broadcast %129 : vector<8x1xf32> to vector<8x8xf32>
    %131 = arith.subf %127, %130 : vector<8x8xf32>
    %132 = math.exp %131 : vector<8x8xf32>
    %cst_59 = arith.constant dense<0.000000e+00> : vector<8xf32>
    %133 = vector.multi_reduction <add>, %132, %cst_59 [1] : vector<8x8xf32> to vector<8xf32>
    %134 = vector.shape_cast %133 : vector<8xf32> to vector<8x1xf32>
    %135 = tpu.reciprocal %134 {approx = true} : vector<8x1xf32> -> vector<8x1xf32>
    %136 = vector.broadcast %135 : vector<8x1xf32> to vector<8x8xf32>
    %137 = arith.mulf %132, %136 : vector<8x8xf32>
    %138 = vector.broadcast %9 : vector<1x8xf32> to vector<8x8xf32>
    %139 = arith.mulf %137, %138 : vector<8x8xf32>
    %c0_60 = arith.constant 0 : index
    %c3 = arith.constant 3 : index
    %c0_61 = arith.constant 0 : index
    %c0_62 = arith.constant 0 : index
    %140 = vector.load %arg31[%c0_60, %c3, %c0_61, %c0_62] : memref<1x4x8x8xf32, #tpu.memory_space<vmem>>, vector<1x1x8x8xf32>
    %141 = vector.shape_cast %140 : vector<1x1x8x8xf32> to vector<8x8xf32>
    %142 = vector.shape_cast %139 : vector<8x8xf32> to vector<1x1x8x8xf32>
    tpu.vector_store %arg31[%c0_60, %c3, %c0_61, %c0_62], %142 {strides = array<i32>} : memref<1x4x8x8xf32, #tpu.memory_space<vmem>>, vector<1x1x8x8xf32>,
    %c24_i32_63 = arith.constant 24 : i32
    %143 = vector.broadcast %c24_i32_63 : i32 to vector<1x32xi32>
    %144 = arith.cmpi sge, %36, %143 : vector<1x32xi32>
    %c32_i32 = arith.constant 32 : i32
    %145 = vector.broadcast %c32_i32 : i32 to vector<1x32xi32>
    %146 = arith.cmpi slt, %36, %145 : vector<1x32xi32>
    %147 = arith.andi %144, %146 : vector<1x32xi1>
    %148 = arith.extui %147 : vector<1x32xi1> to vector<1x32xi32>
    %149 = arith.sitofp %148 : vector<1x32xi32> to vector<1x32xf32>
    %cst_64 = arith.constant dense<0.000000e+00> : vector<8x32xf32>
    %150 = tpu.matmul %139, %14, %cst_64 {dimension_numbers = #tpu.dot_dimension_numbers<[1], [0], [0], [1], [0, 0, 1, 1], [], []>} : vector<8x8xf32>, vector<8x32xf32>, vector<8x32xf32> -> vector<8x32xf32>
    %151 = vector.broadcast %149 : vector<1x32xf32> to vector<8x32xf32>
    %152 = arith.mulf %150, %151 : vector<8x32xf32>
    %153 = arith.addf %124, %152 : vector<8x32xf32>
    %c0_65 = arith.constant 0 : index
    %c0_66 = arith.constant 0 : index
    %154 = vector.load %arg13[%c0_65, %c0_66] : memref<32x32xf32, #tpu.memory_space<vmem>>, vector<32x32xf32>
    %cst_67 = arith.constant dense<0.000000e+00> : vector<8x32xf32>
    %155 = tpu.matmul %153, %154, %cst_67 {dimension_numbers = #tpu.dot_dimension_numbers<[1], [0], [0], [1], [0, 0, 1, 1], [], []>} : vector<8x32xf32>, vector<32x32xf32>, vector<8x32xf32> -> vector<8x32xf32>
    %c0_68 = arith.constant 0 : index
    %c0_69 = arith.constant 0 : index
    %156 = vector.load %arg14[%c0_68, %c0_69] : memref<1x32xf32, #tpu.memory_space<vmem>>, vector<1x32xf32>
    %157 = vector.broadcast %156 : vector<1x32xf32> to vector<8x32xf32>
    %158 = arith.addf %155, %157 : vector<8x32xf32>
    %159 = vector.shape_cast %35 : vector<8x8x32xf32> to vector<64x32xf32>
    %160 = arith.truncf %159 : vector<64x32xf32> to vector<64x32xbf16>
    %c0_70 = arith.constant 0 : index
    %c0_71 = arith.constant 0 : index
    %161 = vector.load %arg15[%c0_70, %c0_71] : memref<32x32xbf16, #tpu.memory_space<vmem>>, vector<32x32xbf16>
    %cst_72 = arith.constant dense<0.000000e+00> : vector<64x32xf32>
    %162 = tpu.matmul %160, %161, %cst_72 {dimension_numbers = #tpu.dot_dimension_numbers<[1], [0], [0], [1], [0, 0, 1, 1], [], []>} : vector<64x32xbf16>, vector<32x32xbf16>, vector<64x32xf32> -> vector<64x32xf32>
    %c0_73 = arith.constant 0 : index
    %c0_74 = arith.constant 0 : index
    %163 = vector.load %arg16[%c0_73, %c0_74] : memref<1x32xf32, #tpu.memory_space<vmem>>, vector<1x32xf32>
    %164 = vector.broadcast %163 : vector<1x32xf32> to vector<64x32xf32>
    %165 = arith.addf %162, %164 : vector<64x32xf32>
    %166 = arith.addf %158, %3 : vector<8x32xf32>
    %c0_75 = arith.constant 0 : index
    %c0_76 = arith.constant 0 : index
    %167 = vector.load %arg17[%c0_75, %c0_76] : memref<1x32xf32, #tpu.memory_space<vmem>>, vector<1x32xf32>
    %c0_77 = arith.constant 0 : index
    %c0_78 = arith.constant 0 : index
    %168 = vector.load %arg18[%c0_77, %c0_78] : memref<1x32xf32, #tpu.memory_space<vmem>>, vector<1x32xf32>
    %cst_79 = arith.constant dense<0.000000e+00> : vector<8xf32>
    %169 = vector.multi_reduction <add>, %166, %cst_79 [1] : vector<8x32xf32> to vector<8xf32>
    %170 = vector.shape_cast %169 : vector<8xf32> to vector<8x1xf32>
    %cst_80 = arith.constant 3.200000e+01 : f32
    %171 = vector.broadcast %cst_80 : f32 to vector<8x1xf32>
    %172 = arith.divf %170, %171 : vector<8x1xf32>
    %173 = vector.broadcast %172 : vector<8x1xf32> to vector<8x32xf32>
    %174 = arith.subf %166, %173 : vector<8x32xf32>
    %175 = arith.mulf %174, %174 : vector<8x32xf32>
    %cst_81 = arith.constant dense<0.000000e+00> : vector<8xf32>
    %176 = vector.multi_reduction <add>, %175, %cst_81 [1] : vector<8x32xf32> to vector<8xf32>
    %177 = vector.shape_cast %176 : vector<8xf32> to vector<8x1xf32>
    %cst_82 = arith.constant 3.200000e+01 : f32
    %178 = vector.broadcast %cst_82 : f32 to vector<8x1xf32>
    %179 = arith.divf %177, %178 : vector<8x1xf32>
    %180 = vector.broadcast %172 : vector<8x1xf32> to vector<8x32xf32>
    %181 = arith.subf %166, %180 : vector<8x32xf32>
    %cst_83 = arith.constant 9.99999974E-6 : f32
    %182 = vector.broadcast %cst_83 : f32 to vector<8x1xf32>
    %183 = arith.addf %179, %182 : vector<8x1xf32>
    %184 = math.rsqrt %183 : vector<8x1xf32>
    %185 = vector.broadcast %184 : vector<8x1xf32> to vector<8x32xf32>
    %186 = arith.mulf %181, %185 : vector<8x32xf32>
    %187 = vector.broadcast %167 : vector<1x32xf32> to vector<8x32xf32>
    %188 = arith.mulf %186, %187 : vector<8x32xf32>
    %189 = vector.broadcast %168 : vector<1x32xf32> to vector<8x32xf32>
    %190 = arith.addf %188, %189 : vector<8x32xf32>
    %191 = arith.addf %165, %22 : vector<64x32xf32>
    %c0_84 = arith.constant 0 : index
    %c0_85 = arith.constant 0 : index
    %192 = vector.load %arg19[%c0_84, %c0_85] : memref<1x32xf32, #tpu.memory_space<vmem>>, vector<1x32xf32>
    %c0_86 = arith.constant 0 : index
    %c0_87 = arith.constant 0 : index
    %193 = vector.load %arg20[%c0_86, %c0_87] : memref<1x32xf32, #tpu.memory_space<vmem>>, vector<1x32xf32>
    %cst_88 = arith.constant dense<0.000000e+00> : vector<64xf32>
    %194 = vector.multi_reduction <add>, %191, %cst_88 [1] : vector<64x32xf32> to vector<64xf32>
    %195 = vector.shape_cast %194 : vector<64xf32> to vector<64x1xf32>
    %cst_89 = arith.constant 3.200000e+01 : f32
    %196 = vector.broadcast %cst_89 : f32 to vector<64x1xf32>
    %197 = arith.divf %195, %196 : vector<64x1xf32>
    %198 = vector.broadcast %197 : vector<64x1xf32> to vector<64x32xf32>
    %199 = arith.subf %191, %198 : vector<64x32xf32>
    %200 = arith.mulf %199, %199 : vector<64x32xf32>
    %cst_90 = arith.constant dense<0.000000e+00> : vector<64xf32>
    %201 = vector.multi_reduction <add>, %200, %cst_90 [1] : vector<64x32xf32> to vector<64xf32>
    %202 = vector.shape_cast %201 : vector<64xf32> to vector<64x1xf32>
    %cst_91 = arith.constant 3.200000e+01 : f32
    %203 = vector.broadcast %cst_91 : f32 to vector<64x1xf32>
    %204 = arith.divf %202, %203 : vector<64x1xf32>
    %205 = vector.broadcast %197 : vector<64x1xf32> to vector<64x32xf32>
    %206 = arith.subf %191, %205 : vector<64x32xf32>
    %cst_92 = arith.constant 9.99999974E-6 : f32
    %207 = vector.broadcast %cst_92 : f32 to vector<64x1xf32>
    %208 = arith.addf %204, %207 : vector<64x1xf32>
    %209 = math.rsqrt %208 : vector<64x1xf32>
    %210 = vector.broadcast %209 : vector<64x1xf32> to vector<64x32xf32>
    %211 = arith.mulf %206, %210 : vector<64x32xf32>
    %212 = vector.broadcast %192 : vector<1x32xf32> to vector<64x32xf32>
    %213 = arith.mulf %211, %212 : vector<64x32xf32>
    %214 = vector.broadcast %193 : vector<1x32xf32> to vector<64x32xf32>
    %215 = arith.addf %213, %214 : vector<64x32xf32>
    %c0_93 = arith.constant 0 : index
    %c0_94 = arith.constant 0 : index
    %216 = vector.load %arg21[%c0_93, %c0_94] : memref<32x64xf32, #tpu.memory_space<vmem>>, vector<32x64xf32>
    %cst_95 = arith.constant dense<0.000000e+00> : vector<8x64xf32>
    %217 = tpu.matmul %190, %216, %cst_95 {dimension_numbers = #tpu.dot_dimension_numbers<[1], [0], [0], [1], [0, 0, 1, 1], [], []>} : vector<8x32xf32>, vector<32x64xf32>, vector<8x64xf32> -> vector<8x64xf32>
    %c0_96 = arith.constant 0 : index
    %c0_97 = arith.constant 0 : index
    %218 = vector.load %arg22[%c0_96, %c0_97] : memref<1x64xf32, #tpu.memory_space<vmem>>, vector<1x64xf32>
    %219 = vector.broadcast %218 : vector<1x64xf32> to vector<8x64xf32>
    %220 = arith.addf %217, %219 : vector<8x64xf32>
    %cst_98 = arith.constant 0.000000e+00 : f32
    %221 = vector.broadcast %cst_98 : f32 to vector<8x64xf32>
    %222 = arith.maximumf %220, %221 : vector<8x64xf32>
    %c0_99 = arith.constant 0 : index
    %c0_100 = arith.constant 0 : index
    %223 = vector.load %arg23[%c0_99, %c0_100] : memref<64x32xf32, #tpu.memory_space<vmem>>, vector<64x32xf32>
    %cst_101 = arith.constant dense<0.000000e+00> : vector<8x32xf32>
    %224 = tpu.matmul %222, %223, %cst_101 {dimension_numbers = #tpu.dot_dimension_numbers<[1], [0], [0], [1], [0, 0, 1, 1], [], []>} : vector<8x64xf32>, vector<64x32xf32>, vector<8x32xf32> -> vector<8x32xf32>
    %c0_102 = arith.constant 0 : index
    %c0_103 = arith.constant 0 : index
    %225 = vector.load %arg24[%c0_102, %c0_103] : memref<1x32xf32, #tpu.memory_space<vmem>>, vector<1x32xf32>
    %226 = vector.broadcast %225 : vector<1x32xf32> to vector<8x32xf32>
    %227 = arith.addf %224, %226 : vector<8x32xf32>
    %228 = arith.truncf %215 : vector<64x32xf32> to vector<64x32xbf16>
    %c0_104 = arith.constant 0 : index
    %c0_105 = arith.constant 0 : index
    %229 = vector.load %arg25[%c0_104, %c0_105] : memref<32x64xbf16, #tpu.memory_space<vmem>>, vector<32x64xbf16>
    %cst_106 = arith.constant dense<0.000000e+00> : vector<64x64xf32>
    %230 = tpu.matmul %228, %229, %cst_106 {dimension_numbers = #tpu.dot_dimension_numbers<[1], [0], [0], [1], [0, 0, 1, 1], [], []>} : vector<64x32xbf16>, vector<32x64xbf16>, vector<64x64xf32> -> vector<64x64xf32>
    %c0_107 = arith.constant 0 : index
    %c0_108 = arith.constant 0 : index
    %231 = vector.load %arg26[%c0_107, %c0_108] : memref<1x64xf32, #tpu.memory_space<vmem>>, vector<1x64xf32>
    %232 = vector.broadcast %231 : vector<1x64xf32> to vector<64x64xf32>
    %233 = arith.addf %230, %232 : vector<64x64xf32>
    %cst_109 = arith.constant 0.000000e+00 : f32
    %234 = vector.broadcast %cst_109 : f32 to vector<64x64xf32>
    %235 = arith.maximumf %233, %234 : vector<64x64xf32>
    %236 = arith.truncf %235 : vector<64x64xf32> to vector<64x64xbf16>
    %c0_110 = arith.constant 0 : index
    %c0_111 = arith.constant 0 : index
    %237 = vector.load %arg27[%c0_110, %c0_111] : memref<64x32xbf16, #tpu.memory_space<vmem>>, vector<64x32xbf16>
    %cst_112 = arith.constant dense<0.000000e+00> : vector<64x32xf32>
    %238 = tpu.matmul %236, %237, %cst_112 {dimension_numbers = #tpu.dot_dimension_numbers<[1], [0], [0], [1], [0, 0, 1, 1], [], []>} : vector<64x64xbf16>, vector<64x32xbf16>, vector<64x32xf32> -> vector<64x32xf32>
    %c0_113 = arith.constant 0 : index
    %c0_114 = arith.constant 0 : index
    %239 = vector.load %arg28[%c0_113, %c0_114] : memref<1x32xf32, #tpu.memory_space<vmem>>, vector<1x32xf32>
    %240 = vector.broadcast %239 : vector<1x32xf32> to vector<64x32xf32>
    %241 = arith.addf %238, %240 : vector<64x32xf32>
    %242 = arith.addf %227, %190 : vector<8x32xf32>
    %c0_115 = arith.constant 0 : index
    %c0_116 = arith.constant 0 : index
    %243 = vector.load %arg17[%c0_115, %c0_116] : memref<1x32xf32, #tpu.memory_space<vmem>>, vector<1x32xf32>
    %c0_117 = arith.constant 0 : index
    %c0_118 = arith.constant 0 : index
    %244 = vector.load %arg18[%c0_117, %c0_118] : memref<1x32xf32, #tpu.memory_space<vmem>>, vector<1x32xf32>
    %cst_119 = arith.constant dense<0.000000e+00> : vector<8xf32>
    %245 = vector.multi_reduction <add>, %242, %cst_119 [1] : vector<8x32xf32> to vector<8xf32>
    %246 = vector.shape_cast %245 : vector<8xf32> to vector<8x1xf32>
    %cst_120 = arith.constant 3.200000e+01 : f32
    %247 = vector.broadcast %cst_120 : f32 to vector<8x1xf32>
    %248 = arith.divf %246, %247 : vector<8x1xf32>
    %249 = vector.broadcast %248 : vector<8x1xf32> to vector<8x32xf32>
    %250 = arith.subf %242, %249 : vector<8x32xf32>
    %251 = arith.mulf %250, %250 : vector<8x32xf32>
    %cst_121 = arith.constant dense<0.000000e+00> : vector<8xf32>
    %252 = vector.multi_reduction <add>, %251, %cst_121 [1] : vector<8x32xf32> to vector<8xf32>
    %253 = vector.shape_cast %252 : vector<8xf32> to vector<8x1xf32>
    %cst_122 = arith.constant 3.200000e+01 : f32
    %254 = vector.broadcast %cst_122 : f32 to vector<8x1xf32>
    %255 = arith.divf %253, %254 : vector<8x1xf32>
    %256 = vector.broadcast %248 : vector<8x1xf32> to vector<8x32xf32>
    %257 = arith.subf %242, %256 : vector<8x32xf32>
    %cst_123 = arith.constant 9.99999974E-6 : f32
    %258 = vector.broadcast %cst_123 : f32 to vector<8x1xf32>
    %259 = arith.addf %255, %258 : vector<8x1xf32>
    %260 = math.rsqrt %259 : vector<8x1xf32>
    %261 = vector.broadcast %260 : vector<8x1xf32> to vector<8x32xf32>
    %262 = arith.mulf %257, %261 : vector<8x32xf32>
    %263 = vector.broadcast %243 : vector<1x32xf32> to vector<8x32xf32>
    %264 = arith.mulf %262, %263 : vector<8x32xf32>
    %265 = vector.broadcast %244 : vector<1x32xf32> to vector<8x32xf32>
    %266 = arith.addf %264, %265 : vector<8x32xf32>
    %267 = arith.addf %241, %215 : vector<64x32xf32>
    %c0_124 = arith.constant 0 : index
    %c0_125 = arith.constant 0 : index
    %268 = vector.load %arg19[%c0_124, %c0_125] : memref<1x32xf32, #tpu.memory_space<vmem>>, vector<1x32xf32>
    %c0_126 = arith.constant 0 : index
    %c0_127 = arith.constant 0 : index
    %269 = vector.load %arg20[%c0_126, %c0_127] : memref<1x32xf32, #tpu.memory_space<vmem>>, vector<1x32xf32>
    %cst_128 = arith.constant dense<0.000000e+00> : vector<64xf32>
    %270 = vector.multi_reduction <add>, %267, %cst_128 [1] : vector<64x32xf32> to vector<64xf32>
    %271 = vector.shape_cast %270 : vector<64xf32> to vector<64x1xf32>
    %cst_129 = arith.constant 3.200000e+01 : f32
    %272 = vector.broadcast %cst_129 : f32 to vector<64x1xf32>
    %273 = arith.divf %271, %272 : vector<64x1xf32>
    %274 = vector.broadcast %273 : vector<64x1xf32> to vector<64x32xf32>
    %275 = arith.subf %267, %274 : vector<64x32xf32>
    %276 = arith.mulf %275, %275 : vector<64x32xf32>
    %cst_130 = arith.constant dense<0.000000e+00> : vector<64xf32>
    %277 = vector.multi_reduction <add>, %276, %cst_130 [1] : vector<64x32xf32> to vector<64xf32>
    %278 = vector.shape_cast %277 : vector<64xf32> to vector<64x1xf32>
    %cst_131 = arith.constant 3.200000e+01 : f32
    %279 = vector.broadcast %cst_131 : f32 to vector<64x1xf32>
    %280 = arith.divf %278, %279 : vector<64x1xf32>
    %281 = vector.broadcast %273 : vector<64x1xf32> to vector<64x32xf32>
    %282 = arith.subf %267, %281 : vector<64x32xf32>
    %cst_132 = arith.constant 9.99999974E-6 : f32
    %283 = vector.broadcast %cst_132 : f32 to vector<64x1xf32>
    %284 = arith.addf %280, %283 : vector<64x1xf32>
    %285 = math.rsqrt %284 : vector<64x1xf32>
    %286 = vector.broadcast %285 : vector<64x1xf32> to vector<64x32xf32>
    %287 = arith.mulf %282, %286 : vector<64x32xf32>
    %288 = vector.broadcast %268 : vector<1x32xf32> to vector<64x32xf32>
    %289 = arith.mulf %287, %288 : vector<64x32xf32>
    %290 = vector.broadcast %269 : vector<1x32xf32> to vector<64x32xf32>
    %291 = arith.addf %289, %290 : vector<64x32xf32>
    %c0_133 = arith.constant 0 : index
    %c0_134 = arith.constant 0 : index
    %c0_135 = arith.constant 0 : index
    %292 = vector.load %arg29[%c0_133, %c0_134, %c0_135] : memref<1x8x32xf32, #tpu.memory_space<vmem>>, vector<1x8x32xf32>
    %293 = vector.shape_cast %292 : vector<1x8x32xf32> to vector<8x32xf32>
    %294 = vector.shape_cast %266 : vector<8x32xf32> to vector<1x8x32xf32>
    tpu.vector_store %arg29[%c0_133, %c0_134, %c0_135], %294 {strides = array<i32>} : memref<1x8x32xf32, #tpu.memory_space<vmem>>, vector<1x8x32xf32>,
    %295 = vector.shape_cast %291 : vector<64x32xf32> to vector<8x8x32xf32>
    %c0_136 = arith.constant 0 : index
    %c0_137 = arith.constant 0 : index
    %c0_138 = arith.constant 0 : index
    %c0_139 = arith.constant 0 : index
    %296 = vector.load %arg30[%c0_136, %c0_137, %c0_138, %c0_139] : memref<1x8x8x32xf32, #tpu.memory_space<vmem>>, vector<1x8x8x32xf32>
    %297 = vector.shape_cast %296 : vector<1x8x8x32xf32> to vector<8x8x32xf32>
    %298 = vector.shape_cast %295 : vector<8x8x32xf32> to vector<1x8x8x32xf32>
    tpu.vector_store %arg30[%c0_136, %c0_137, %c0_138, %c0_139], %298 {strides = array<i32>} : memref<1x8x8x32xf32, #tpu.memory_space<vmem>>, vector<1x8x8x32xf32>,
    return
  }
  func.func @transform_0(%arg0: i32, %arg1: i32) -> (i32, i32, i32) {
    %c0_i32 = arith.constant 0 : i32
    %c0_i32_0 = arith.constant 0 : i32
    %c0_i32_1 = arith.constant 0 : i32
    return %arg0, %c0_i32, %c0_i32_0 : i32, i32, i32
  }
  func.func @transform_1(%arg0: i32, %arg1: i32) -> (i32, i32, i32) {
    %c0_i32 = arith.constant 0 : i32
    %c0_i32_0 = arith.constant 0 : i32
    return %arg0, %arg1, %c0_i32 : i32, i32, i32
  }
  func.func @transform_2(%arg0: i32, %arg1: i32) -> (i32, i32, i32, i32) {
    %c0_i32 = arith.constant 0 : i32
    %c0_i32_0 = arith.constant 0 : i32
    %c0_i32_1 = arith.constant 0 : i32
    return %arg0, %arg1, %c0_i32, %c0_i32_0 : i32, i32, i32, i32
  }
  func.func @transform_3(%arg0: i32, %arg1: i32) -> (i32, i32, i32, i32) {
    %c0_i32 = arith.constant 0 : i32
    %c0_i32_0 = arith.constant 0 : i32
    %c0_i32_1 = arith.constant 0 : i32
    return %arg0, %c0_i32, %arg1, %c0_i32_0 : i32, i32, i32, i32
  }
  func.func @transform_4(%arg0: i32, %arg1: i32) -> (i32, i32, i32, i32) {
    %c0_i32 = arith.constant 0 : i32
    %c0_i32_0 = arith.constant 0 : i32
    %c0_i32_1 = arith.constant 0 : i32
    %c0_i32_2 = arith.constant 0 : i32
    return %arg0, %c0_i32, %c0_i32_0, %c0_i32_1 : i32, i32, i32, i32
  }
  func.func @transform_5(%arg0: i32, %arg1: i32) -> (i32, i32) {
    %c0_i32 = arith.constant 0 : i32
    %c0_i32_0 = arith.constant 0 : i32
    %c0_i32_1 = arith.constant 0 : i32
    return %c0_i32, %c0_i32_0 : i32, i32
  }
  func.func @transform_6(%arg0: i32, %arg1: i32) -> (i32, i32) {
    %c0_i32 = arith.constant 0 : i32
    %c0_i32_0 = arith.constant 0 : i32
    %c0_i32_1 = arith.constant 0 : i32
    return %c0_i32, %c0_i32_0 : i32, i32
  }
  func.func @transform_7(%arg0: i32, %arg1: i32) -> (i32, i32) {
    %c0_i32 = arith.constant 0 : i32
    %c0_i32_0 = arith.constant 0 : i32
    %c0_i32_1 = arith.constant 0 : i32
    return %c0_i32, %c0_i32_0 : i32, i32
  }
  func.func @transform_8(%arg0: i32, %arg1: i32) -> (i32, i32) {
    %c0_i32 = arith.constant 0 : i32
    %c0_i32_0 = arith.constant 0 : i32
    %c0_i32_1 = arith.constant 0 : i32
    return %c0_i32, %c0_i32_0 : i32, i32
  }
  func.func @transform_9(%arg0: i32, %arg1: i32) -> (i32, i32) {
    %c0_i32 = arith.constant 0 : i32
    %c0_i32_0 = arith.constant 0 : i32
    %c0_i32_1 = arith.constant 0 : i32
    return %c0_i32, %c0_i32_0 : i32, i32
  }
  func.func @transform_10(%arg0: i32, %arg1: i32) -> (i32, i32) {
    %c0_i32 = arith.constant 0 : i32
    %c0_i32_0 = arith.constant 0 : i32
    %c0_i32_1 = arith.constant 0 : i32
    return %c0_i32, %c0_i32_0 : i32, i32
  }
  func.func @transform_11(%arg0: i32, %arg1: i32) -> (i32, i32) {
    %c0_i32 = arith.constant 0 : i32
    %c0_i32_0 = arith.constant 0 : i32
    %c0_i32_1 = arith.constant 0 : i32
    return %c0_i32, %c0_i32_0 : i32, i32
  }
  func.func @transform_12(%arg0: i32, %arg1: i32) -> (i32, i32) {
    %c0_i32 = arith.constant 0 : i32
    %c0_i32_0 = arith.constant 0 : i32
    %c0_i32_1 = arith.constant 0 : i32
    return %c0_i32, %c0_i32_0 : i32, i32
  }
  func.func @transform_13(%arg0: i32, %arg1: i32) -> (i32, i32) {
    %c0_i32 = arith.constant 0 : i32
    %c0_i32_0 = arith.constant 0 : i32
    %c0_i32_1 = arith.constant 0 : i32
    return %c0_i32, %c0_i32_0 : i32, i32
  }
  func.func @transform_14(%arg0: i32, %arg1: i32) -> (i32, i32) {
    %c0_i32 = arith.constant 0 : i32
    %c0_i32_0 = arith.constant 0 : i32
    %c0_i32_1 = arith.constant 0 : i32
    return %c0_i32, %c0_i32_0 : i32, i32
  }
  func.func @transform_15(%arg0: i32, %arg1: i32) -> (i32, i32) {
    %c0_i32 = arith.constant 0 : i32
    %c0_i32_0 = arith.constant 0 : i32
    %c0_i32_1 = arith.constant 0 : i32
    return %c0_i32, %c0_i32_0 : i32, i32
  }
  func.func @transform_16(%arg0: i32, %arg1: i32) -> (i32, i32) {
    %c0_i32 = arith.constant 0 : i32
    %c0_i32_0 = arith.constant 0 : i32
    %c0_i32_1 = arith.constant 0 : i32
    return %c0_i32, %c0_i32_0 : i32, i32
  }
  func.func @transform_17(%arg0: i32, %arg1: i32) -> (i32, i32) {
    %c0_i32 = arith.constant 0 : i32
    %c0_i32_0 = arith.constant 0 : i32
    %c0_i32_1 = arith.constant 0 : i32
    return %c0_i32, %c0_i32_0 : i32, i32
  }
  func.func @transform_18(%arg0: i32, %arg1: i32) -> (i32, i32) {
    %c0_i32 = arith.constant 0 : i32
    %c0_i32_0 = arith.constant 0 : i32
    %c0_i32_1 = arith.constant 0 : i32
    return %c0_i32, %c0_i32_0 : i32, i32
  }
  func.func @transform_19(%arg0: i32, %arg1: i32) -> (i32, i32) {
    %c0_i32 = arith.constant 0 : i32
    %c0_i32_0 = arith.constant 0 : i32
    %c0_i32_1 = arith.constant 0 : i32
    return %c0_i32, %c0_i32_0 : i32, i32
  }
  func.func @transform_20(%arg0: i32, %arg1: i32) -> (i32, i32) {
    %c0_i32 = arith.constant 0 : i32
    %c0_i32_0 = arith.constant 0 : i32
    %c0_i32_1 = arith.constant 0 : i32
    return %c0_i32, %c0_i32_0 : i32, i32
  }
  func.func @transform_21(%arg0: i32, %arg1: i32) -> (i32, i32) {
    %c0_i32 = arith.constant 0 : i32
    %c0_i32_0 = arith.constant 0 : i32
    %c0_i32_1 = arith.constant 0 : i32
    return %c0_i32, %c0_i32_0 : i32, i32
  }
  func.func @transform_22(%arg0: i32, %arg1: i32) -> (i32, i32) {
    %c0_i32 = arith.constant 0 : i32
    %c0_i32_0 = arith.constant 0 : i32
    %c0_i32_1 = arith.constant 0 : i32
    return %c0_i32, %c0_i32_0 : i32, i32
  }
  func.func @transform_23(%arg0: i32, %arg1: i32) -> (i32, i32) {
    %c0_i32 = arith.constant 0 : i32
    %c0_i32_0 = arith.constant 0 : i32
    %c0_i32_1 = arith.constant 0 : i32
    return %c0_i32, %c0_i32_0 : i32, i32
  }
  func.func @transform_24(%arg0: i32, %arg1: i32) -> (i32, i32) {
    %c0_i32 = arith.constant 0 : i32
    %c0_i32_0 = arith.constant 0 : i32
    %c0_i32_1 = arith.constant 0 : i32
    return %c0_i32, %c0_i32_0 : i32, i32
  }
  func.func @transform_25(%arg0: i32, %arg1: i32) -> (i32, i32) {
    %c0_i32 = arith.constant 0 : i32
    %c0_i32_0 = arith.constant 0 : i32
    %c0_i32_1 = arith.constant 0 : i32
    return %c0_i32, %c0_i32_0 : i32, i32
  }
  func.func @transform_26(%arg0: i32, %arg1: i32) -> (i32, i32) {
    %c0_i32 = arith.constant 0 : i32
    %c0_i32_0 = arith.constant 0 : i32
    %c0_i32_1 = arith.constant 0 : i32
    return %c0_i32, %c0_i32_0 : i32, i32
  }
  func.func @transform_27(%arg0: i32, %arg1: i32) -> (i32, i32, i32) {
    %c0_i32 = arith.constant 0 : i32
    %c0_i32_0 = arith.constant 0 : i32
    return %arg0, %arg1, %c0_i32 : i32, i32, i32
  }
  func.func @transform_28(%arg0: i32, %arg1: i32) -> (i32, i32, i32, i32) {
    %c0_i32 = arith.constant 0 : i32
    %c0_i32_0 = arith.constant 0 : i32
    %c0_i32_1 = arith.constant 0 : i32
    return %arg0, %arg1, %c0_i32, %c0_i32_0 : i32, i32, i32, i32
  }
  func.func @transform_29(%arg0: i32, %arg1: i32) -> (i32, i32, i32, i32) {
    %c0_i32 = arith.constant 0 : i32
    %c0_i32_0 = arith.constant 0 : i32
    %c0_i32_1 = arith.constant 0 : i32
    return %arg0, %c0_i32, %arg1, %c0_i32_0 : i32, i32, i32, i32
  }
}

</mosaic_0001>

<bundles_post_ra>
// kernel: tpu_custom_call.1
= control target key start
LH: loop header
LB: loop body
LE: loop exit
PB: predicated region body
PF: predicated region fallthrough
CT: control target
= control target key end

     0   :  { %s5125_s6 = smov 1   ;;  %s5126_s10 = smov 2   ;;  %s6481_s0 = inlined_call_operand.smem [shape: u32[30], index: -1, kind: input, shape index: {}] }
   0x1   :  { %s5195_s5 = sld [smem:[%s6481_s0]]   ;;  %s5127_s14 = smov 3  }
   0x2   :  { %s5200_s9 = sld [smem:[%s6481_s0 + %s5125_s6]]   ;;  %s5128_s18 = smov 4  }
   0x3   :  { %s5205_s13 = sld [smem:[%s6481_s0 + %s5126_s10]]   ;;  %s5129_s22 = smov 5  }
   0x4   :  { %s5210_s17 = sld [smem:[%s6481_s0 + %s5127_s14]]   ;;  %s5130_s26 = smov 6  }
   0x5   :  { %s5215_s21 = sld [smem:[%s6481_s0 + %s5128_s18]]   ;;  %s5131_s30 = smov 7  }
   0x6   :  { %s5220_s25 = sld [smem:[%s6481_s0 + %s5129_s22]]   ;;  %s5132_s4 = smov 8  }
   0x7   :  { %6531 = sst [smem:[#allocation45_spill]] %s5195_s5  ;;  %s5133_s10 = smov 9  }
   0x8   :  { %6532 = sst [smem:[#allocation46_spill]] %s5200_s9  ;;  %s5134_s15 = smov 10  }
   0x9   :  { %6533 = sst [smem:[#allocation47_spill]] %s5205_s13  ;;  %s5135_s20 = smov 11  }
   0xa   :  { %6534 = sst [smem:[#allocation48_spill]] %s5210_s17  ;;  %s5137_s1 = smov 13  }
   0xb   :  { %6535 = sst [smem:[#allocation49_spill]] %s5215_s21  ;;  %s5138_s7 = smov 14  }
   0xc   :  { %6536 = sst [smem:[#allocation50_spill]] %s5220_s25  ;;  %s5140_s22 = smov 16  }
   0xd   :  { %s5225_s29 = sld [smem:[%s6481_s0 + %s5130_s26]]   ;;  %s5136_s26 = smov 12  }
   0xe   :  { %s5230_s3 = sld [smem:[%s6481_s0 + %s5131_s30]]   ;;  %s5141_s28 = smov 17  }
   0xf   :  { %s5235_s8 = sld [smem:[%s6481_s0 + %s5132_s4]]  }
  0x10   :  { %s5240_s14 = sld [smem:[%s6481_s0 + %s5133_s10]]  }
  0x11   :  { %s5245_s19 = sld [smem:[%s6481_s0 + %s5134_s15]]   ;;  %s5139_s15 = smov 15  }
  0x12   :  { %s5250_s24 = sld [smem:[%s6481_s0 + %s5135_s20]]  }
  0x13   :  { %6537 = sst [smem:[#allocation51_spill]] %s5225_s29 }
  0x14   :  { %6538 = sst [smem:[#allocation52_spill]] %s5230_s3 }
  0x15   :  { %6539 = sst [smem:[#allocation53_spill]] %s5235_s8 }
  0x16   :  { %s5255_s30 = sld [smem:[%s6481_s0 + %s5136_s26]]  }
  0x17   :  { %6540 = sst [smem:[#allocation54_spill]] %s5245_s19 }
  0x18   :  { %s5260_s6 = sld [smem:[%s6481_s0 + %s5137_s1]]  }
  0x19   :  { %s5265_s12 = sld [smem:[%s6481_s0 + %s5138_s7]]   ;;  %s5142_s7 = smov 18  }
  0x1a   :  { %s5270_s20 = sld [smem:[%s6481_s0 + %s5139_s15]]   ;;  %s5143_s15 = smov 19  }
  0x1b   :  { %s5275_s27 = sld [smem:[%s6481_s0 + %s5140_s22]]   ;;  %s5144_s22 = smov 20  }
  0x1c   :  { %6541 = sst [smem:[#allocation55_spill]] %s5255_s30 }
  0x1d   :  { %s5280_s4 = sld [smem:[%s6481_s0 + %s5141_s28]]   ;;  %s5145_s28 = smov 21  }
  0x1e   :  { %6542 = sst [smem:[#allocation56_spill]] %s5260_s6 }
  0x1f   :  { %6543 = sst [smem:[#allocation57_spill]] %s5265_s12 }
  0x20   :  { %s5285_s13 = sld [smem:[%s6481_s0 + %s5142_s7]]   ;;  %s5146_s7 = smov 22  }
  0x21   :  { %6544 = sst [smem:[#allocation58_spill]] %s5275_s27 }
  0x22   :  { %s5290_s21 = sld [smem:[%s6481_s0 + %s5143_s15]]   ;;  %s5147_s15 = smov 23  }
  0x23   :  { %6545 = sst [smem:[#allocation59_spill]] %s5280_s4 }
  0x24   :  { %s5295_s17 = sld [smem:[%s6481_s0 + %s5144_s22]]   ;;  %s5148_s22 = smov 24  }
  0x25   :  { %s5300_s5 = sld [smem:[%s6481_s0 + %s5145_s28]]   ;;  %s5149_s28 = smov 25  }
  0x26   :  { %6546 = sst [smem:[#allocation60_spill]] %s5285_s13 }
  0x27   :  { %s5305_s13 = sld [smem:[%s6481_s0 + %s5146_s7]]   ;;  %s5150_s7 = smov 26  }
  0x28   :  { %6547 = sst [smem:[#allocation61_spill]] %s5290_s21 }
  0x29   :  { %s5310_s21 = sld [smem:[%s6481_s0 + %s5147_s15]]   ;;  %s5151_s15 = smov 27  }
  0x2a   :  { %6548 = sst [smem:[#allocation62_spill]] %s5295_s17 }
  0x2b   :  { %6549 = sst [smem:[#allocation63_spill]] %s5300_s5 }
  0x2c   :  { %s5315_s17 = sld [smem:[%s6481_s0 + %s5148_s22]]   ;;  %s5152_s22 = smov 28  }
  0x2d   :  { %6550 = sst [smem:[#allocation64_spill]] %s5305_s13 }
  0x2e   :  { %s5320_s5 = sld [smem:[%s6481_s0 + %s5149_s28]]   ;;  %s5153_s28 = smov 29  }
  0x2f   :  { %6551 = sst [smem:[#allocation65_spill]] %s5310_s21 }
  0x30   :  { %s5325_s13 = sld [smem:[%s6481_s0 + %s5150_s7]]  }
  0x31   :  { %s5330_s21 = sld [smem:[%s6481_s0 + %s5151_s15]]  }
  0x32   :  { %6552 = sst [smem:[#allocation66_spill]] %s5315_s17 }
  0x33   :  { %s5335_s17 = sld [smem:[%s6481_s0 + %s5152_s22]]  }
  0x34   :  { %6553 = sst [smem:[#allocation67_spill]] %s5320_s5 }
  0x35   :  { %s5340_s5 = sld [smem:[%s6481_s0 + %s5153_s28]]  }
  0x36   :  { %6554 = sst [smem:[#allocation68_spill]] %s5325_s13 }
  0x37   :  { %6555 = sst [smem:[#allocation69_spill]] %s5330_s21 }
  0x39   :  { %6556 = sst [smem:[#allocation70_spill]] %s5335_s17 }
  0x3b   :  { %6557 = sst [smem:[#allocation71_spill]] %s5340_s5 }
  0x3c   :  { %65 = vsyncpa [#allocation3], 0 }
  0x3d   :  { %67 = vsyncpa [#allocation3 + $0x1], 0 }
  0x3e   :  { %68 = vsyncpa [#allocation6], 0 }
  0x3f   :  { %70 = vsyncpa [#allocation6 + $0x1], 0 }
  0x40   :  { %71 = vsyncpa [#allocation9], 0 }
  0x41   :  { %73 = vsyncpa [#allocation9 + $0x1], 0 }
  0x42   :  { %74 = vsyncpa [#allocation12], 0 }
  0x43   :  { %75 = vsyncpa [#allocation15], 0 }
  0x44   :  { %76 = vsyncpa [#allocation18], 0 }
  0x45   :  { %77 = vsyncpa [#allocation21], 0 }
  0x46   :  { %78 = vsyncpa [#allocation24], 0 }
  0x47   :  { %79 = vsyncpa [#allocation27], 0 }
  0x48   :  { %80 = vsyncpa [#allocation4], 0 }
  0x49   :  { %82 = vsyncpa [#allocation4 + $0x1], 0 }
  0x4a   :  { %83 = vsyncpa [#allocation31], 0 }
  0x4b   :  { %85 = vsyncpa [#allocation31 + $0x1], 0  ;;  %s5342_s7 = smov 0   ;;  %s5344_s0 = smov 0  }
  0x4c   :  { %s5346_s10 = smov 0   ;;  %s5348_s11 = smov 0  }
  0x4d   :  { %s5350_s15 = smov 0   ;;  %s5352_s16 = smov 0  }
  0x4e LB: > { %s6558_s6 = sld [smem:[#allocation56_spill]]  ;;  %s6559_s4 = sld [smem:[#allocation59_spill]]  ;;  %s5119_s15 = sphi %s5350_s15, %s6643_s15   ;;  %s5115_s11 = sphi %s5348_s11, %s6642_s11   ;;  %s5111_s10 = sphi %s5346_s10, %s6638_s10   ;;  %s5107_s0 = sphi %s5344_s0, %s6641_s0   ;;  %s5103_s7 = sphi %s5342_s7, %s6640_s7   ;;  %s5123_s16 = sphi %s5352_s16, %s91_s16  }
  0x4f   : > { %s6560_s3 = sld [smem:[#allocation52_spill]]  ;;  %s6561_s9 = sld [smem:[#allocation46_spill]] }
  0x50   : > { %s6562_s30 = sld [smem:[#allocation55_spill]]  ;;  %s6563_s29 = sld [smem:[#allocation51_spill]] }
  0x51   : > { %s6564_s27 = sld [smem:[#allocation58_spill]]  ;;  %s6566_s19 = sld [smem:[#allocation54_spill]] }
  0x52   : > { %s6565_s25 = sld [smem:[#allocation50_spill]]  ;;  %s6567_s12 = sld [smem:[#allocation57_spill]] }
  0x53   : > { %s6568_s8 = sld [smem:[#allocation53_spill]]  ;;  %6569 = sst [smem:[#allocation72_spill]] %s5103_s7 }
  0x54   : > { %6570 = sst [smem:[#allocation73_spill]] %s5111_s10  ;;  %s5373_s18 = sadd.s32 4294967295, %s5123_s16  }
  0x55   : > { %6571 = sst [smem:[#allocation74_spill]] %s5115_s11  ;;  %p3792_p0 = scmp.ge.s32.totalorder %s5123_s16, 1 }
  0x56   : > { %p6492_p1 = scmp.eq.s32.totalorder %s5373_s18, 0  ;;  %p790_p2 = scmp.lt.s32.totalorder %s5123_s16, 3 }
  0x57   : > { %s5154_s23 = smov [#allocation10]   ;;  %s5155_s1 = smov [#allocation11]  }
  0x58   : > { %p5378_p3 = pnand %p3792_p0, %p790_p2  ;;  %s802_s26 = sshll.u32 %s5154_s23, 4  ;;  %s5382_s26 = int_to_ptr.vmem [resolvable:$true] %s802_s26 }
  0x59   : > { %s816_s2 = sshll.u32 %s5155_s1, 4  ;;  %s5156_s5 = smov [#allocation14]   ;;  %s5393_s2 = int_to_ptr.vmem [resolvable:$true] %s816_s2 }
  0x5a   : > { %s6572_s22 = scalar_select %p5378_p3, 1, 0 }
  0x5b   : > { %p4205_p4 = pneg %p5378_p3  ;;  %s5395_s21 = sshll.u32 %s5156_s5, 4  ;;  %s841_s21 = int_to_ptr.vmem [resolvable:$true] %s5395_s21 }
  0x5c   : > { %s4461_s17 = scalar_lea.hbm %s6565_s25, 512 }
  0x5d   : > { %p5389_p6 = pnand %p4205_p4, %p6492_p1  ;;  %p4462_p7 = scmp.ne.s32.totalorder %s6565_s25, %s4461_s17 }
  0x5e   : > { %p4468_p11 = scmp.lt.u32.totalorder %s4461_s17, %s6565_s25 }
  0x5f   : > { %s6573_s28 = scalar_select %p5389_p6, 1, 0 }
  0x60   : > { %p5401_p8 = pneg %p5389_p6 }
  0x62   : > { %s6574_s23 = scalar_select %p5401_p8, 1, 0 }
  0x63   : > { %p4464_p9 = pnand %p5401_p8, %p4462_p7 }
  0x65   : > { %p4465_p10 = pneg %p4464_p9 }
  0x67   : > { %p4470_p12 = pnand %p4468_p11, %p4465_p10 }
  0x69   : > { %4473 = shalt.err (!%p4470_p12)
}
  0x6a   : > { %s4474_s5 = scalar_lea.vmem %s5382_s26, 512  ;;  %p4482_p4 = scmp.lt.s32.totalorder %s5382_s26, %s5382_s26 }
  0x6b   : > { %p4475_p13 = scmp.ne.s32.totalorder %s5382_s26, %s4474_s5  ;;  %p4483_p5 = scmp.lt.s32.totalorder %s4474_s5, %s4474_s5 }
  0x6d   : > { %p4477_p0 = pnand %p4475_p13, %p5401_p8  ;;  %p4484_p1 = por %p4483_p5, %p4482_p4 }
  0x6f   : > { %p4478_p2 = pneg %p4477_p0 }
  0x71   : > { %p4485_p3 = pnand %p4484_p1, %p4478_p2 }
  0x73   : > { %4488 = shalt.err (!%p4485_p3)
}
  0x74   : > { %s6495_s1 = smov 128   ;;  %s6497_s17 = smov 8  }
  0x75   : > { %4208 = dma.hbm_to_vmem [thread:$0]  (!%p5389_p6), %s6565_s25, 512, %s5382_s26, [#allocation9], %s6495_s1, %s6495_s1, %s6497_s17  }
  0x76   : > { %s4489_s13 = scalar_lea.hbm %s6563_s29, 16 }
  0x77   : > { %p4490_p7 = scmp.ne.s32.totalorder %s6563_s29, %s4489_s13  ;;  %p4496_p3 = scmp.lt.u32.totalorder %s4489_s13, %s6563_s29 }
  0x79   : > { %p4492_p5 = pnand %p4490_p7, %p5401_p8 }
  0x7b   : > { %p4493_p1 = pneg %p4492_p5 }
  0x7d   : > { %p4498_p9 = pnand %p4496_p3, %p4493_p1 }
  0x7f   : > { %4501 = shalt.err (!%p4498_p9)
}
  0x80   : > { %s4502_s5 = scalar_lea.vmem %s5393_s2, 16  ;;  %s4509_s11 = scalar_lea.vmem %s5393_s2, 32 }
  0x81   : > { %p4503_p10 = scmp.ne.s32.totalorder %s5393_s2, %s4502_s5  ;;  %p4510_p13 = scmp.lt.s32.totalorder %s5393_s2, %s5393_s2 }
  0x82   : > { %p4511_p0 = scmp.lt.s32.totalorder %s4509_s11, %s4502_s5 }
  0x83   : > { %p4505_p11 = pnand %p4503_p10, %p5401_p8 }
  0x84   : > { %p4512_p2 = por %p4511_p0, %p4510_p13 }
  0x85   : > { %p4506_p12 = pneg %p4505_p11 }
  0x87   : > { %p4513_p4 = pnand %p4512_p2, %p4506_p12 }
  0x89   : > { %4516 = shalt.err (!%p4513_p4)
}
  0x8a   : > { %4211 = dma.hbm_to_vmem [thread:$0]  (!%p5389_p6), %s6563_s29, 16, %s5393_s2, [#allocation12]  }
  0x8b   : > { %s4517_s13 = scalar_lea.hbm %s6568_s8, 16 }
  0x8c   : > { %p4518_p7 = scmp.ne.s32.totalorder %s6568_s8, %s4517_s13  ;;  %p4524_p3 = scmp.lt.u32.totalorder %s4517_s13, %s6568_s8 }
  0x8e   : > { %p4520_p5 = pnand %p4518_p7, %p5401_p8 }
  0x90   : > { %p4521_p1 = pneg %p4520_p5 }
  0x92   : > { %p4526_p9 = pnand %p4524_p3, %p4521_p1 }
  0x94   : > { %4529 = shalt.err (!%p4526_p9)
}
  0x95   : > { %s4530_s11 = scalar_lea.vmem %s841_s21, 16  ;;  %s4537_s26 = scalar_lea.vmem %s841_s21, 32 }
  0x96   : > { %p4531_p10 = scmp.ne.s32.totalorder %s841_s21, %s4530_s11  ;;  %p4538_p13 = scmp.lt.s32.totalorder %s841_s21, %s841_s21 }
  0x97   : > { %p4539_p0 = scmp.lt.s32.totalorder %s4537_s26, %s4530_s11 }
  0x98   : > { %p4533_p11 = pnand %p4531_p10, %p5401_p8 }
  0x99   : > { %p4540_p2 = por %p4539_p0, %p4538_p13 }
  0x9a   : > { %p4534_p12 = pneg %p4533_p11 }
  0x9c   : > { %p4541_p4 = pnand %p4540_p2, %p4534_p12 }
  0x9e   : > { %4544 = shalt.err (!%p4541_p4)
}
  0x9f   : > { %4217 = dma.hbm_to_vmem [thread:$0]  (!%p5389_p6), %s6568_s8, 16, %s841_s21, [#allocation15]  }
  0xa0   : > { %s5159_s2 = smov [#allocation17]   ;;  %s5160_s13 = smov [#allocation20]  }
  0xa1   : > { %s864_s5 = sshll.u32 %s5159_s2, 4  ;;  %s888_s1 = sshll.u32 %s5160_s13, 4  ;;  %s865_s5 = int_to_ptr.vmem [resolvable:$true] %s864_s5  ;;  %s889_s1 = int_to_ptr.vmem [resolvable:$true] %s888_s1 }
  0xa2   : > { %s4545_s17 = scalar_lea.hbm %s6566_s19, 16 }
  0xa3   : > { %p4546_p7 = scmp.ne.s32.totalorder %s6566_s19, %s4545_s17  ;;  %p4552_p3 = scmp.lt.u32.totalorder %s4545_s17, %s6566_s19 }
  0xa5   : > { %p4548_p5 = pnand %p4546_p7, %p5401_p8 }
  0xa7   : > { %p4549_p1 = pneg %p4548_p5 }
  0xa9   : > { %p4554_p9 = pnand %p4552_p3, %p4549_p1 }
  0xab   : > { %4557 = shalt.err (!%p4554_p9)
}
  0xac   : > { %s4558_s11 = scalar_lea.vmem %s865_s5, 16  ;;  %s4565_s21 = scalar_lea.vmem %s865_s5, 32 }
  0xad   : > { %p4559_p10 = scmp.ne.s32.totalorder %s865_s5, %s4558_s11  ;;  %p4566_p13 = scmp.lt.s32.totalorder %s865_s5, %s865_s5 }
  0xae   : > { %p4567_p0 = scmp.lt.s32.totalorder %s4565_s21, %s4558_s11 }
  0xaf   : > { %p4561_p11 = pnand %p4559_p10, %p5401_p8 }
  0xb0   : > { %p4568_p2 = por %p4567_p0, %p4566_p13 }
  0xb1   : > { %p4562_p12 = pneg %p4561_p11 }
  0xb3   : > { %p4569_p4 = pnand %p4568_p2, %p4562_p12 }
  0xb5   : > { %4572 = shalt.err (!%p4569_p4)
}
  0xb6   : > { %4223 = dma.hbm_to_vmem [thread:$0]  (!%p5389_p6), %s6566_s19, 16, %s865_s5, [#allocation18]  }
  0xb7   : > { %s4573_s17 = scalar_lea.hbm %s6562_s30, 16 }
  0xb8   : > { %p4574_p7 = scmp.ne.s32.totalorder %s6562_s30, %s4573_s17  ;;  %p4580_p3 = scmp.lt.u32.totalorder %s4573_s17, %s6562_s30 }
  0xba   : > { %p4576_p5 = pnand %p4574_p7, %p5401_p8 }
  0xbc   : > { %p4577_p1 = pneg %p4576_p5 }
  0xbe   : > { %p4582_p9 = pnand %p4580_p3, %p4577_p1 }
  0xc0   : > { %4585 = shalt.err (!%p4582_p9)
}
  0xc1   : > { %s4586_s26 = scalar_lea.vmem %s889_s1, 16  ;;  %s4593_s2 = scalar_lea.vmem %s889_s1, 32 }
  0xc2   : > { %p4587_p10 = scmp.ne.s32.totalorder %s889_s1, %s4586_s26  ;;  %p4594_p13 = scmp.lt.s32.totalorder %s889_s1, %s889_s1 }
  0xc3   : > { %p4595_p0 = scmp.lt.s32.totalorder %s4593_s2, %s4586_s26 }
  0xc4   : > { %p4589_p11 = pnand %p4587_p10, %p5401_p8 }
  0xc5   : > { %p4596_p2 = por %p4595_p0, %p4594_p13 }
  0xc6   : > { %p4590_p12 = pneg %p4589_p11 }
  0xc8   : > { %p4597_p4 = pnand %p4596_p2, %p4590_p12 }
  0xca   : > { %4600 = shalt.err (!%p4597_p4)
}
  0xcb   : > { %4229 = dma.hbm_to_vmem [thread:$0]  (!%p5389_p6), %s6562_s30, 16, %s889_s1, [#allocation21]  }
  0xcc   : > { %s5161_s5 = smov [#allocation23]   ;;  %s5162_s11 = smov [#allocation26]  }
  0xcd   : > { %s912_s13 = sshll.u32 %s5161_s5, 4  ;;  %s934_s21 = sshll.u32 %s5162_s11, 4  ;;  %s913_s13 = int_to_ptr.vmem [resolvable:$true] %s912_s13  ;;  %s935_s21 = int_to_ptr.vmem [resolvable:$true] %s934_s21 }
  0xce   : > { %s4601_s17 = scalar_lea.hbm %s6567_s12, 16 }
  0xcf   : > { %p4602_p7 = scmp.ne.s32.totalorder %s6567_s12, %s4601_s17  ;;  %p4608_p3 = scmp.lt.u32.totalorder %s4601_s17, %s6567_s12 }
  0xd1   : > { %p4604_p5 = pnand %p4602_p7, %p5401_p8 }
  0xd3   : > { %p4605_p1 = pneg %p4604_p5 }
  0xd5   : > { %p4610_p9 = pnand %p4608_p3, %p4605_p1 }
  0xd7   : > { %4613 = shalt.err (!%p4610_p9)
}
  0xd8   : > { %s4614_s26 = scalar_lea.vmem %s913_s13, 16  ;;  %s4621_s1 = scalar_lea.vmem %s913_s13, 32 }
  0xd9   : > { %p4615_p10 = scmp.ne.s32.totalorder %s913_s13, %s4614_s26  ;;  %p4622_p13 = scmp.lt.s32.totalorder %s913_s13, %s913_s13 }
  0xda   : > { %p4623_p0 = scmp.lt.s32.totalorder %s4621_s1, %s4614_s26 }
  0xdb   : > { %p4617_p11 = pnand %p4615_p10, %p5401_p8 }
  0xdc   : > { %p4624_p2 = por %p4623_p0, %p4622_p13 }
  0xdd   : > { %p4618_p12 = pneg %p4617_p11 }
  0xdf   : > { %p4625_p4 = pnand %p4624_p2, %p4618_p12 }
  0xe1   : > { %4628 = shalt.err (!%p4625_p4)
}
  0xe2   : > { %4235 = dma.hbm_to_vmem [thread:$0]  (!%p5389_p6), %s6567_s12, 16, %s913_s13, [#allocation24]  }
  0xe3   : > { %s4629_s2 = scalar_lea.hbm %s6564_s27, 16 }
  0xe4   : > { %p4630_p7 = scmp.ne.s32.totalorder %s6564_s27, %s4629_s2  ;;  %p4636_p3 = scmp.lt.u32.totalorder %s4629_s2, %s6564_s27 }
  0xe6   : > { %p4632_p5 = pnand %p4630_p7, %p5401_p8 }
  0xe8   : > { %p4633_p1 = pneg %p4632_p5 }
  0xea   : > { %p4638_p9 = pnand %p4636_p3, %p4633_p1 }
  0xec   : > { %4641 = shalt.err (!%p4638_p9)
}
  0xed   : > { %s4642_s5 = scalar_lea.vmem %s935_s21, 16  ;;  %s4649_s11 = scalar_lea.vmem %s935_s21, 32 }
  0xee   : > { %p4643_p10 = scmp.ne.s32.totalorder %s935_s21, %s4642_s5  ;;  %p4650_p13 = scmp.lt.s32.totalorder %s935_s21, %s935_s21 }
  0xef   : > { %p4651_p0 = scmp.lt.s32.totalorder %s4649_s11, %s4642_s5 }
  0xf0   : > { %p4645_p11 = pnand %p4643_p10, %p5401_p8 }
  0xf1   : > { %p4652_p2 = por %p4651_p0, %p4650_p13 }
  0xf2   : > { %p4646_p12 = pneg %p4645_p11 }
  0xf4   : > { %p4653_p4 = pnand %p4652_p2, %p4646_p12 }
  0xf6   : > { %4656 = shalt.err (!%p4653_p4)
}
  0xf7   : > { %4241 = dma.hbm_to_vmem [thread:$0]  (!%p5389_p6), %s6564_s27, 16, %s935_s21, [#allocation27]  }
  0xf8   : > { %s6502_s13 = sadd.s32 4294967294, %s5123_s16   ;;  %s103_s17 = sadd.s32 1, %s5119_s15 }
  0xf9   : > { %s110_s26 = sadd.s32 1, %s5111_s10  ;;  %p105_p7 = scmp.ge.s32.totalorder %s103_s17, 2 }
  0xfa   : > { %p117_p5 = scmp.ne.s32.totalorder %s5111_s10, %s5107_s0  ;;  %p118_p1 = scmp.eq.s32.totalorder %s5123_s16, 0 }
  0xfb   : > { %p123_p3 = scmp.ne.s32.totalorder %s5107_s0, %s5103_s7  ;;  %s6645_s17 = smov (%p105_p7, %s103_s17), 0 }
  0xfc   : > { %6575 = sst [smem:[#allocation75_spill]] %s6645_s17  ;;  %p5498_p9 = por %p118_p1, %p117_p5 }
  0xfd   : > { %p6577_p10 = scmp.eq.s32.totalorder %s5373_s18, 0  ;;  %s107_s2 = ssub.s32 %s5119_s15, %s6645_s17 }
  0xfe   : > { %p721_p12 = scmp.eq.s32.totalorder %s5373_s18, 1  ;;  %p108_p13 = scmp.eq.s32.totalorder %s107_s2, 0 }
  0xff   : > { %p5504_p11 = por %p6577_p10, %p123_p3  ;;  %p727_p0 = scmp.eq.s32.totalorder %s6502_s13, 1 }
 0x100   : > { %p5513_p2 = por %p721_p12, %p117_p5  ;;  %p4281_p4 = scmp.lt.s32.totalorder %s5123_s16, 2 }
 0x101   : > { %s6578_s21 = scalar_select %p5504_p11, 1, 0 }
 0x102   : > { %s6579_s5 = scalar_select %p5513_p2, 1, 0 }
 0x103   : > { %s5519_s11 = scalar_select %p108_p13, %s5111_s10, %s110_s26  }
 0x104   : > { %p5521_p7 = por %p727_p0, %p123_p3  ;;  %s5526_s12 = sand.u32 1, %s5111_s10  }
 0x105   : > { %6580 = sst [smem:[#allocation76_spill]] %s5519_s11  ;;  %s5529_s19 = sshll.u32 %s5526_s12, 3 }
 0x106   : > { %s6581_s8 = scalar_select %p5521_p7, 1, 0 }
 0x107   : > { %s5532_s2 = sshll.u32 %s5119_s15, 7  ;;  %p5536_p5 = pnand %p4281_p4, %p5498_p9 }
 0x108   : > { %6582 = sst [smem:[#allocation77_spill]] %s6581_s8  ;;  %s6514_s26 = sand.u32 1, %s5123_s16  }
 0x109   : > { %s6583_s13 = scalar_select %p5536_p5, 1, 0 }
 0x10a   : > { %s5543_s25 = scalar_lea.hbm %s6561_s9, %s5532_s2  ;;  %s1005_s27 = scalar_lea.vmem [#allocation5], %s5529_s19 }
 0x10b   : > { %s1013_s29 = sshll.u32 %s1005_s27, 4  ;;  %s5550_s30 = scalar_lea.sflag [#allocation6], %s6514_s26  ;;  %s5546_s29 = int_to_ptr.vmem [resolvable:$true] %s1013_s29 }
 0x10c   : > { %s4657_s1 = scalar_lea.hbm %s5543_s25, 128  ;;  %p5556_p3 = pneg %p5536_p5 }
 0x10d   : > { %p4658_p1 = scmp.ne.s32.totalorder %s5543_s25, %s4657_s1  ;;  %s4662_s11 = scalar_lea.hbm %s6561_s9, 256 }
 0x10e   : > { %s6584_s17 = scalar_select %p5556_p3, 1, 0 }
 0x10f   : > { %p4660_p9 = pnand %p5556_p3, %p4658_p1  ;;  %p4663_p12 = scmp.lt.u32.totalorder %s5543_s25, %s6561_s9 }
 0x110   : > { %p4664_p13 = scmp.lt.u32.totalorder %s4662_s11, %s4657_s1  ;;  %p4666_p4 = scmp.lt.u32.totalorder %s4657_s1, %s5543_s25 }
 0x111   : > { %p4661_p10 = pneg %p4660_p9 }
 0x112   : > { %p4665_p0 = por %p4664_p13, %p4663_p12 }
 0x114   : > { %p4667_p7 = por %p4666_p4, %p4665_p0 }
 0x116   : > { %p4668_p2 = pnand %p4667_p7, %p4661_p10 }
 0x118   : > { %4671 = shalt.err (!%p4668_p2)
}
 0x119   : > { %s4672_s27 = scalar_lea.vmem %s5546_s29, 128  ;;  %s5163_s26 = smov [#allocation5]  }
 0x11a   : > { %p4673_p11 = scmp.ne.s32.totalorder %s5546_s29, %s4672_s27  ;;  %s4677_s10 = sshll.u32 %s5163_s26, 4  ;;  %s4678_s10 = int_to_ptr.vmem [resolvable:$false] %s4677_s10 }
 0x11b   : > { %s4679_s8 = scalar_lea.vmem %s4678_s10, 256  ;;  %p4680_p1 = scmp.lt.s32.totalorder %s5546_s29, %s4678_s10 }
 0x11c   : > { %p4675_p6 = pnand %p4673_p11, %p5556_p3  ;;  %p4681_p9 = scmp.lt.s32.totalorder %s4679_s8, %s4672_s27 }
 0x11e   : > { %p4676_p8 = pneg %p4675_p6  ;;  %p4682_p12 = por %p4681_p9, %p4680_p1 }
 0x120   : > { %p4683_p13 = pnand %p4682_p12, %p4676_p8 }
 0x122   : > { %4686 = shalt.err (!%p4683_p13)
}
 0x123   : > { %4251 = dma.hbm_to_vmem [thread:$0]  (!%p5536_p5), %s5543_s25, 128, %s5546_s29, %s5550_s30  }
 0x124   : > { %s5164_s11 = smov [#allocation13]   ;;  %s5165_s26 = smov [#allocation16]  }
 0x125   : > { %s826_s1 = sshll.u32 %s5164_s11, 4  ;;  %s850_s9 = sshll.u32 %s5165_s26, 4  ;;  %s827_s1 = int_to_ptr.vmem [resolvable:$true] %s826_s1  ;;  %s851_s9 = int_to_ptr.vmem [resolvable:$true] %s850_s9 }
 0x126   : > { %s4687_s10 = scalar_lea.hbm %s6560_s3, 512  ;;  %p6585_p11 = scmp.ne.s32.totalorder %s6574_s23, 0 }
 0x127   : > { %p4688_p6 = scmp.ne.s32.totalorder %s6560_s3, %s4687_s10  ;;  %p4694_p7 = scmp.lt.u32.totalorder %s4687_s10, %s6560_s3 }
 0x129   : > { %p4690_p8 = pnand %p4688_p6, %p6585_p11 }
 0x12b   : > { %p4691_p2 = pneg %p4690_p8 }
 0x12d   : > { %p4696_p10 = pnand %p4694_p7, %p4691_p2 }
 0x12f   : > { %4699 = shalt.err (!%p4696_p10)
}
 0x130   : > { %s4700_s8 = scalar_lea.vmem %s827_s1, 512  ;;  %p4708_p9 = scmp.lt.s32.totalorder %s827_s1, %s827_s1 }
 0x131   : > { %p4701_p0 = scmp.ne.s32.totalorder %s827_s1, %s4700_s8  ;;  %p4709_p12 = scmp.lt.s32.totalorder %s4700_s8, %s4700_s8 }
 0x133   : > { %p4703_p4 = pnand %p4701_p0, %p6585_p11  ;;  %p4710_p13 = por %p4709_p12, %p4708_p9 }
 0x135   : > { %p4704_p1 = pneg %p4703_p4 }
 0x137   : > { %p4711_p5 = pnand %p4710_p13, %p4704_p1 }
 0x139   : > { %4714 = shalt.err (!%p4711_p5)
}
 0x13a   : > { %p6586_p3 = scmp.ne.s32.totalorder %s6573_s28, 0  ;;  %s6587_s25 = smov 8  }
 0x13b   : > { %s6588_s29 = smov 128   ;;  %s4715_s27 = scalar_lea.hbm %s5240_s14, 256 }
 0x13c   : > { %4214 = dma.hbm_to_vmem [thread:$0]  (!%p6586_p3), %s6560_s3, 512, %s827_s1, [#allocation12], %s6588_s29, %s6588_s29, %s6587_s25  }
 0x13d   : > { %p4716_p6 = scmp.ne.s32.totalorder %s5240_s14, %s4715_s27  ;;  %p4722_p7 = scmp.lt.u32.totalorder %s4715_s27, %s5240_s14 }
 0x13f   : > { %p4718_p8 = pnand %p4716_p6, %p6585_p11 }
 0x141   : > { %p4719_p2 = pneg %p4718_p8 }
 0x143   : > { %p4724_p10 = pnand %p4722_p7, %p4719_p2 }
 0x145   : > { %4727 = shalt.err (!%p4724_p10)
}
 0x146   : > { %s4728_s11 = scalar_lea.vmem %s851_s9, 256  ;;  %p4736_p1 = scmp.lt.s32.totalorder %s851_s9, %s851_s9 }
 0x147   : > { %p4729_p5 = scmp.ne.s32.totalorder %s851_s9, %s4728_s11  ;;  %p4737_p9 = scmp.lt.s32.totalorder %s4728_s11, %s4728_s11 }
 0x149   : > { %p4731_p0 = pnand %p4729_p5, %p6585_p11  ;;  %p4738_p12 = por %p4737_p9, %p4736_p1 }
 0x14b   : > { %p4732_p4 = pneg %p4731_p0 }
 0x14d   : > { %p4739_p13 = pnand %p4738_p12, %p4732_p4 }
 0x14f   : > { %4742 = shalt.err (!%p4739_p13)
}
 0x150   : > { %s5166_s1 = smov 64   ;;  %s5167_s26 = smov 4  }
 0x151   : > { %4220 = dma.hbm_to_vmem [thread:$0]  (!%p6586_p3), %s5240_s14, 256, %s851_s9, [#allocation15], %s5166_s1, %s5166_s1, %s5167_s26  }
 0x152   : > { %s5168_s10 = smov [#allocation19]   ;;  %s5169_s27 = smov [#allocation22]  }
 0x153   : > { %s874_s8 = sshll.u32 %s5168_s10, 4  ;;  %s898_s11 = sshll.u32 %s5169_s27, 4  ;;  %s875_s8 = int_to_ptr.vmem [resolvable:$true] %s874_s8  ;;  %s899_s11 = int_to_ptr.vmem [resolvable:$true] %s898_s11 }
 0x154   : > { %s4743_s3 = scalar_lea.hbm %s5250_s24, 512 }
 0x155   : > { %p4744_p6 = scmp.ne.s32.totalorder %s5250_s24, %s4743_s3  ;;  %p4750_p7 = scmp.lt.u32.totalorder %s4743_s3, %s5250_s24 }
 0x157   : > { %p4746_p8 = pnand %p4744_p6, %p6585_p11 }
 0x159   : > { %p4747_p2 = pneg %p4746_p8 }
 0x15b   : > { %p4752_p10 = pnand %p4750_p7, %p4747_p2 }
 0x15d   : > { %4755 = shalt.err (!%p4752_p10)
}
 0x15e   : > { %s4756_s7 = scalar_lea.vmem %s875_s8, 512  ;;  %p4764_p1 = scmp.lt.s32.totalorder %s875_s8, %s875_s8 }
 0x15f   : > { %p4757_p5 = scmp.ne.s32.totalorder %s875_s8, %s4756_s7  ;;  %p4765_p9 = scmp.lt.s32.totalorder %s4756_s7, %s4756_s7 }
 0x161   : > { %p4759_p0 = pnand %p4757_p5, %p6585_p11  ;;  %p4766_p12 = por %p4765_p9, %p4764_p1 }
 0x163   : > { %p4760_p4 = pneg %p4759_p0 }
 0x165   : > { %p4767_p13 = pnand %p4766_p12, %p4760_p4 }
 0x167   : > { %4770 = shalt.err (!%p4767_p13)
}
 0x168   : > { %4226 = dma.hbm_to_vmem [thread:$0]  (!%p6586_p3), %s5250_s24, 512, %s875_s8, [#allocation18], %s6588_s29, %s6588_s29, %s6587_s25  }
 0x169   : > { %s4771_s9 = scalar_lea.hbm %s6558_s6, 256 }
 0x16a   : > { %p4772_p6 = scmp.ne.s32.totalorder %s6558_s6, %s4771_s9  ;;  %p4778_p7 = scmp.lt.u32.totalorder %s4771_s9, %s6558_s6 }
 0x16c   : > { %p4774_p8 = pnand %p4772_p6, %p6585_p11 }
 0x16e   : > { %p4775_p2 = pneg %p4774_p8 }
 0x170   : > { %p4780_p10 = pnand %p4778_p7, %p4775_p2 }
 0x172   : > { %4783 = shalt.err (!%p4780_p10)
}
 0x173   : > { %s4784_s3 = scalar_lea.vmem %s899_s11, 256  ;;  %p4792_p1 = scmp.lt.s32.totalorder %s899_s11, %s899_s11 }
 0x174   : > { %p4785_p5 = scmp.ne.s32.totalorder %s899_s11, %s4784_s3  ;;  %p4793_p9 = scmp.lt.s32.totalorder %s4784_s3, %s4784_s3 }
 0x176   : > { %p4787_p0 = pnand %p4785_p5, %p6585_p11  ;;  %p4794_p12 = por %p4793_p9, %p4792_p1 }
 0x178   : > { %p4788_p4 = pneg %p4787_p0 }
 0x17a   : > { %p4795_p13 = pnand %p4794_p12, %p4788_p4 }
 0x17c   : > { %4798 = shalt.err (!%p4795_p13)
}
 0x17d   : > { %4232 = dma.hbm_to_vmem [thread:$0]  (!%p6586_p3), %s6558_s6, 256, %s899_s11, [#allocation21], %s5166_s1, %s5166_s1, %s5167_s26  }
 0x17e   : > { %s5170_s7 = smov [#allocation25]   ;;  %s5171_s29 = smov [#allocation28]  }
 0x17f   : > { %s923_s25 = sshll.u32 %s5170_s7, 4  ;;  %s945_s10 = sshll.u32 %s5171_s29, 4  ;;  %s924_s25 = int_to_ptr.vmem [resolvable:$true] %s923_s25  ;;  %s946_s10 = int_to_ptr.vmem [resolvable:$true] %s945_s10 }
 0x180   : > { %s4799_s8 = scalar_lea.hbm %s5270_s20, 16 }
 0x181   : > { %p4800_p6 = scmp.ne.s32.totalorder %s5270_s20, %s4799_s8  ;;  %p4806_p7 = scmp.lt.u32.totalorder %s4799_s8, %s5270_s20 }
 0x183   : > { %p4802_p8 = pnand %p4800_p6, %p6585_p11 }
 0x185   : > { %p4803_p2 = pneg %p4802_p8 }
 0x187   : > { %p4808_p10 = pnand %p4806_p7, %p4803_p2 }
 0x189   : > { %4811 = shalt.err (!%p4808_p10)
}
 0x18a   : > { %s4812_s27 = scalar_lea.vmem %s924_s25, 16  ;;  %s4819_s1 = scalar_lea.vmem %s924_s25, 32 }
 0x18b   : > { %p4813_p5 = scmp.ne.s32.totalorder %s924_s25, %s4812_s27  ;;  %p4820_p1 = scmp.lt.s32.totalorder %s924_s25, %s924_s25 }
 0x18c   : > { %p4821_p9 = scmp.lt.s32.totalorder %s4819_s1, %s4812_s27 }
 0x18d   : > { %p4815_p0 = pnand %p4813_p5, %p6585_p11 }
 0x18e   : > { %p4822_p12 = por %p4821_p9, %p4820_p1 }
 0x18f   : > { %p4816_p4 = pneg %p4815_p0 }
 0x191   : > { %p4823_p13 = pnand %p4822_p12, %p4816_p4 }
 0x193   : > { %4826 = shalt.err (!%p4823_p13)
}
 0x194   : > { %4238 = dma.hbm_to_vmem [thread:$0]  (!%p6586_p3), %s5270_s20, 16, %s924_s25, [#allocation24]  }
 0x195   : > { %s4827_s26 = scalar_lea.hbm %s6559_s4, 16 }
 0x196   : > { %p4828_p6 = scmp.ne.s32.totalorder %s6559_s4, %s4827_s26  ;;  %p4834_p7 = scmp.lt.u32.totalorder %s4827_s26, %s6559_s4 }
 0x198   : > { %p4830_p8 = pnand %p4828_p6, %p6585_p11 }
 0x19a   : > { %p4831_p2 = pneg %p4830_p8 }
 0x19c   : > { %p4836_p10 = pnand %p4834_p7, %p4831_p2 }
 0x19e   : > { %4839 = shalt.err (!%p4836_p10)
}
 0x19f   : > { %s4840_s11 = scalar_lea.vmem %s946_s10, 16  ;;  %s4847_s9 = scalar_lea.vmem %s946_s10, 32 }
 0x1a0   : > { %p4841_p5 = scmp.ne.s32.totalorder %s946_s10, %s4840_s11  ;;  %p4848_p1 = scmp.lt.s32.totalorder %s946_s10, %s946_s10 }
 0x1a1   : > { %p4849_p9 = scmp.lt.s32.totalorder %s4847_s9, %s4840_s11 }
 0x1a2   : > { %p4843_p0 = pnand %p4841_p5, %p6585_p11 }
 0x1a3   : > { %p4850_p12 = por %p4849_p9, %p4848_p1 }
 0x1a4   : > { %p4844_p4 = pneg %p4843_p0 }
 0x1a6   : > { %p4851_p13 = pnand %p4850_p12, %p4844_p4 }
 0x1a8   : > { %4854 = shalt.err (!%p4851_p13)
}
 0x1a9   : > { %s6589_s3 = sld [smem:[#allocation45_spill]]  ;;  %s6590_s7 = sld [smem:[#allocation48_spill]] }
 0x1aa   : > { %4244 = dma.hbm_to_vmem [thread:$0]  (!%p6586_p3), %s6559_s4, 16, %s946_s10, [#allocation27]  }
 0x1ab   : > { %s987_s29 = scalar_lea.vmem [#allocation2], %s5529_s19  ;;  %s984_s27 = scalar_lea.sflag [#allocation3], %s5526_s12 }
 0x1ac   : > { %s994_s8 = sshll.u32 %s987_s29, 4  ;;  %p6592_p6 = scmp.ne.s32.totalorder %s6584_s17, 0  ;;  %s5653_s8 = int_to_ptr.vmem [resolvable:$true] %s994_s8 }
 0x1af   : > { %s6591_s25 = smov %s6590_s7  ;;  %s5650_s23 = scalar_lea.hbm %s6589_s3, %s5532_s2 }
 0x1b0   : > { %s5657_s28 = scalar_lea.hbm %s6590_s7, %s5532_s2  ;;  %s4855_s1 = scalar_lea.hbm %s5650_s23, 128 }
 0x1b1   : > { %p4856_p11 = scmp.ne.s32.totalorder %s5650_s23, %s4855_s1  ;;  %s4860_s26 = scalar_lea.hbm %s6589_s3, 256 }
 0x1b2   : > { %p4861_p3 = scmp.lt.u32.totalorder %s5650_s23, %s6589_s3  ;;  %p4862_p7 = scmp.lt.u32.totalorder %s4860_s26, %s4855_s1 }
 0x1b3   : > { %p4858_p8 = pnand %p4856_p11, %p6592_p6  ;;  %p4864_p5 = scmp.lt.u32.totalorder %s4855_s1, %s5650_s23 }
 0x1b4   : > { %p4863_p10 = por %p4862_p7, %p4861_p3 }
 0x1b5   : > { %p4859_p2 = pneg %p4858_p8 }
 0x1b6   : > { %p4865_p0 = por %p4864_p5, %p4863_p10 }
 0x1b8   : > { %p4866_p4 = pnand %p4865_p0, %p4859_p2 }
 0x1ba   : > { %4869 = shalt.err (!%p4866_p4)
}
 0x1bb   : > { %s4870_s2 = scalar_lea.vmem %s5653_s8, 128  ;;  %s5172_s10 = smov [#allocation2]  }
 0x1bc   : > { %p4871_p1 = scmp.ne.s32.totalorder %s5653_s8, %s4870_s2  ;;  %s4875_s11 = sshll.u32 %s5172_s10, 4  ;;  %s4876_s11 = int_to_ptr.vmem [resolvable:$false] %s4875_s11 }
 0x1bd   : > { %s4877_s9 = scalar_lea.vmem %s4876_s11, 256  ;;  %p4878_p13 = scmp.lt.s32.totalorder %s5653_s8, %s4876_s11 }
 0x1be   : > { %p4873_p9 = pnand %p4871_p1, %p6592_p6  ;;  %p4879_p11 = scmp.lt.s32.totalorder %s4877_s9, %s4870_s2 }
 0x1c0   : > { %p4874_p12 = pneg %p4873_p9  ;;  %p4880_p8 = por %p4879_p11, %p4878_p13 }
 0x1c2   : > { %p4881_p3 = pnand %p4880_p8, %p4874_p12 }
 0x1c4   : > { %4884 = shalt.err (!%p4881_p3)
}
 0x1c5   : > { %p6593_p2 = scmp.ne.s32.totalorder %s6583_s13, 0  ;;  %s1037_s7 = scalar_lea.vmem [#allocation7], %s5529_s19 }
 0x1c6   : > { %s1045_s29 = sshll.u32 %s1037_s7, 4  ;;  %s3813_s1 = sshll.u32 %s5119_s15, 4  ;;  %s1046_s29 = int_to_ptr.vmem [resolvable:$true] %s1045_s29 }
 0x1c7   : > { %4248 = dma.hbm_to_vmem [thread:$0]  (!%p6593_p2), %s5650_s23, 128, %s5653_s8, %s984_s27  }
 0x1c8   : > { %s4885_s26 = scalar_lea.hbm %s5657_s28, 128  ;;  %s4890_s2 = scalar_lea.hbm %s6591_s25, 256 }
 0x1c9   : > { %p4886_p7 = scmp.ne.s32.totalorder %s5657_s28, %s4885_s26  ;;  %p4891_p0 = scmp.lt.u32.totalorder %s5657_s28, %s6591_s25 }
 0x1ca   : > { %p4892_p4 = scmp.lt.u32.totalorder %s4890_s2, %s4885_s26  ;;  %p4894_p9 = scmp.lt.u32.totalorder %s4885_s26, %s5657_s28 }
 0x1cb   : > { %p4888_p10 = pnand %p4886_p7, %p6592_p6 }
 0x1cc   : > { %p4893_p1 = por %p4892_p4, %p4891_p0 }
 0x1cd   : > { %p4889_p5 = pneg %p4888_p10 }
 0x1ce   : > { %p4895_p12 = por %p4894_p9, %p4893_p1 }
 0x1d0   : > { %p4896_p13 = pnand %p4895_p12, %p4889_p5 }
 0x1d2   : > { %4899 = shalt.err (!%p4896_p13)
}
 0x1d3   : > { %s4900_s10 = scalar_lea.vmem %s1046_s29, 128  ;;  %s5173_s19 = smov [#allocation7]  }
 0x1d4   : > { %p4901_p11 = scmp.ne.s32.totalorder %s1046_s29, %s4900_s10  ;;  %s4905_s23 = sshll.u32 %s5173_s19, 4  ;;  %s4906_s23 = int_to_ptr.vmem [resolvable:$false] %s4905_s23 }
 0x1d5   : > { %s4907_s8 = scalar_lea.vmem %s4906_s23, 256  ;;  %p4908_p7 = scmp.lt.s32.totalorder %s1046_s29, %s4906_s23 }
 0x1d6   : > { %p4903_p8 = pnand %p4901_p11, %p6592_p6  ;;  %p4909_p10 = scmp.lt.s32.totalorder %s4907_s8, %s4900_s10 }
 0x1d8   : > { %p4904_p3 = pneg %p4903_p8  ;;  %p4910_p2 = por %p4909_p10, %p4908_p7 }
 0x1da   : > { %p4911_p0 = pnand %p4910_p2, %p4904_p3 }
 0x1dc   : > { %4914 = shalt.err (!%p4911_p0)
}
 0x1dd   : > { %p6594_p4 = scmp.ne.s32.totalorder %s6583_s13, 0  ;;  %s6595_s27 = sld [smem:[#allocation49_spill]] }
 0x1de   : > { %s1055_s9 = scalar_lea.vmem [#allocation8], %s5526_s12  ;;  %s6596_s26 = sand.u32 1, %s5123_s16  }
 0x1df   : > { %4254 = dma.hbm_to_vmem [thread:$0]  (!%p6594_p4), %s5657_s28, 128, %s1046_s29, %s5550_s30  }
 0x1e0   : > { %s1062_s7 = sshll.u32 %s1055_s9, 4  ;;  %s1053_s2 = scalar_lea.sflag [#allocation9], %s6596_s26  ;;  %s1063_s7 = int_to_ptr.vmem [resolvable:$true] %s1062_s7 }
 0x1e3   : > { %s5694_s11 = scalar_lea.hbm %s6595_s27, %s3813_s1  ;;  %s4920_s19 = scalar_lea.hbm %s6595_s27, 32 }
 0x1e4   : > { %s4915_s10 = scalar_lea.hbm %s5694_s11, 16  ;;  %p4921_p9 = scmp.lt.u32.totalorder %s5694_s11, %s6595_s27 }
 0x1e5   : > { %p4916_p2 = scmp.ne.s32.totalorder %s5694_s11, %s4915_s10  ;;  %p4922_p12 = scmp.lt.u32.totalorder %s4920_s19, %s4915_s10 }
 0x1e6   : > { %p4924_p11 = scmp.lt.u32.totalorder %s4915_s10, %s5694_s11 }
 0x1e7   : > { %p4918_p5 = pnand %p4916_p2, %p6592_p6  ;;  %p4923_p13 = por %p4922_p12, %p4921_p9 }
 0x1e9   : > { %p4919_p1 = pneg %p4918_p5  ;;  %p4925_p8 = por %p4924_p11, %p4923_p13 }
 0x1eb   : > { %p4926_p3 = pnand %p4925_p8, %p4919_p1 }
 0x1ed   : > { %4929 = shalt.err (!%p4926_p3)
}
 0x1ee   : > { %s4930_s30 = scalar_lea.vmem %s1063_s7, 16  ;;  %s5174_s12 = smov [#allocation8]  }
 0x1ef   : > { %p4931_p7 = scmp.ne.s32.totalorder %s1063_s7, %s4930_s30  ;;  %s4935_s28 = sshll.u32 %s5174_s12, 4  ;;  %s4936_s28 = int_to_ptr.vmem [resolvable:$false] %s4935_s28 }
 0x1f0   : > { %s4937_s29 = scalar_lea.vmem %s4936_s28, 32  ;;  %p4938_p2 = scmp.lt.s32.totalorder %s1063_s7, %s4936_s28 }
 0x1f1   : > { %p4933_p10 = pnand %p4931_p7, %p6592_p6  ;;  %p4939_p5 = scmp.lt.s32.totalorder %s4937_s29, %s4930_s30 }
 0x1f3   : > { %p4934_p0 = pneg %p4933_p10  ;;  %p4940_p4 = por %p4939_p5, %p4938_p2 }
 0x1f5   : > { %p4941_p9 = pnand %p4940_p4, %p4934_p0 }
 0x1f7   : > { %4944 = shalt.err (!%p4941_p9)
}
 0x1f8   : > { %p6597_p12 = scmp.ne.s32.totalorder %s6583_s13, 0  ;;  %p6598_p1 = scmp.ne.s32.totalorder %s6572_s22, 0 }
 0x1f9   : > { %s5715_s17 = sand.u32 (!%p6598_p1), 1, %s5107_s0   ;;  %p6599_p6 = scmp.ne.s32.totalorder (!%p6598_p1), %s6578_s21, 0 }
 0x1fa   : > { %4257 = dma.hbm_to_vmem [thread:$0]  (!%p6597_p12), %s5694_s11, 16, %s1063_s7, %s1053_s2  }
 0x1fb   : > { %1071 = sbr.rel (%p6598_p1) target bundleno = 3165 (0xc5d), region = 128  ;;  %s5718_s1 = sshll.u32 (!%p6598_p1), %s5715_s17, 3 }
 0x1fc   : > { %s1074_s23 = scalar_lea.sflag (!%p6598_p1), [#allocation3], %s5715_s17  ;;  %s1077_s8 = scalar_lea.vmem (!%p6598_p1), [#allocation2], %s5718_s1 }
 0x202   : > { %5054 = dma.done.wait (%p6599_p6), %s1074_s23, 128  }
 0x203   : > { %5056 = vsyncadd (%p6599_p6), %s1074_s23, 4294967168  ;;  %s5727_s22 = sand.u32 1, %s5373_s18   ;;  %s1086_s11 = scalar_lea.vmem [#allocation5], %s5718_s1 }
 0x204   : > { %s1083_s13 = scalar_lea.sflag [#allocation6], %s5727_s22 }
 0x205   : > { %5058 = dma.done.wait (%p6599_p6), %s1083_s13, 256  }
 0x206   : > { %5060 = vsyncadd (%p6599_p6), %s1083_s13, 4294967040  ;;  %s1095_s9 = scalar_lea.vmem [#allocation7], %s5718_s1  ;;  %s1101_s7 = scalar_lea.sflag [#allocation9], %s5727_s22 }
 0x207   : > { %s1103_s26 = scalar_lea.vmem [#allocation8], %s5715_s17 }
 0x208   : > { %5062 = dma.done.wait (%p6599_p6), %s1101_s7, 16  }
 0x209   : > { %5064 = vsyncadd (%p6599_p6), %s1101_s7, 4294967280  ;;  %p6600_p4 = scmp.eq.s32.totalorder %s5373_s18, 0 }
 0x20b   : > { %5066 = dma.done.wait (%p6600_p4), [#allocation9], 512   ;;  %p6601_p13 = pmov %p6600_p4 }
 0x20c   : > { %p6602_p11 = pmov %p6600_p4 }
 0x20d   : > { %5068 = vsyncadd (%p6601_p13), [#allocation9], 4294966784 }
 0x20e   : > { %5070 = dma.done.wait (%p6602_p11), [#allocation12], 528   ;;  %p6603_p8 = pmov %p6600_p4 }
 0x20f   : > { %p6604_p3 = pmov %p6600_p4 }
 0x210   : > { %5072 = vsyncadd (%p6603_p8), [#allocation12], 4294966768 }
 0x211   : > { %5074 = dma.done.wait (%p6604_p3), [#allocation15], 272   ;;  %p6605_p7 = pmov %p6604_p3 }
 0x212   : > { %p6606_p10 = pmov %p6604_p3 }
 0x213   : > { %5076 = vsyncadd (%p6605_p7), [#allocation15], 4294967024 }
 0x214   : > { %5078 = dma.done.wait (%p6606_p10), [#allocation18], 528   ;;  %p6607_p0 = pmov %p6604_p3 }
 0x216   : > { %5080 = vsyncadd (%p6607_p0), [#allocation18], 4294966768  ;;  %p6608_p2 = pmov %p6607_p0 }
 0x217   : > { %p6609_p5 = pmov %p6607_p0 }
 0x218   : > { %5082 = dma.done.wait (%p6608_p2), [#allocation21], 272  }
 0x219   : > { %5084 = vsyncadd (%p6609_p5), [#allocation21], 4294967024  ;;  %p6610_p9 = pmov %p6607_p0 }
 0x21a   : > { %p6611_p12 = pmov %p6607_p0 }
 0x21b   : > { %5086 = dma.done.wait (%p6610_p9), [#allocation24], 32  }
 0x21c   : > { %5088 = vsyncadd (%p6611_p12), [#allocation24], 4294967264  ;;  %p6612_p1 = pmov %p6607_p0 }
 0x21d   : > { %p6613_p6 = pmov %p6607_p0 }
 0x21e   : > { %5090 = dma.done.wait (%p6612_p1), [#allocation27], 32  }
 0x21f   : > { %5092 = vsyncadd (%p6613_p6), [#allocation27], 4294967264  ;;  %s6614_s21 = sld [smem:[#allocation74_spill]]  ;;  %s6615_s2 = sld [smem:[#allocation47_spill]]  ;;  %v5175_v0 = vmov 0.0|0.0   ;;  %vm5176_vm0 = vmmov 0   ;;  %v1566_v36 = vlaneseq }
 0x220   : > { %4103 = vmatprep.subr.bf16.mxu1 %v5175_v0  ;;  %v5177_v1 = vmov 0.0   ;;  %v1287_v2 = vld [vmem:[#allocation13] sm:$0xff]  ;;  %v1288_v3 = vld [vmem:[#allocation13 + $0x8] sm:$0xff]  ;;  %v1289_v4 = vld [vmem:[#allocation13 + $0x10] sm:$0xff]  ;;  %vm1298_vm1 = vcmask 261120   ;;  %s5179_s30 = smov 120  }
 0x221   : > { %3976 = vmatprep.mubr.msk.f32.mxu1 %vm5176_vm0, %v5177_v1  ;;  %v4104_v5 = vpack.c.bf16 %v1288_v3, %v1287_v2  ;;  %v1290_v6 = vld [vmem:[#allocation13 + $0x18] sm:$0xff]  ;;  %v1373_v9 = vld [vmem:[#allocation10 + $0x8] sm:$0xff]  ;;  %v1374_v19 = vld [vmem:[#allocation10 + $0x10] sm:$0xff]  ;;  %v5178_v34 = vmov 1966171168   ;;  %v5839_v41 = vshrl.u32 %v1566_v36, 7 }
 0x222   : > { %v4107_v7 = vpack.c.bf16 %v1290_v6, %v1289_v4  ;;  %v1372_v8 = vld [vmem:[#allocation10] sm:$0xff]  ;;  %v4400_v11 = vld [vmem:[#allocation16 + $0x8] sm:$0xff]   ;;  %v1375_v22 = vld [vmem:[#allocation10 + $0x18] sm:$0xff]  ;;  %v1564_v35 = vunpack.c.l.s4 %v5178_v34  ;;  %s5180_s12 = smov 112   ;;  %s5181_s28 = smov 104   ;;  %vm1669_vm2 = vcmask 64512  }
 0x223   : > { %4105 = vmatpush3.bf16.msra.mxu1 %v4104_v5  ;;  %v4399_v10 = vld [vmem:[#allocation16] sm:$0xff]   ;;  %v1275_v14 = vld [vmem:[%s1077_s8] sm:$0xff]  ;;  %v4110_v18 = vpack.c.bf16 %v1373_v9, %v1372_v8  ;;  %v4113_v25 = vpack.c.bf16 %v1375_v22, %v1374_v19  ;;  %v3836_v30 = vld [vmem:[#allocation14] ss:$0 sm:$0xff]  ;;  %v1613_v57 = vsub.s32 0, %v5839_v41  ;;  %vm1734_vm3 = vcmask 1041409  }
 0x224   : > { %4106 = vmatprep.subr.bf16.mxu1 %v5175_v0  ;;  %3990 = vmatprep.subr.bf16.mxu0 %v4399_v10  ;;  %v5822_v28 = vld [vmem:[%s1086_s11] sm:$0xff]  ;;  %v3840_v38 = vld [vmem:[#allocation17] ss:$0 sm:$0xff]  ;;  %v1565_v40 = vunpack.c.0.s8 %v1564_v35  ;;  %vm1736_vm4 = vcmask 1042434   ;;  %vm1738_vm5 = vcmask 1043459   ;;  %vm1740_vm6 = vcmask 1044484  }
 0x225   : > { %p1264_p4 = scmp.lt.s32.totalorder %s6614_s21, 1  ;;  %3991 = vmatpush3.bf16.msra.mxu0 %v4399_v10  ;;  %v3838_v43 = vld [vmem:[#allocation11] ss:$0 sm:$0xff]  ;;  %vm1742_vm7 = vcmask 1045509   ;;  %vm1744_vm8 = vcmask 1046534   ;;  %vm1746_vm9 = vcmask 1047559  }
 0x226   : > { %3992 = vmatprep.subr.bf16.mxu0 %v4400_v11  ;;  %v1568_v48 = vsub.s32 %v1565_v40, %v5839_v41  ;;  %s3833_s29 = sshll.u32 %s5715_s17, 5  ;;  %s6616_s8 = sld [smem:[#allocation61_spill]] }
 0x227   : > { %s1265_s10 = scalar_select %p1264_p4, %s6614_s21, 1  ;;  %4108 = vmatpush3.bf16.msra.mxu1 %v4107_v7 }
 0x228   : > { %4109 = vmatprep.subr.bf16.mxu1 %v5175_v0  ;;  %s6039_s23 = scalar_lea.vmem [#allocation32], %s3833_s29  ;;  %s6617_s13 = sld [smem:[#allocation65_spill]] }
 0x229   : > { %s3902_s19 = sshll.u32 %s1265_s10, 6  ;;  %3993 = vmatpush3.bf16.msra.mxu0 %v4400_v11  ;;  %s6618_s11 = sld [smem:[#allocation63_spill]] }
 0x22a   : > { %s5776_s18 = scalar_lea.vmem %s6615_s2, %s3902_s19  ;;  %3977 = vmatmul.mubr.msk.f32.vlgmr.msra.gmra.mrb[0].mxu1 %vm1298_vm1, %v1275_v14  ;;  %4121 = vmatprep.subr.bf16.mxu0 %v5175_v0  ;;  %s6620_s7 = sld [smem:[#allocation60_spill]] }
 0x22b   : > { %v5780_v12 = vld [vmem:[%s5776_s18] sm:$0xff]  ;;  %v5783_v13 = vld [vmem:[%s5776_s18 + $0x8] sm:$0xff]  ;;  %v5790_v16 = vld [vmem:[%s5776_s18 + $0x10] sm:$0xff]  ;;  %4111 = vmatpush3.bf16.msra.mxu1 %v4110_v18  ;;  %3987 = vmatprep.mubr.msk.f32.mxu1 %vm5176_vm0, %v5177_v1  ;;  %s6622_s2 = sld [smem:[#allocation62_spill]]  ;;  %s6623_s10 = sld [smem:[#allocation66_spill]] }
 0x22c   : > { %v1457_v15 = vpack.c.bf16 %v5783_v13, %v5780_v12  ;;  %v5793_v17 = vld [vmem:[%s5776_s18 + $0x18] sm:$0xff]  ;;  %v5796_v20 = vld [vmem:[%s5776_s18 + $0x20] sm:$0xff]  ;;  %v5799_v21 = vld [vmem:[%s5776_s18 + $0x28] sm:$0xff]  ;;  %4112 = vmatprep.subr.bf16.mxu1 %v5175_v0  ;;  %s6624_s19 = sld [smem:[#allocation68_spill]]  ;;  %s3903_s29 = sshll.u32 %s6614_s21, 10 }
 0x22d   : > { %v1458_v23 = vpack.c.bf16 %v5793_v17, %v5790_v16  ;;  %v1459_v24 = vpack.c.bf16 %v5799_v21, %v5796_v20  ;;  %v5815_v26 = vld [vmem:[%s5776_s18 + $0x30] sm:$0xff]  ;;  %v5818_v27 = vld [vmem:[%s5776_s18 + $0x38] sm:$0xff]  ;;  %s6625_s18 = sld [smem:[#allocation64_spill]]  ;;  %s3904_s3 = sshll.u32 %s6614_s21, 9 }
 0x22e   : > { %3994 = vmatprep.mubr.msk.bf16.mxu0 %vm1298_vm1, %v1457_v15  ;;  %v1460_v29 = vpack.c.bf16 %v5818_v27, %v5815_v26  ;;  %s3407_s4 = sshll.u32 %s6039_s23, 4  ;;  %p6630_p11 = scmp.ne.s32.totalorder %s6579_s5, 0  ;;  %s6388_s4 = int_to_ptr.vmem [resolvable:$true] %s3407_s4 }
 0x22f   : > { %3995 = vmatmul.mubr.msk.bf16.vlgmr.msra.gmra.mrb[0].mxu0 %vm1298_vm1, %v1458_v23  ;;  %4114 = vmatpush3.bf16.msra.mxu1 %v4113_v25 }
 0x230   : > { %3998 = vmatprep.mubr.msk.bf16.mxu0 %vm1298_vm1, %v1459_v24  ;;  %4002 = vmatprep.subr.mxu1 %v5177_v1 }
 0x232   : > { %3988 = vmatmul.mubr.msk.f32.vlgmr.msra.gmra.mrb[2].mxu1 %vm1298_vm1, %v5822_v28 }
 0x233   : > { %4004 = vmatprep.mubr.msk.f32.mxu1 %vm5176_vm0, %v5177_v1 }
 0x237   : > { %3999 = vmatmul.mubr.msk.bf16.gmra.mrb[4].mxu0 %vm1298_vm1, %v1460_v29 }
 0x238   : > { %4053 = vmatprep.mubr.msk.f32.mxu0 %vm5176_vm0, %v5177_v1 }
 0x2fd   : > { %v1368_v31 = vpop.f32.mrb[0].mxu1 }
 0x2fe   : > { %v5834_v32 = vadd.f32 %v3836_v30, %v1368_v31  ;;  %v3978_v33 = vpop.f32.mrb[1].mxu1 }
 0x300   : > { %4003 = vmatpush3.msra.mxu1 %v5834_v32 }
 0x301   : > { %4007 = vmatprep.subr.mxu1 %v5177_v1 }
 0x302   : > { %v3996_v37 = vpop.f32.mrb[0].mxu0 }
 0x303   : > { %v1530_v39 = vpop.f32.mrb[1].mxu0  ;;  %v1539_v6 = vadd.f32 %v3996_v37, %v3840_v38 }
 0x304   : > { %v3997_v42 = vpop.f32.mrb[2].mxu0  ;;  %v1531_v7 = vadd.f32 %v3840_v38, %v1530_v39 }
 0x305   : > { %v1542_v44 = vadd.f32 %v3997_v42, %v3840_v38  ;;  %v1533_v45 = vpop.f32.mrb[3].mxu0  ;;  %v1452_v46 = vpop.f32.mrb[2].mxu1 }
 0x306   : > { %v1453_v47 = vadd.f32 %v3838_v43, %v1452_v46  ;;  %v3989_v49 = vpop.f32.mrb[3].mxu1  ;;  %v1534_v9 = vadd.f32 %v3840_v38, %v1533_v45 }
 0x308   : > { %v1456_v50 = vmul.f32 0.35355338, %v1453_v47 }
 0x30a   : > { %v4000_v51 = vpop.f32.mrb[4].mxu0  ;;  %v1562_v54 = vcombine.high %v1456_v50, %v1456_v50  ;;  %v1569_v55 = vrot.slane %v1456_v50, %v1568_v48 }
 0x30b   : > { %v1555_v52 = vadd.f32 %v4000_v51, %v3840_v38  ;;  %v1546_v53 = vpop.f32.mrb[5].mxu0 }
 0x30c   : > { %v4001_v56 = vpop.f32.mrb[6].mxu0  ;;  %v1576_v60 = vrot.slane %v1562_v54, %v1568_v48  ;;  %v1577_v61 = vcombine.high %v1569_v55, %v1569_v55  ;;  %v1585_v62 = vrot.slane %v1569_v55, %v1568_v48  ;;  %v1547_v22 = vadd.f32 %v3840_v38, %v1546_v53 }
 0x30d   : > { %v1558_v58 = vadd.f32 %v4001_v56, %v3840_v38  ;;  %v1549_v59 = vpop.f32.mrb[7].mxu0 }
 0x30e   : > { %v1550_v63 = vadd.f32 %v3840_v38, %v1549_v59  ;;  %v1578_v2 = vcombine.high %v1576_v60, %v1576_v60  ;;  %v1592_v3 = vrot.slane %v1576_v60, %v1568_v48  ;;  %v1599_v4 = vrot.slane %v1577_v61, %v1568_v48 }
 0x30f   : > { %v1607_v5 = vcombine.high %v1585_v62, %v1585_v62  ;;  %v1614_v8 = vrot.slane %v1585_v62, %v1613_v57 }
 0x310   : > { %v1606_v10 = vrot.slane %v1578_v2, %v1568_v48  ;;  %v1609_v14 = vcombine.high %v1599_v4, %v1599_v4  ;;  %v1618_v15 = vrot.slane %v1599_v4, %v1613_v57  ;;  %v1608_v19 = vcombine.high %v1592_v3, %v1592_v3 }
 0x311   : > { %v1622_v11 = vrot.slane %v1607_v5, %v1613_v57  ;;  %v1651_v18 = vmul.f32 %v1614_v8, %v5834_v32  ;;  %v1630_v23 = vrot.slane %v1592_v3, %v1613_v57 }
 0x312   : > { %v1626_v25 = vrot.slane %v1609_v14, %v1613_v57  ;;  %v1652_v29 = vmul.f32 %v1618_v15, %v5834_v32  ;;  %v1610_v30 = vcombine.high %v1606_v10, %v1606_v10  ;;  %v1638_v33 = vrot.slane %v1608_v19, %v1613_v57 }
 0x313   : > { %v1653_v24 = vmul.f32 %v1622_v11, %v5834_v32  ;;  %v5846_v31 = vmul.f32 %v1651_v18, %v1531_v7  ;;  %v1655_v34 = vmul.f32 %v1630_v23, %v5834_v32  ;;  %v1634_v35 = vrot.slane %v1606_v10, %v1613_v57 }
 0x314   : > { %v1654_v39 = vmul.f32 %v1626_v25, %v5834_v32  ;;  %v5852_v40 = vmul.f32 %v1652_v29, %v1534_v9  ;;  %v1642_v38 = vrot.slane %v1610_v30, %v1613_v57  ;;  %v1657_v42 = vmul.f32 %v1638_v33, %v5834_v32 }
 0x315   : > { %v5849_v37 = vmul.f32 %v1653_v24, %v1539_v6  ;;  %v5855_v43 = vmul.f32 %v1655_v34, %v1547_v22  ;;  %v1656_v45 = vmul.f32 %v1634_v35, %v5834_v32  ;;  %1857 = vrot.lane.b32.xlu0 %v5846_v31, %s5179_s30  ;;  %v5923_v7 = vand.u32 127, %v1566_v36 }
 0x316   : > { %v5860_v46 = vmul.f32 %v1654_v39, %v1542_v44  ;;  %v1658_v47 = vmul.f32 %v1642_v38, %v5834_v32  ;;  %v5865_v48 = vmul.f32 %v1657_v42, %v1555_v52  ;;  %v2514_v50 = vpack.c.bf16 %v5852_v40, %v5846_v31 }
 0x317   : > { %1861 = vrot.lane.b32.xlu1 %v5849_v37, %s5179_s30  ;;  %v5867_v49 = vmul.f32 %v1656_v45, %v1550_v63  ;;  %v1670_v44 = vsel %vm1669_vm2, %v5846_v31, 0.0  ;;  %v1673_v52 = vsel %vm1669_vm2, %v5852_v40, 0.0  ;;  %v1682_v53 = vsel %vm1669_vm2, %v5855_v43, 0.0 }
 0x318   : > { %v5871_v51 = vmul.f32 %v1658_v47, %v1558_v58  ;;  %v1676_v54 = vsel %vm1669_vm2, %v5849_v37, 0.0  ;;  %v1688_v55 = vsel %vm1669_vm2, %v5865_v48, 0.0  ;;  %v1679_v57 = vsel %vm1669_vm2, %v5860_v46, 0.0 }
 0x319   : > { %2048 = vrot.lane.b32.xlu0 %v5846_v31, %s5180_s12  ;;  %v1685_v59 = vsel %vm1669_vm2, %v5867_v49, 0.0  ;;  %v5928_v10 = vsub.s32 %v5923_v7, %v5839_v41  ;;  %vm1968_vm10 = vcmp.ge.s32.totalorder %v5923_v7, 8  ;;  %vm1969_vm11 = vcmp.lt.s32.totalorder %v5923_v7, 16 }
 0x31a   : > { %v1691_v3 = vsel %vm1669_vm2, %v5871_v51, 0.0  ;;  %vm1770_vm12 = vcmp.lt.s32.totalorder %v5923_v7, 8  ;;  %vm1970_vm13 = vmand %vm1968_vm10, %vm1969_vm11  ;;  %vm2159_vm14 = vcmp.ge.s32.totalorder %v5923_v7, 16  ;;  %vm2160_vm15 = vcmp.lt.s32.totalorder %v5923_v7, 24 }
 0x31b   : > { %2050 = vrot.lane.b32.xlu1 %v5852_v40, %s5180_s12 }
 0x31d   : > { %2239 = vrot.lane.b32.xlu0 %v5846_v31, %s5181_s28  ;;  %v3859_v31 = vld [vmem:[#allocation20] ss:$0 sm:$0xff] }
 0x31f   : > { %2052 = vrot.lane.b32.xlu1 %v5849_v37, %s5180_s12 }
 0x323   : > { %2241 = vrot.lane.b32.xlu1 %v5852_v40, %s5181_s28 }
 0x327   : > { %2243 = vrot.lane.b32.xlu1 %v5849_v37, %s5181_s28 }
 0x33c   : > { %1671 = vadd.xlane.f32.xlu0 %v1670_v44 }
 0x34b   : > { %1674 = vadd.xlane.f32.xlu1 %v1673_v52 }
 0x34f   : > { %1683 = vadd.xlane.f32.xlu1 %v1682_v53 }
 0x352   : > { %1859 = vrot.lane.b32.xlu0 %v5852_v40, %s5179_s30 }
 0x356   : > { %1865 = vrot.lane.b32.xlu0 %v5855_v43, %s5179_s30 }
 0x35a   : > { %2056 = vrot.lane.b32.xlu0 %v5855_v43, %s5180_s12 }
 0x35e   : > { %2247 = vrot.lane.b32.xlu0 %v5855_v43, %s5181_s28 }
 0x360   : > { %1863 = vrot.lane.b32.xlu1 %v5860_v46, %s5179_s30 }
 0x364   : > { %1867 = vrot.lane.b32.xlu1 %v5867_v49, %s5179_s30 }
 0x368   : > { %2054 = vrot.lane.b32.xlu1 %v5860_v46, %s5180_s12 }
 0x36c   : > { %2058 = vrot.lane.b32.xlu1 %v5867_v49, %s5180_s12 }
 0x370   : > { %2245 = vrot.lane.b32.xlu1 %v5860_v46, %s5181_s28 }
 0x374   : > { %2249 = vrot.lane.b32.xlu1 %v5867_v49, %s5181_s28 }
 0x37d   : > { %1677 = vadd.xlane.f32.xlu0 %v1676_v54 }
 0x387   : > { %v1858_v56 = vpop.permute.xlu0 %1857 }
 0x388   : > { %v1881_v6 = vsel %vm1669_vm2, %v1858_v56, 0.0 }
 0x389   : > { %v1862_v58 = vpop.permute.xlu1 %1861 }
 0x38a   : > { %v1887_v30 = vsel %vm1669_vm2, %v1862_v58, 0.0 }
 0x38b   : > { %v2049_v60 = vpop.permute.xlu0 %2048 }
 0x38c   : > { %v2072_v9 = vsel %vm1669_vm2, %v2049_v60, 0.0 }
 0x38d   : > { %v2051_v61 = vpop.permute.xlu1 %2050 }
 0x38e   : > { %v2075_v34 = vsel %vm1669_vm2, %v2051_v61, 0.0 }
 0x38f   : > { %v2240_v62 = vpop.permute.xlu0 %2239 }
 0x390   : > { %v2263_v15 = vsel %vm1669_vm2, %v2240_v62, 0.0 }
 0x391   : > { %v2053_v63 = vpop.permute.xlu1 %2052 }
 0x392   : > { %v2078_v39 = vsel %vm1669_vm2, %v2053_v63, 0.0 }
 0x393   : > { %1869 = vrot.lane.b32.xlu0 %v5865_v48, %s5179_s30 }
 0x395   : > { %v2242_v4 = vpop.permute.xlu1 %2241 }
 0x396   : > { %v2266_v38 = vsel %vm1669_vm2, %v2242_v4, 0.0 }
 0x397   : > { %2060 = vrot.lane.b32.xlu0 %v5865_v48, %s5180_s12 }
 0x398   : > { %1689 = vadd.xlane.f32.xlu1 %v1688_v55 }
 0x399   : > { %v2244_v8 = vpop.permute.xlu1 %2243 }
 0x39a   : > { %v2269_v47 = vsel %vm1669_vm2, %v2244_v8, 0.0 }
 0x39b   : > { %2251 = vrot.lane.b32.xlu0 %v5865_v48, %s5181_s28 }
 0x3a9   : > { %2253 = vrot.lane.b32.xlu1 %v5871_v51, %s5181_s28  ;;  %s6626_s28 = sld [smem:[#allocation70_spill]] }
 0x3ba   : > { %1680 = vadd.xlane.f32.xlu0 %v1679_v57 }
 0x3be   : > { %1686 = vadd.xlane.f32.xlu0 %v1685_v59 }
 0x3c9   : > { %v1672_v2 = vpop.xlane.xlu0 %1671 }
 0x3ca   : > { %v1705_v36 = vrot.slane %v1672_v2, %v5928_v10 }
 0x3cd   : > { %1692 = vadd.xlane.f32.xlu1 %v1691_v3  ;;  %v1860_v5 = vpop.permute.xlu0 %1859 }
 0x3ce   : > { %v1884_v29 = vsel %vm1669_vm2, %v1860_v5, 0.0 }
 0x3d1   : > { %1882 = vadd.xlane.f32.xlu1 %v1881_v6  ;;  %v1866_v11 = vpop.permute.xlu0 %1865 }
 0x3d2   : > { %v1893_v22 = vsel %vm1669_vm2, %v1866_v11, 0.0 }
 0x3d4   : > { %1871 = vrot.lane.b32.xlu0 %v5871_v51, %s5179_s30  ;;  %s3832_s30 = sshll.u32 %s5715_s17, 6 }
 0x3d5   : > { %2073 = vadd.xlane.f32.xlu1 %v2072_v9  ;;  %v2057_v19 = vpop.permute.xlu0 %2056 }
 0x3d6   : > { %v2084_v23 = vsel %vm1669_vm2, %v2057_v19, 0.0 }
 0x3d8   : > { %v1675_v14 = vpop.xlane.xlu1 %1674  ;;  %2062 = vrot.lane.b32.xlu0 %v5871_v51, %s5180_s12  ;;  %s6328_s12 = scalar_lea.vmem [#allocation30], %s3832_s30  ;;  %s6528_s30 = scalar_lea.vmem [#allocation29], %s5718_s1 }
 0x3d9   : > { %v1709_v18 = vrot.slane %v1675_v14, %v5928_v10  ;;  %2264 = vadd.xlane.f32.xlu1 %v2263_v15  ;;  %v2248_v24 = vpop.permute.xlu0 %2247 }
 0x3da   : > { %v2275_v25 = vsel %vm1669_vm2, %v2248_v24, 0.0 }
 0x3db   : > { %v1735_v41 = vsel %vm1734_vm3, %v1709_v18, %v1705_v36 }
 0x3dc   : > { %v1684_v33 = vpop.xlane.xlu1 %1683 }
 0x3dd   : > { %1894 = vadd.xlane.f32.xlu1 %v1893_v22  ;;  %v1721_v15 = vrot.slane %v1684_v33, %v5928_v10 }
 0x3e0   : > { %v1864_v35 = vpop.permute.xlu1 %1863 }
 0x3e1   : > { %2085 = vadd.xlane.f32.xlu1 %v2084_v23  ;;  %v1890_v55 = vsel %vm1669_vm2, %v1864_v35, 0.0 }
 0x3e4   : > { %v1868_v42 = vpop.permute.xlu1 %1867 }
 0x3e5   : > { %2276 = vadd.xlane.f32.xlu1 %v2275_v25  ;;  %v1896_v58 = vsel %vm1669_vm2, %v1868_v42, 0.0 }
 0x3e8   : > { %v2055_v52 = vpop.permute.xlu1 %2054 }
 0x3e9   : > { %v2081_v61 = vsel %vm1669_vm2, %v2055_v52, 0.0 }
 0x3ec   : > { %v2059_v59 = vpop.permute.xlu1 %2058 }
 0x3ed   : > { %v2087_v63 = vsel %vm1669_vm2, %v2059_v59, 0.0 }
 0x3f0   : > { %v2246_v62 = vpop.permute.xlu1 %2245 }
 0x3f1   : > { %v2272_v2 = vsel %vm1669_vm2, %v2246_v62, 0.0 }
 0x3f4   : > { %v2250_v3 = vpop.permute.xlu1 %2249 }
 0x3f5   : > { %v2278_v4 = vsel %vm1669_vm2, %v2250_v3, 0.0 }
 0x3f7   : > { %1885 = vadd.xlane.f32.xlu0 %v1884_v29 }
 0x3fb   : > { %1888 = vadd.xlane.f32.xlu0 %v1887_v30 }
 0x3ff   : > { %2076 = vadd.xlane.f32.xlu0 %v2075_v34 }
 0x403   : > { %2079 = vadd.xlane.f32.xlu0 %v2078_v39  ;;  %v5971_v39 = vld [vmem:[%s1095_s9] sm:$0xff]  ;;  %s6619_s9 = smov %s6618_s11 }
 0x407   : > { %2267 = vadd.xlane.f32.xlu0 %v2266_v38 }
 0x40a   : > { %v1678_v45 = vpop.xlane.xlu0 %1677 }
 0x40b   : > { %v1713_v44 = vrot.slane %v1678_v45, %v5928_v10  ;;  %2270 = vadd.xlane.f32.xlu0 %v2269_v47 }
 0x40d   : > { %v1737_v53 = vsel %vm1736_vm4, %v1713_v44, %v1735_v41 }
 0x40e   : > { %v1870_v54 = vpop.permute.xlu0 %1869 }
 0x40f   : > { %1891 = vadd.xlane.f32.xlu0 %v1890_v55  ;;  %v1899_v56 = vsel %vm1669_vm2, %v1870_v54, 0.0 }
 0x410   : > { %1900 = vadd.xlane.f32.xlu1 %v1899_v56 }
 0x412   : > { %v2061_v57 = vpop.permute.xlu0 %2060 }
 0x413   : > { %1897 = vadd.xlane.f32.xlu0 %v1896_v58  ;;  %v2090_v60 = vsel %vm1669_vm2, %v2061_v57, 0.0 }
 0x414   : > { %2091 = vadd.xlane.f32.xlu1 %v2090_v60 }
 0x416   : > { %v2252_v9 = vpop.permute.xlu0 %2251 }
 0x417   : > { %2082 = vadd.xlane.f32.xlu0 %v2081_v61  ;;  %v2281_v30 = vsel %vm1669_vm2, %v2252_v9, 0.0 }
 0x41b   : > { %2088 = vadd.xlane.f32.xlu0 %v2087_v63 }
 0x41f   : > { %2273 = vadd.xlane.f32.xlu0 %v2272_v2 }
 0x423   : > { %2279 = vadd.xlane.f32.xlu0 %v2278_v4 }
 0x425   : > { %v1690_v5 = vpop.xlane.xlu1 %1689 }
 0x426   : > { %v1729_v33 = vrot.slane %v1690_v5, %v5928_v10 }
 0x429   : > { %v2254_v6 = vpop.permute.xlu1 %2253 }
 0x42a   : > { %v2284_v8 = vsel %vm1669_vm2, %v2254_v6, 0.0 }
 0x42b   : > { %2285 = vadd.xlane.f32.xlu0 %v2284_v8 }
 0x447   : > { %v1681_v11 = vpop.xlane.xlu0 %1680 }
 0x448   : > { %v1717_v14 = vrot.slane %v1681_v11, %v5928_v10 }
 0x44a   : > { %v1739_v36 = vsel %vm1738_vm5, %v1717_v14, %v1737_v53 }
 0x44b   : > { %v1741_v18 = vsel %vm1740_vm6, %v1721_v15, %v1739_v36  ;;  %v1687_v19 = vpop.xlane.xlu0 %1686 }
 0x44c   : > { %v1725_v24 = vrot.slane %v1687_v19, %v5928_v10 }
 0x44e   : > { %v1743_v29 = vsel %vm1742_vm7, %v1725_v24, %v1741_v18 }
 0x44f   : > { %v1872_v41 = vpop.permute.xlu0 %1871  ;;  %v1745_v38 = vsel %vm1744_vm8, %v1729_v33, %v1743_v29 }
 0x450   : > { %v1902_v22 = vsel %vm1669_vm2, %v1872_v41, 0.0 }
 0x451   : > { %1903 = vadd.xlane.f32.xlu1 %v1902_v22 }
 0x453   : > { %v2063_v23 = vpop.permute.xlu0 %2062 }
 0x454   : > { %v2093_v25 = vsel %vm1669_vm2, %v2063_v23, 0.0 }
 0x455   : > { %2094 = vadd.xlane.f32.xlu1 %v2093_v25 }
 0x459   : > { %2282 = vadd.xlane.f32.xlu1 %v2281_v30 }
 0x45a   : > { %v1693_v34 = vpop.xlane.xlu1 %1692 }
 0x45b   : > { %v1733_v35 = vrot.slane %v1693_v34, %v5928_v10 }
 0x45d   : > { %v1747_v42 = vsel %vm1746_vm9, %v1733_v35, %v1745_v38 }
 0x45e   : > { %v5976_v45 = vadd.f32 %v1747_v42, %v5971_v39  ;;  %v1883_v55 = vpop.xlane.xlu1 %1882 }
 0x45f   : > { %v1916_v8 = vrot.slane %v1883_v55, %v5928_v10 }
 0x460   : > { %v1750_v47 = vsel %vm1669_vm2, %v5976_v45, -inf }
 0x461   : > { %1751 = vmax.xlane.f32.xlu1 %v1750_v47 }
 0x462   : > { %v2074_v57 = vpop.xlane.xlu1 %2073 }
 0x463   : > { %v2107_v19 = vrot.slane %v2074_v57, %v5928_v10 }
 0x466   : > { %v2265_v59 = vpop.xlane.xlu1 %2264 }
 0x467   : > { %v2298_v57 = vrot.slane %v2265_v59, %v5928_v10 }
 0x46a   : > { %v1895_v61 = vpop.xlane.xlu1 %1894 }
 0x46b   : > { %v1932_v24 = vrot.slane %v1895_v61, %v5928_v10 }
 0x46e   : > { %v2086_v63 = vpop.xlane.xlu1 %2085 }
 0x46f   : > { %v2123_v47 = vrot.slane %v2086_v63, %v5928_v10 }
 0x472   : > { %v2277_v3 = vpop.xlane.xlu1 %2276 }
 0x484   : > { %v1886_v44 = vpop.xlane.xlu0 %1885 }
 0x485   : > { %v1920_v4 = vrot.slane %v1886_v44, %v5928_v10 }
 0x487   : > { %v1945_v14 = vsel %vm1734_vm3, %v1920_v4, %v1916_v8 }
 0x488   : > { %v1889_v52 = vpop.xlane.xlu0 %1888 }
 0x489   : > { %v1924_v5 = vrot.slane %v1889_v52, %v5928_v10 }
 0x48b   : > { %v1946_v36 = vsel %vm1736_vm4, %v1924_v5, %v1945_v14 }
 0x48c   : > { %v2077_v53 = vpop.xlane.xlu0 %2076 }
 0x48d   : > { %v2111_v15 = vrot.slane %v2077_v53, %v5928_v10 }
 0x48f   : > { %v2136_v29 = vsel %vm1734_vm3, %v2111_v15, %v2107_v19 }
 0x490   : > { %v2080_v54 = vpop.xlane.xlu0 %2079 }
 0x491   : > { %v2115_v18 = vrot.slane %v2080_v54, %v5928_v10 }
 0x493   : > { %v2137_v33 = vsel %vm1736_vm4, %v2115_v18, %v2136_v29 }
 0x494   : > { %v2268_v56 = vpop.xlane.xlu0 %2267 }
 0x495   : > { %v2302_v44 = vrot.slane %v2268_v56, %v5928_v10 }
 0x497   : > { %v2327_v4 = vsel %vm1734_vm3, %v2302_v44, %v2298_v57  ;;  %vm2350_vm3 = vcmp.ge.s32.totalorder %v5923_v7, 24 }
 0x498   : > { %v2271_v58 = vpop.xlane.xlu0 %2270 }
 0x499   : > { %v2306_v54 = vrot.slane %v2271_v58, %v5928_v10 }
 0x49b   : > { %v2328_v59 = vsel %vm1736_vm4, %v2306_v54, %v2327_v4  ;;  %vm2351_vm4 = vcmp.lt.s32.totalorder %v5923_v7, 32  ;;  %v2515_v7 = vpack.c.bf16 %v5860_v46, %v5849_v37 }
 0x49c   : > { %v1892_v60 = vpop.xlane.xlu0 %1891 }
 0x49d   : > { %v1901_v6 = vpop.xlane.xlu1 %1900  ;;  %v1928_v9 = vrot.slane %v1892_v60, %v5928_v10 }
 0x49e   : > { %v1940_v52 = vrot.slane %v1901_v6, %v5928_v10 }
 0x49f   : > { %v1947_v41 = vsel %vm1738_vm5, %v1928_v9, %v1946_v36  ;;  %v2314_v36 = vrot.slane %v2277_v3, %v5928_v10 }
 0x4a0   : > { %v1898_v62 = vpop.xlane.xlu0 %1897  ;;  %v1948_v34 = vsel %vm1740_vm6, %v1932_v24, %v1947_v41 }
 0x4a1   : > { %v1936_v22 = vrot.slane %v1898_v62, %v5928_v10  ;;  %v2092_v25 = vpop.xlane.xlu1 %2091 }
 0x4a2   : > { %v2131_v5 = vrot.slane %v2092_v25, %v5928_v10 }
 0x4a3   : > { %v1949_v35 = vsel %vm1742_vm7, %v1936_v22, %v1948_v34 }
 0x4a4   : > { %v2083_v2 = vpop.xlane.xlu0 %2082  ;;  %v1950_v62 = vsel %vm1744_vm8, %v1940_v52, %v1949_v35 }
 0x4a5   : > { %v2119_v23 = vrot.slane %v2083_v2, %v5928_v10 }
 0x4a7   : > { %v2138_v38 = vsel %vm1738_vm5, %v2119_v23, %v2137_v33 }
 0x4a8   : > { %v2089_v11 = vpop.xlane.xlu0 %2088  ;;  %v2139_v60 = vsel %vm1740_vm6, %v2123_v47, %v2138_v38 }
 0x4a9   : > { %v2127_v42 = vrot.slane %v2089_v11, %v5928_v10 }
 0x4ab   : > { %v2140_v2 = vsel %vm1742_vm7, %v2127_v42, %v2139_v60 }
 0x4ac   : > { %v2274_v30 = vpop.xlane.xlu0 %2273  ;;  %v2141_v15 = vsel %vm1744_vm8, %v2131_v5, %v2140_v2 }
 0x4ad   : > { %v2310_v61 = vrot.slane %v2274_v30, %v5928_v10 }
 0x4af   : > { %v2329_v9 = vsel %vm1738_vm5, %v2310_v61, %v2328_v59  ;;  %v3847_v59 = vld [vmem:[%s1103_s26] ss:$0 sm:$0xff]  ;;  %vm2352_vm5 = vmand %vm2350_vm3, %vm2351_vm4  ;;  %s6621_s26 = sld [smem:[#allocation67_spill]] }
 0x4b0   : > { %v2280_v63 = vpop.xlane.xlu0 %2279  ;;  %v2330_v23 = vsel %vm1740_vm6, %v2314_v36, %v2329_v9 }
 0x4b1   : > { %v2318_v11 = vrot.slane %v2280_v63, %v5928_v10 }
 0x4b3   : > { %v2331_v25 = vsel %vm1742_vm7, %v2318_v11, %v2330_v23 }
 0x4b8   : > { %v2286_v18 = vpop.xlane.xlu0 %2285 }
 0x4b9   : > { %v2326_v29 = vrot.slane %v2286_v18, %v5928_v10 }
 0x4de   : > { %v1904_v53 = vpop.xlane.xlu1 %1903 }
 0x4df   : > { %v1944_v55 = vrot.slane %v1904_v53, %v5928_v10 }
 0x4e1   : > { %v1951_v56 = vsel %vm1746_vm9, %v1944_v55, %v1950_v62 }
 0x4e2   : > { %v2095_v58 = vpop.xlane.xlu1 %2094  ;;  %v1953_v6 = vadd.f32 %v1951_v56, %v5971_v39 }
 0x4e3   : > { %v2135_v8 = vrot.slane %v2095_v58, %v5928_v10 }
 0x4e4   : > { %v1954_v14 = vsel %vm1669_vm2, %v1953_v6, -inf }
 0x4e5   : > { %1955 = vmax.xlane.f32.xlu0 %v1954_v14  ;;  %v2142_v19 = vsel %vm1746_vm9, %v2135_v8, %v2141_v15 }
 0x4e6   : > { %v2283_v41 = vpop.xlane.xlu1 %2282  ;;  %v2144_v22 = vadd.f32 %v2142_v19, %v5971_v39 }
 0x4e7   : > { %v2322_v24 = vrot.slane %v2283_v41, %v5928_v10 }
 0x4e8   : > { %v2145_v30 = vsel %vm1669_vm2, %v2144_v22, -inf }
 0x4e9   : > { %v2332_v33 = vsel %vm1744_vm8, %v2322_v24, %v2331_v25  ;;  %2146 = vmax.xlane.f32.xlu1 %v2145_v30 }
 0x4ea   : > { %v2333_v3 = vsel %vm1746_vm9, %v2326_v29, %v2332_v33 }
 0x4eb   : > { %v2335_v34 = vadd.f32 %v2333_v3, %v5971_v39  ;;  %v2430_v3 = vld [vmem:[#allocation19] sm:$0xff] }
 0x4ed   : > { %v2336_v35 = vsel %vm1669_vm2, %v2335_v34, -inf }
 0x4ee   : > { %v1752_v38 = vpop.xlane.xlu1 %1751  ;;  %2337 = vmax.xlane.f32.xlu0 %v2336_v35 }
 0x4ef   : > { %v1753_v42 = vsub.f32 %v5976_v45, %v1752_v38  ;;  %v2433_v38 = vld [vmem:[#allocation19 + $0x18] sm:$0xff] }
 0x4f1   : > { %v1754_v47 = vmul.f32 1.442695, %v1753_v42 }
 0x4f3   : > { %4409 = vpow2.f32 %v1754_v47  ;;  %v4401_v47 = vld [vmem:[#allocation22] sm:$0xff]  }
 0x4fd   : > { %v4410_v44 = vpop.eup %4409 }
 0x4fe   : > { %v1756_v10 = vsel %vm1669_vm2, %v4410_v44, 0.0 }
 0x4ff   : > { %1757 = vadd.xlane.f32.xlu1 %v1756_v10  ;;  %v3851_v10 = vsel %vm1970_vm13, 1.0, %v5177_v1 }
 0x572   : > { %v1956_v52 = vpop.xlane.xlu0 %1955 }
 0x573   : > { %v1957_v53 = vsub.f32 %v1953_v6, %v1956_v52 }
 0x575   : > { %v1958_v54 = vmul.f32 1.442695, %v1957_v53 }
 0x576   : > { %v2147_v55 = vpop.xlane.xlu1 %2146 }
 0x577   : > { %4411 = vpow2.f32 %v1958_v54  ;;  %v2148_v57 = vsub.f32 %v2144_v22, %v2147_v55 }
 0x579   : > { %v2149_v60 = vmul.f32 1.442695, %v2148_v57 }
 0x57b   : > { %4413 = vpow2.f32 %v2149_v60  ;;  %v2338_v39 = vpop.xlane.xlu0 %2337 }
 0x57c   : > { %v2339_v61 = vsub.f32 %v2335_v34, %v2338_v39  ;;  %v2431_v34 = vld [vmem:[#allocation19 + $0x8] sm:$0xff] }
 0x57d   : > { %v4116_v35 = vpack.c.bf16 %v2431_v34, %v2430_v3 }
 0x57e   : > { %v2340_v62 = vmul.f32 1.442695, %v2339_v61 }
 0x580   : > { %4415 = vpow2.f32 %v2340_v62 }
 0x581   : > { %v4412_v45 = vpop.eup %4411 }
 0x582   : > { %v1960_v2 = vsel %vm1669_vm2, %v4412_v45, 0.0 }
 0x583   : > { %1961 = vadd.xlane.f32.xlu0 %v1960_v2  ;;  %v3857_v2 = vsel %vm2352_vm5, 1.0, %v5177_v1 }
 0x585   : > { %v4414_v63 = vpop.eup %4413 }
 0x586   : > { %v2151_v56 = vsel %vm1669_vm2, %v4414_v63, 0.0 }
 0x587   : > { %2152 = vadd.xlane.f32.xlu1 %v2151_v56 }
 0x58a   : > { %v4416_v4 = vpop.eup %4415 }
 0x58b   : > { %v2342_v5 = vsel %vm1669_vm2, %v4416_v4, 0.0 }
 0x58c   : > { %v1758_v58 = vpop.xlane.xlu1 %1757  ;;  %2343 = vadd.xlane.f32.xlu0 %v2342_v5 }
 0x58d   : > { %4417 = vrcp.f32 %v1758_v58  ;;  %v4402_v58 = vld [vmem:[#allocation22 + $0x8] sm:$0xff]  }
 0x597   : > { %v4418_v6 = vpop.eup %4417 }
 0x598   : > { %v1760_v8 = vmul.f32 %v4418_v6, %v4410_v44  ;;  %v3848_v44 = vsel %vm1770_vm12, 1.0, %v5177_v1  ;;  %v2516_v6 = vpack.c.bf16 %v5867_v49, %v5855_v43  ;;  %v3861_v49 = vld [vmem:[#allocation23] ss:$0 sm:$0xff] }
 0x59a   : > { %v1767_v9 = vmul.f32 %v3847_v59, %v1760_v8 }
 0x59c   : > { %1768 = vst.msk [vmem:[%s6039_s23] sm:$0xff] %vm1669_vm2, %v1767_v9  ;;  %4005 = vmatmul.mubr.msk.f32.vlgmr.msra.gmra.mrb[4].mxu1 %vm1669_vm2, %v1767_v9 }
 0x59d   : > { %4008 = vmatpush3.msra.mxu1 %v5834_v32  ;;  %4009 = vmatprep.mubr.msk.f32.mxu1 %vm5176_vm0, %v5177_v1 }
 0x59e   : > { %4012 = vmatprep.subr.mxu1 %v5177_v1 }
 0x610   : > { %v1962_v11 = vpop.xlane.xlu0 %1961 }
 0x611   : > { %4419 = vrcp.f32 %v1962_v11 }
 0x614   : > { %v2153_v14 = vpop.xlane.xlu1 %2152 }
 0x615   : > { %4421 = vrcp.f32 %v2153_v14 }
 0x619   : > { %v2344_v15 = vpop.xlane.xlu0 %2343 }
 0x61a   : > { %4423 = vrcp.f32 %v2344_v15 }
 0x61b   : > { %v4420_v36 = vpop.eup %4419 }
 0x61c   : > { %v1964_v18 = vmul.f32 %v4420_v36, %v4412_v45 }
 0x61e   : > { %v1965_v19 = vmul.f32 %v3847_v59, %v1964_v18 }
 0x61f   : > { %v4422_v41 = vpop.eup %4421 }
 0x620   : > { %v2155_v22 = vmul.f32 %v4422_v41, %v4414_v63  ;;  %3850 = vst.msk [vmem:[%s6039_s23 + $0x8] sm:$0xff] %vm1669_vm2, %v1965_v19  ;;  %4010 = vmatmul.mubr.msk.f32.vlgmr.msra.gmra.mrb[6].mxu1 %vm1669_vm2, %v1965_v19 }
 0x621   : > { %4013 = vmatpush3.msra.mxu1 %v5834_v32  ;;  %4014 = vmatprep.mubr.msk.f32.mxu1 %vm5176_vm0, %v5177_v1 }
 0x622   : > { %4017 = vmatprep.subr.mxu1 %v5177_v1  ;;  %v2156_v23 = vmul.f32 %v3847_v59, %v2155_v22 }
 0x624   : > { %v4424_v24 = vpop.eup %4423  ;;  %3853 = vst.msk [vmem:[%s6039_s23 + $0x10] sm:$0xff] %vm1669_vm2, %v2156_v23  ;;  %4015 = vmatmul.mubr.msk.f32.vlgmr.msra.gmra.mrb[8].mxu1 %vm1669_vm2, %v2156_v23 }
 0x625   : > { %v2346_v25 = vmul.f32 %v4424_v24, %v4416_v4  ;;  %4018 = vmatpush3.msra.mxu1 %v5834_v32  ;;  %4019 = vmatprep.mubr.msk.f32.mxu1 %vm5176_vm0, %v5177_v1  ;;  %v2432_v32 = vld [vmem:[#allocation19 + $0x10] sm:$0xff] }
 0x626   : > { %4115 = vmatprep.subr.bf16.mxu1 %v5175_v0  ;;  %v4119_v42 = vpack.c.bf16 %v2433_v38, %v2432_v32 }
 0x627   : > { %v2347_v29 = vmul.f32 %v3847_v59, %v2346_v25  ;;  %v2517_v59 = vpack.c.bf16 %v5871_v51, %v5865_v48 }
 0x629   : > { %3856 = vst.msk [vmem:[%s6039_s23 + $0x18] sm:$0xff] %vm1669_vm2, %v2347_v29  ;;  %4020 = vmatmul.mubr.msk.f32.vlgmr.msra.gmra.mrb[10].mxu1 %vm1669_vm2, %v2347_v29  ;;  %vm2161_vm2 = vmand %vm2159_vm14, %vm2160_vm15 }
 0x62a   : > { %4030 = vmatprep.mubr.msk.f32.mxu1 %vm5176_vm0, %v5177_v1  ;;  %4117 = vmatpush3.bf16.msra.mxu1 %v4116_v35  ;;  %v3854_v57 = vsel %vm2161_vm2, 1.0, %v5177_v1 }
 0x62b   : > { %4118 = vmatprep.subr.bf16.mxu1 %v5175_v0 }
 0x62e   : > { %4120 = vmatpush3.bf16.msra.mxu1 %v4119_v42 }
 0x62f   : > { %4033 = vmatprep.subr.bf16.mxu1 %v4401_v47 }
 0x66f   : > { %v1843_v30 = vpop.f32.mrb[4].mxu1 }
 0x670   : > { %v4006_v33 = vpop.f32.mrb[5].mxu1  ;;  %v1847_v53 = vmul.f32 %v3848_v44, %v1843_v30 }
 0x6f3   : > { %v2042_v52 = vpop.f32.mrb[6].mxu1 }
 0x6f4   : > { %v2046_v54 = vmul.f32 %v3851_v10, %v2042_v52  ;;  %v4011_v55 = vpop.f32.mrb[7].mxu1 }
 0x6f6   : > { %v2047_v60 = vadd.f32 %v2046_v54, %v1847_v53 }
 0x6f7   : > { %v2233_v39 = vpop.f32.mrb[8].mxu1 }
 0x6f8   : > { %v2237_v61 = vmul.f32 %v3854_v57, %v2233_v39  ;;  %v4016_v62 = vpop.f32.mrb[9].mxu1 }
 0x6fa   : > { %v2238_v45 = vadd.f32 %v2237_v61, %v2047_v60 }
 0x6fc   : > { %v2424_v63 = vpop.f32.mrb[10].mxu1 }
 0x6fd   : > { %v2428_v56 = vmul.f32 %v3857_v2, %v2424_v63  ;;  %v4021_v4 = vpop.f32.mrb[11].mxu1 }
 0x6ff   : > { %v2429_v5 = vadd.f32 %v2428_v56, %v2238_v45 }
 0x701   : > { %4031 = vmatmul.mubr.msk.f32.vlgmr.msra.gmra.mrb[12].mxu1 %vm1298_vm1, %v2429_v5 }
 0x702   : > { %4034 = vmatpush3.bf16.msra.mxu1 %v4401_v47  ;;  %4037 = vmatprep.mubr.msk.bf16.mxu1 %vm1298_vm1, %v2514_v50 }
 0x703   : > { %4035 = vmatprep.subr.bf16.mxu1 %v4402_v58 }
 0x706   : > { %4036 = vmatpush3.bf16.msra.mxu1 %v4402_v58 }
 0x707   : > { %4127 = vmatprep.subr.bf16.mxu1 %v5175_v0 }
 0x709   : > { %4038 = vmatmul.mubr.msk.bf16.vlgmr.msra.gmra.mrb[16].mxu1 %vm1298_vm1, %v2515_v7 }
 0x70a   : > { %4041 = vmatprep.mubr.msk.bf16.mxu1 %vm1298_vm1, %v2516_v6 }
 0x711   : > { %4042 = vmatmul.mubr.msk.bf16.gmra.mrb[20].mxu1 %vm1298_vm1, %v2517_v59 }
 0x712   : > { %4072 = vmatprep.mubr.msk.f32.mxu1 %vm5176_vm0, %v5177_v1  ;;  %vm2891_vm0 = vcmask 523264  }
 0x7d4   : > { %v2510_v40 = vpop.f32.mrb[12].mxu1 }
 0x7d5   : > { %v2511_v37 = vadd.f32 %v3859_v31, %v2510_v40  ;;  %v4032_v46 = vpop.f32.mrb[13].mxu1 }
 0x7d7   : > { %v2618_v50 = vadd.f32 %v2511_v37, %v5822_v28 }
 0x7d9   : > { %v2621_v43 = vsel %vm1298_vm1, %v2618_v50, 0.0 }
 0x7da   : > { %2622 = vadd.xlane.f32.xlu1 %v2621_v43 }
 0x7dc   : > { %v4039_v8 = vpop.f32.mrb[16].mxu1 }
 0x7dd   : > { %v2587_v9 = vpop.f32.mrb[17].mxu1  ;;  %v2596_v11 = vadd.f32 %v4039_v8, %v3861_v49 }
 0x7de   : > { %v2588_v14 = vadd.f32 %v3861_v49, %v2587_v9  ;;  %v4040_v48 = vpop.f32.mrb[18].mxu1 }
 0x7df   : > { %v2590_v51 = vpop.f32.mrb[19].mxu1  ;;  %v2599_v15 = vadd.f32 %v4040_v48, %v3861_v49  ;;  %v2651_v28 = vadd.f32 %v2596_v11, %v5790_v16 }
 0x7e0   : > { %v2591_v36 = vadd.f32 %v3861_v49, %v2590_v51  ;;  %v2649_v1 = vadd.f32 %v2588_v14, %v5780_v12 }
 0x7e1   : > { %v2652_v23 = vadd.f32 %v2599_v15, %v5793_v17  ;;  %v2665_v33 = vsel %vm1298_vm1, %v2651_v28, 0.0 }
 0x7e2   : > { %v2659_v18 = vsel %vm1298_vm1, %v2649_v1, 0.0  ;;  %v2650_v19 = vadd.f32 %v2591_v36, %v5783_v13 }
 0x7e3   : > { %2660 = vadd.xlane.f32.xlu0 %v2659_v18  ;;  %v2668_v13 = vsel %vm1298_vm1, %v2652_v23, 0.0 }
 0x7e4   : > { %v4043_v41 = vpop.f32.mrb[20].mxu1  ;;  %v2662_v22 = vsel %vm1298_vm1, %v2650_v19, 0.0 }
 0x7e5   : > { %v2603_v24 = vpop.f32.mrb[21].mxu1  ;;  %2663 = vadd.xlane.f32.xlu1 %v2662_v22  ;;  %v2612_v25 = vadd.f32 %v4043_v41, %v3861_v49 }
 0x7e6   : > { %v2604_v29 = vadd.f32 %v3861_v49, %v2603_v24  ;;  %v4044_v30 = vpop.f32.mrb[22].mxu1  ;;  %v2792_v24 = vld [vmem:[%s6616_s8 + $0x8] sm:$0xff] }
 0x7e7   : > { %v2606_v12 = vpop.f32.mrb[23].mxu1  ;;  %2666 = vadd.xlane.f32.xlu0 %v2665_v33  ;;  %v2615_v3 = vadd.f32 %v4044_v30, %v3861_v49  ;;  %v2655_v32 = vadd.f32 %v2612_v25, %v5815_v26  ;;  %v2794_v30 = vld [vmem:[%s6616_s8 + $0x18] sm:$0xff] }
 0x7e8   : > { %v2607_v34 = vadd.f32 %v3861_v49, %v2606_v12  ;;  %v2653_v16 = vadd.f32 %v2604_v29, %v5796_v20  ;;  %v2793_v29 = vld [vmem:[%s6616_s8 + $0x10] sm:$0xff]  ;;  %v4403_v12 = vld [vmem:[%s6617_s13] sm:$0xff]  }
 0x7e9   : > { %2669 = vadd.xlane.f32.xlu1 %v2668_v13  ;;  %v2656_v42 = vadd.f32 %v2615_v3, %v5818_v27  ;;  %v2677_v47 = vsel %vm1298_vm1, %v2655_v32, 0.0  ;;  %v4125_v33 = vpack.c.bf16 %v2794_v30, %v2793_v29  ;;  %v2876_v3 = vld [vmem:[%s6618_s11] sm:$0xff]  ;;  %v2878_v13 = vld [vmem:[%s6619_s9 + $0x10] sm:$0xff]  ;;  %s3390_s11 = sshll.u32 %s6328_s12, 4  ;;  %s6362_s11 = int_to_ptr.vmem [resolvable:$true] %s3390_s11 }
 0x7ea   : > { %v2671_v35 = vsel %vm1298_vm1, %v2653_v16, 0.0  ;;  %v2654_v17 = vadd.f32 %v2607_v34, %v5799_v21  ;;  %v2877_v34 = vld [vmem:[%s6619_s9 + $0x8] sm:$0xff] }
 0x7eb   : > { %2672 = vadd.xlane.f32.xlu0 %v2671_v35  ;;  %v2680_v44 = vsel %vm1298_vm1, %v2656_v42, 0.0  ;;  %v2879_v35 = vld [vmem:[%s6619_s9 + $0x18] sm:$0xff] }
 0x7ec   : > { %v2674_v38 = vsel %vm1298_vm1, %v2654_v17, 0.0 }
 0x7ed   : > { %2675 = vadd.xlane.f32.xlu1 %v2674_v38  ;;  %v2881_v38 = vld [vmem:[%s6619_s9 + $0x28] sm:$0xff] }
 0x7ef   : > { %2678 = vadd.xlane.f32.xlu0 %v2677_v47 }
 0x7f1   : > { %2681 = vadd.xlane.f32.xlu1 %v2680_v44 }
 0x867   : > { %v2623_v20 = vpop.xlane.xlu1 %2622 }
 0x868   : > { %v2625_v10 = vmul.f32 0.03125, %v2623_v20 }
 0x86a   : > { %v6114_v52 = vsub.f32 %v2618_v50, %v2625_v10 }
 0x86c   : > { %v2627_v21 = vmul.f32 %v6114_v52, %v6114_v52 }
 0x86e   : > { %v2628_v26 = vsel %vm1298_vm1, %v2627_v21, 0.0 }
 0x86f   : > { %2629 = vadd.xlane.f32.xlu0 %v2628_v26 }
 0x870   : > { %v2661_v53 = vpop.xlane.xlu0 %2660 }
 0x871   : > { %v2683_v54 = vmul.f32 0.03125, %v2661_v53 }
 0x872   : > { %v2664_v27 = vpop.xlane.xlu1 %2663 }
 0x873   : > { %v6119_v55 = vsub.f32 %v2649_v1, %v2683_v54  ;;  %v2684_v57 = vmul.f32 0.03125, %v2664_v27 }
 0x874   : > { %v2667_v60 = vpop.xlane.xlu0 %2666 }
 0x875   : > { %v6121_v39 = vsub.f32 %v2650_v19, %v2684_v57  ;;  %v2685_v61 = vmul.f32 0.03125, %v2667_v60  ;;  %v2699_v62 = vmul.f32 %v6119_v55, %v6119_v55 }
 0x876   : > { %v2670_v45 = vpop.xlane.xlu1 %2669 }
 0x877   : > { %v6125_v2 = vsub.f32 %v2651_v28, %v2685_v61  ;;  %v2686_v63 = vmul.f32 0.03125, %v2670_v45  ;;  %v2707_v56 = vsel %vm1298_vm1, %v2699_v62, 0.0  ;;  %v2700_v4 = vmul.f32 %v6121_v39, %v6121_v39  ;;  %v6174_v62 = vld [vmem:[#allocation25] ss:$0 sm:$0xff] }
 0x878   : > { %2708 = vadd.xlane.f32.xlu1 %v2707_v56  ;;  %v2673_v5 = vpop.xlane.xlu0 %2672 }
 0x879   : > { %v6130_v58 = vsub.f32 %v2652_v23, %v2686_v63  ;;  %v2687_v7 = vmul.f32 0.03125, %v2673_v5  ;;  %v2710_v6 = vsel %vm1298_vm1, %v2700_v4, 0.0  ;;  %v2701_v59 = vmul.f32 %v6125_v2, %v6125_v2  ;;  %v2791_v23 = vld [vmem:[%s6616_s8] sm:$0xff]  ;;  %v6177_v4 = vld [vmem:[#allocation26] ss:$0 sm:$0xff] }
 0x87a   : > { %v2676_v31 = vpop.xlane.xlu1 %2675  ;;  %2711 = vadd.xlane.f32.xlu0 %v2710_v6  ;;  %v4122_v25 = vpack.c.bf16 %v2792_v24, %v2791_v23  ;;  %v6192_v24 = vld [vmem:[%s6620_s7] ss:$0 sm:$0xff]  ;;  %s6627_s7 = sld [smem:[#allocation69_spill]] }
 0x87b   : > { %v6135_v40 = vsub.f32 %v2653_v16, %v2687_v7  ;;  %v2688_v37 = vmul.f32 0.03125, %v2676_v31  ;;  %v2713_v46 = vsel %vm1298_vm1, %v2701_v59, 0.0  ;;  %v2702_v50 = vmul.f32 %v6130_v58, %v6130_v58 }
 0x87c   : > { %2714 = vadd.xlane.f32.xlu1 %v2713_v46  ;;  %v2679_v43 = vpop.xlane.xlu0 %2678  ;;  %4123 = vmatpush3.bf16.msra.mxu0 %v4122_v25  ;;  %v4128_v16 = vpack.c.bf16 %v2877_v34, %v2876_v3 }
 0x87d   : > { %v6140_v49 = vsub.f32 %v2654_v17, %v2688_v37  ;;  %v2689_v8 = vmul.f32 0.03125, %v2679_v43  ;;  %v2716_v9 = vsel %vm1298_vm1, %v2702_v50, 0.0  ;;  %v2703_v11 = vmul.f32 %v6135_v40, %v6135_v40  ;;  %4124 = vmatprep.subr.bf16.mxu0 %v5175_v0  ;;  %v4404_v43 = vld [vmem:[%s6617_s13 + $0x8] sm:$0xff]  }
 0x87e   : > { %v2682_v14 = vpop.xlane.xlu1 %2681  ;;  %2717 = vadd.xlane.f32.xlu0 %v2716_v9  ;;  %4129 = vmatpush3.bf16.msra.mxu1 %v4128_v16  ;;  %v4131_v17 = vpack.c.bf16 %v2879_v35, %v2878_v13 }
 0x87f   : > { %v6145_v48 = vsub.f32 %v2655_v32, %v2689_v8  ;;  %v2690_v51 = vmul.f32 0.03125, %v2682_v14  ;;  %v2719_v15 = vsel %vm1298_vm1, %v2703_v11, 0.0  ;;  %v2704_v36 = vmul.f32 %v6140_v49, %v6140_v49  ;;  %4130 = vmatprep.subr.bf16.mxu1 %v5175_v0  ;;  %v2880_v32 = vld [vmem:[%s6619_s9 + $0x20] sm:$0xff] }
 0x880   : > { %2720 = vadd.xlane.f32.xlu1 %v2719_v15  ;;  %4126 = vmatpush3.bf16.msra.mxu0 %v4125_v33 }
 0x881   : > { %v6150_v1 = vsub.f32 %v2656_v42, %v2690_v51  ;;  %v2722_v18 = vsel %vm1298_vm1, %v2704_v36, 0.0  ;;  %v2705_v19 = vmul.f32 %v6145_v48, %v6145_v48  ;;  %4075 = vmatprep.subr.bf16.mxu0 %v4403_v12  ;;  %v4134_v42 = vpack.c.bf16 %v2881_v38, %v2880_v32  ;;  %v6186_v51 = vld [vmem:[#allocation28] ss:$0 sm:$0xff] }
 0x882   : > { %2723 = vadd.xlane.f32.xlu0 %v2722_v18  ;;  %4132 = vmatpush3.bf16.msra.mxu1 %v4131_v17 }
 0x883   : > { %v2725_v28 = vsel %vm1298_vm1, %v2705_v19, 0.0  ;;  %v2706_v41 = vmul.f32 %v6150_v1, %v6150_v1  ;;  %4133 = vmatprep.subr.bf16.mxu1 %v5175_v0 }
 0x884   : > { %2726 = vadd.xlane.f32.xlu1 %v2725_v28 }
 0x885   : > { %v2728_v22 = vsel %vm1298_vm1, %v2706_v41, 0.0 }
 0x886   : > { %2729 = vadd.xlane.f32.xlu0 %v2728_v22  ;;  %4135 = vmatpush3.bf16.msra.mxu1 %v4134_v42 }
 0x887   : > { %4136 = vmatprep.subr.bf16.mxu1 %v5175_v0 }
 0x8fc   : > { %v2630_v47 = vpop.xlane.xlu0 %2629 }
 0x8fd   : > { %v2631_v44 = vmul.f32 0.03125, %v2630_v47 }
 0x8ff   : > { %v2632_v20 = vadd.f32 1e-05, %v2631_v44 }
 0x901   : > { %4425 = vrsqrt.f32 %v2632_v20 }
 0x905   : > { %v2709_v10 = vpop.xlane.xlu1 %2708 }
 0x906   : > { %v2731_v21 = vmul.f32 0.03125, %v2709_v10 }
 0x907   : > { %v2712_v26 = vpop.xlane.xlu0 %2711 }
 0x908   : > { %v2739_v53 = vadd.f32 1e-05, %v2731_v21  ;;  %v2732_v54 = vmul.f32 0.03125, %v2712_v26 }
 0x909   : > { %v2715_v27 = vpop.xlane.xlu1 %2714 }
 0x90a   : > { %4427 = vrsqrt.f32 %v2739_v53  ;;  %v2740_v57 = vadd.f32 1e-05, %v2732_v54  ;;  %v2733_v60 = vmul.f32 0.03125, %v2715_v27  ;;  %v2882_v27 = vld [vmem:[%s6619_s9 + $0x30] sm:$0xff] }
 0x90b   : > { %v4426_v61 = vpop.eup %4425  ;;  %v2718_v45 = vpop.xlane.xlu0 %2717 }
 0x90c   : > { %v2634_v0 = vmul.f32 %v4426_v61, %v6114_v52  ;;  %4429 = vrsqrt.f32 %v2740_v57  ;;  %v2741_v63 = vadd.f32 1e-05, %v2733_v60  ;;  %v2734_v56 = vmul.f32 0.03125, %v2718_v45  ;;  %v2883_v57 = vld [vmem:[%s6619_s9 + $0x38] sm:$0xff]  ;;  %v4405_v61 = vld [vmem:[%s6621_s26] sm:$0xff]   ;;  %v4406_v45 = vld [vmem:[%s6621_s26 + $0x8] sm:$0xff]  }
 0x90d   : > { %v2721_v5 = vpop.xlane.xlu1 %2720  ;;  %v4137_v60 = vpack.c.bf16 %v2883_v57, %v2882_v27  ;;  %s4945_s9 = scalar_lea.vmem %s6362_s11, 1024 }
 0x90e   : > { %v2641_v7 = vmul.f32 %v6174_v62, %v2634_v0  ;;  %4431 = vrsqrt.f32 %v2741_v63  ;;  %v2742_v6 = vadd.f32 1e-05, %v2734_v56  ;;  %v2735_v59 = vmul.f32 0.03125, %v2721_v5  ;;  %v4407_v0 = vld [vmem:[%s6621_s26 + $0x10] sm:$0xff]   ;;  %v4408_v63 = vld [vmem:[%s6621_s26 + $0x18] sm:$0xff]   ;;  %p4946_p13 = scmp.ne.s32.totalorder %s6362_s11, %s4945_s9 }
 0x90f   : > { %v2724_v31 = vpop.xlane.xlu0 %2723  ;;  %4138 = vmatpush3.bf16.msra.mxu1 %v4137_v60  ;;  %v3872_v56 = vld [vmem:[%s6622_s2] ss:$0 sm:$0xff]  ;;  %s6628_s2 = smov %s6627_s7 }
 0x910   : > { %v6181_v37 = vadd.f32 %v6177_v4, %v2641_v7  ;;  %4433 = vrsqrt.f32 %v2742_v6  ;;  %v2743_v46 = vadd.f32 1e-05, %v2735_v59  ;;  %v2736_v50 = vmul.f32 0.03125, %v2724_v31  ;;  %v3876_v31 = vld [vmem:[%s6623_s10] ss:$0 sm:$0xff]  ;;  %s6358_s10 = scalar_lea.hbm %s6626_s28, %s3903_s29  ;;  %s3375_s29 = sshll.u32 %s6528_s30, 4  ;;  %s6381_s29 = int_to_ptr.vmem [resolvable:$true] %s3375_s29 }
 0x911   : > { %v2727_v52 = vpop.xlane.xlu1 %2726  ;;  %s3356_s30 = scalar_lea.sflag [#allocation31], %s5727_s22  ;;  %p4947_p8 = pnand %p4946_p13, %p6630_p11 }
 0x912   : > { %4435 = vrsqrt.f32 %v2743_v46  ;;  %v2744_v8 = vadd.f32 1e-05, %v2736_v50  ;;  %v2737_v9 = vmul.f32 0.03125, %v2727_v52  ;;  %4054 = vmatmul.mubr.msk.f32.vlgmr.msra.gmra.mrb[8].mxu0 %vm1298_vm1, %v6181_v37 }
 0x913   : > { %v2730_v11 = vpop.xlane.xlu0 %2729  ;;  %4076 = vmatpush3.bf16.msra.mxu0 %v4403_v12  ;;  %p4948_p3 = pneg %p4947_p8 }
 0x914   : > { %v4428_v14 = vpop.eup %4427  ;;  %4437 = vrsqrt.f32 %v2744_v8  ;;  %v2745_v15 = vadd.f32 1e-05, %v2737_v9  ;;  %v2738_v36 = vmul.f32 0.03125, %v2730_v11  ;;  %4077 = vmatprep.subr.bf16.mxu0 %v4404_v43 }
 0x915   : > { %v2755_v18 = vmul.f32 %v4428_v14, %v6119_v55 }
 0x916   : > { %v4430_v19 = vpop.eup %4429  ;;  %4439 = vrsqrt.f32 %v2745_v15  ;;  %v2746_v28 = vadd.f32 1e-05, %v2738_v36 }
 0x917   : > { %v2756_v41 = vmul.f32 %v4430_v19, %v6121_v39  ;;  %v2769_v22 = vmul.f32 %v6186_v51, %v2755_v18  ;;  %4078 = vmatpush3.bf16.msra.mxu0 %v4404_v43 }
 0x918   : > { %v4432_v23 = vpop.eup %4431  ;;  %4441 = vrsqrt.f32 %v2746_v28  ;;  %4087 = vmatprep.subr.bf16.mxu0 %v4405_v61 }
 0x919   : > { %v2757_v25 = vmul.f32 %v4432_v23, %v6125_v2  ;;  %v2770_v29 = vmul.f32 %v6186_v51, %v2756_v41  ;;  %v6199_v12 = vadd.f32 %v6192_v24, %v2769_v22 }
 0x91a   : > { %v4434_v30 = vpop.eup %4433 }
 0x91b   : > { %v2771_v33 = vmul.f32 %v6186_v51, %v2757_v25  ;;  %v2758_v55 = vmul.f32 %v4434_v30, %v6130_v58  ;;  %v6202_v39 = vadd.f32 %v6192_v24, %v2770_v29 }
 0x91c   : > { %v4436_v3 = vpop.eup %4435 }
 0x91d   : > { %v2772_v34 = vmul.f32 %v6186_v51, %v2758_v55  ;;  %v2759_v13 = vmul.f32 %v4436_v3, %v6135_v40  ;;  %v2965_v2 = vpack.c.bf16 %v6202_v39, %v6199_v12  ;;  %v6211_v58 = vadd.f32 %v6192_v24, %v2771_v33 }
 0x91e   : > { %v4438_v16 = vpop.eup %4437 }
 0x91f   : > { %v2760_v35 = vmul.f32 %v4438_v16, %v6140_v49  ;;  %4079 = vmatprep.mubr.msk.bf16.mxu0 %vm1298_vm1, %v2965_v2  ;;  %v6214_v17 = vadd.f32 %v6192_v24, %v2772_v34  ;;  %v2773_v32 = vmul.f32 %v6186_v51, %v2759_v13 }
 0x920   : > { %v4440_v38 = vpop.eup %4439 }
 0x921   : > { %v2761_v42 = vmul.f32 %v4440_v38, %v6145_v48  ;;  %v2966_v40 = vpack.c.bf16 %v6214_v17, %v6211_v58  ;;  %v2774_v49 = vmul.f32 %v6186_v51, %v2760_v35  ;;  %v6224_v20 = vadd.f32 %v6192_v24, %v2773_v32 }
 0x922   : > { %v4442_v47 = vpop.eup %4441 }
 0x923   : > { %v2762_v44 = vmul.f32 %v4442_v47, %v6150_v1  ;;  %4080 = vmatmul.mubr.msk.bf16.vlgmr.msra.gmra.mrb[12].mxu0 %vm1298_vm1, %v2966_v40  ;;  %v6227_v10 = vadd.f32 %v6192_v24, %v2774_v49  ;;  %v2775_v48 = vmul.f32 %v6186_v51, %v2761_v42  ;;  %v3883_v40 = vld [vmem:[%s6624_s19] ss:$0 sm:$0xff]  ;;  %s6629_s19 = sld [smem:[#allocation71_spill]] }
 0x924   : > { %4088 = vmatpush3.bf16.msra.mxu0 %v4405_v61 }
 0x925   : > { %v2967_v21 = vpack.c.bf16 %v6227_v10, %v6224_v20  ;;  %v2776_v26 = vmul.f32 %v6186_v51, %v2762_v44  ;;  %v6235_v1 = vadd.f32 %v6192_v24, %v2775_v48  ;;  %4089 = vmatprep.subr.bf16.mxu0 %v4406_v45 }
 0x927   : > { %4083 = vmatprep.mubr.msk.bf16.mxu0 %vm1298_vm1, %v2967_v21  ;;  %v6238_v53 = vadd.f32 %v6192_v24, %v2776_v26 }
 0x928   : > { %4090 = vmatpush3.bf16.msra.mxu0 %v4406_v45 }
 0x929   : > { %v2968_v54 = vpack.c.bf16 %v6238_v53, %v6235_v1  ;;  %4091 = vmatprep.subr.bf16.mxu0 %v4407_v0  ;;  %s6386_s8 = scalar_lea.hbm %s6629_s19, %s3904_s3 }
 0x92b   : > { %4084 = vmatmul.mubr.msk.bf16.gmra.mrb[16].mxu0 %vm1298_vm1, %v2968_v54 }
 0x92c   : > { %4092 = vmatpush3.bf16.msra.mxu0 %v4407_v0 }
 0x92d   : > { %4093 = vmatprep.subr.bf16.mxu0 %v4408_v63 }
 0x930   : > { %4094 = vmatpush3.bf16.msra.mxu0 %v4408_v63 }
 0x9e5   : > { %v2871_v5 = vpop.f32.mrb[8].mxu0 }
 0x9e6   : > { %v2872_v7 = vadd.f32 %v3872_v56, %v2871_v5  ;;  %v4055_v6 = vpop.f32.mrb[9].mxu0 }
 0x9e8   : > { %v2875_v59 = vmax.f32 %v2872_v7, 0.0 }
 0x9ea   : > { %4073 = vmatmul.mubr.msk.f32.vlgmr.msra.gmra.mrb[14].mxu1 %vm2891_vm0, %v2875_v59  ;;  %v3874_v59 = vld [vmem:[%s6625_s18] ss:$0 sm:$0xff]  ;;  %s3895_s18 = sshll.u32 %s6614_s21, 7  ;;  %s5182_s21 = smov [#allocation30]  }
 0x9eb   : > { %s6379_s6 = scalar_lea.hbm %s6627_s7, %s3895_s18  ;;  %s4949_s23 = sshll.u32 %s5182_s21, 4  ;;  %s4950_s23 = int_to_ptr.vmem [resolvable:$false] %s4949_s23 }
 0x9ec   : > { %s4951_s13 = scalar_lea.vmem %s4950_s23, 2048  ;;  %p4952_p7 = scmp.lt.s32.totalorder %s6362_s11, %s4950_s23 }
 0x9ed   : > { %p4953_p10 = scmp.lt.s32.totalorder %s4951_s13, %s4945_s9 }
 0x9ef   : > { %p4954_p0 = por %p4953_p10, %p4952_p7 }
 0x9f1   : > { %p4955_p2 = pnand %p4954_p0, %p4948_p3 }
 0x9f6   : > { %v4081_v46 = vpop.f32.mrb[12].mxu0 }
 0x9f7   : > { %v3047_v50 = vadd.f32 %v4081_v46, %v3876_v31  ;;  %v3038_v43 = vpop.f32.mrb[13].mxu0 }
 0x9f8   : > { %v3039_v52 = vadd.f32 %v3876_v31, %v3038_v43  ;;  %v4082_v8 = vpop.f32.mrb[14].mxu0 }
 0x9f9   : > { %v3050_v9 = vadd.f32 %v4082_v8, %v3876_v31  ;;  %v3041_v11 = vpop.f32.mrb[15].mxu0  ;;  %v3071_v15 = vmax.f32 %v3047_v50, 0.0 }
 0x9fa   : > { %v3042_v14 = vadd.f32 %v3876_v31, %v3041_v11  ;;  %v3069_v18 = vmax.f32 %v3039_v52, 0.0 }
 0x9fb   : > { %v3072_v36 = vmax.f32 %v3050_v9, 0.0 }
 0x9fc   : > { %v3070_v19 = vmax.f32 %v3042_v14, 0.0 }
 0x9fd   : > { %v3078_v28 = vpack.c.bf16 %v3072_v36, %v3071_v15 }
 0x9fe   : > { %v3077_v41 = vpack.c.bf16 %v3070_v19, %v3069_v18  ;;  %v4085_v22 = vpop.f32.mrb[16].mxu0 }
 0x9ff   : > { %v3063_v23 = vadd.f32 %v4085_v22, %v3876_v31  ;;  %v3054_v25 = vpop.f32.mrb[17].mxu0 }
 0xa00   : > { %v3055_v29 = vadd.f32 %v3876_v31, %v3054_v25  ;;  %v4086_v30 = vpop.f32.mrb[18].mxu0  ;;  %4095 = vmatprep.mubr.msk.bf16.mxu0 %vm2891_vm0, %v3077_v41 }
 0xa01   : > { %v3066_v33 = vadd.f32 %v4086_v30, %v3876_v31  ;;  %v3057_v55 = vpop.f32.mrb[19].mxu0  ;;  %4096 = vmatmul.mubr.msk.bf16.vlgmr.msra.gmra.mrb[20].mxu0 %vm2891_vm0, %v3078_v28  ;;  %v3075_v34 = vmax.f32 %v3063_v23, 0.0 }
 0xa02   : > { %v3058_v3 = vadd.f32 %v3876_v31, %v3057_v55  ;;  %v3073_v2 = vmax.f32 %v3055_v29, 0.0 }
 0xa03   : > { %v3076_v13 = vmax.f32 %v3066_v33, 0.0 }
 0xa04   : > { %v3074_v16 = vmax.f32 %v3058_v3, 0.0 }
 0xa05   : > { %v3080_v35 = vpack.c.bf16 %v3076_v13, %v3075_v34 }
 0xa06   : > { %v3079_v32 = vpack.c.bf16 %v3074_v16, %v3073_v2 }
 0xa08   : > { %4099 = vmatprep.mubr.msk.bf16.mxu0 %vm2891_vm0, %v3079_v32 }
 0xa09   : > { %4100 = vmatmul.mubr.msk.bf16.gmra.mrb[24].mxu0 %vm2891_vm0, %v3080_v35 }
 0xabd   : > { %v2961_v38 = vpop.f32.mrb[14].mxu1 }
 0xabe   : > { %v4074_v42 = vpop.f32.mrb[15].mxu1  ;;  %v2962_v52 = vadd.f32 %v3874_v59, %v2961_v38 }
 0xad4   : > { %v4097_v49 = vpop.f32.mrb[20].mxu0 }
 0xad5   : > { %v3175_v47 = vadd.f32 %v4097_v49, %v3883_v40  ;;  %v3166_v44 = vpop.f32.mrb[21].mxu0 }
 0xad6   : > { %v3167_v48 = vadd.f32 %v3883_v40, %v3166_v44  ;;  %v4098_v21 = vpop.f32.mrb[22].mxu0 }
 0xad7   : > { %v3178_v26 = vadd.f32 %v4098_v21, %v3883_v40  ;;  %v3169_v54 = vpop.f32.mrb[23].mxu0  ;;  %v3215_v27 = vadd.f32 %v3175_v47, %v6211_v58 }
 0xad8   : > { %v3170_v57 = vadd.f32 %v3883_v40, %v3169_v54  ;;  %v3213_v45 = vadd.f32 %v3167_v48, %v6199_v12 }
 0xad9   : > { %v3227_v60 = vsel %vm1298_vm1, %v3215_v27, 0.0  ;;  %v3216_v61 = vadd.f32 %v3178_v26, %v6214_v17 }
 0xada   : > { %3228 = vadd.xlane.f32.xlu1 %v3227_v60  ;;  %v3214_v63 = vadd.f32 %v3170_v57, %v6202_v39  ;;  %v3221_v6 = vsel %vm1298_vm1, %v3213_v45, 0.0 }
 0xadb   : > { %v3230_v0 = vsel %vm1298_vm1, %v3216_v61, 0.0 }
 0xadc   : > { %3231 = vadd.xlane.f32.xlu0 %v3230_v0  ;;  %v4101_v56 = vpop.f32.mrb[24].mxu0  ;;  %v3224_v17 = vsel %vm1298_vm1, %v3214_v63, 0.0 }
 0xadd   : > { %v3191_v5 = vadd.f32 %v4101_v56, %v3883_v40  ;;  %v3182_v7 = vpop.f32.mrb[25].mxu0 }
 0xade   : > { %v3183_v58 = vadd.f32 %v3883_v40, %v3182_v7  ;;  %3222 = vadd.xlane.f32.xlu1 %v3221_v6  ;;  %v4102_v31 = vpop.f32.mrb[26].mxu0 }
 0xadf   : > { %v3185_v46 = vpop.f32.mrb[27].mxu0  ;;  %v3219_v12 = vadd.f32 %v3191_v5, %v6235_v1  ;;  %v3194_v50 = vadd.f32 %v4102_v31, %v3883_v40  ;;  %v3197_v1 = vadd.f32 %v2962_v52, %v6181_v37 }
 0xae0   : > { %v3186_v43 = vadd.f32 %v3883_v40, %v3185_v46  ;;  %3225 = vadd.xlane.f32.xlu0 %v3224_v17  ;;  %v3217_v8 = vadd.f32 %v3183_v58, %v6224_v20 }
 0xae1   : > { %v3239_v39 = vsel %vm1298_vm1, %v3219_v12, 0.0  ;;  %v3220_v14 = vadd.f32 %v3194_v50, %v6238_v53  ;;  %v3198_v18 = vsel %vm1298_vm1, %v3197_v1, 0.0 }
 0xae2   : > { %3240 = vadd.xlane.f32.xlu1 %v3239_v39  ;;  %v3218_v9 = vadd.f32 %v3186_v43, %v6227_v10  ;;  %v3233_v15 = vsel %vm1298_vm1, %v3217_v8, 0.0 }
 0xae3   : > { %v3242_v36 = vsel %vm1298_vm1, %v3220_v14, 0.0 }
 0xae4   : > { %v3236_v11 = vsel %vm1298_vm1, %v3218_v9, 0.0 }
 0xae5   : > { %3237 = vadd.xlane.f32.xlu0 %v3236_v11 }
 0xae6   : > { %3234 = vadd.xlane.f32.xlu1 %v3233_v15 }
 0xae9   : > { %3243 = vadd.xlane.f32.xlu0 %v3242_v36 }
 0xaea   : > { %3199 = vadd.xlane.f32.xlu1 %v3198_v18 }
 0xb67   : > { %v3229_v20 = vpop.xlane.xlu1 %3228 }
 0xb68   : > { %v3247_v19 = vmul.f32 0.03125, %v3229_v20 }
 0xb69   : > { %v3232_v28 = vpop.xlane.xlu0 %3231 }
 0xb6a   : > { %v6276_v10 = vsub.f32 %v3215_v27, %v3247_v19  ;;  %v3248_v41 = vmul.f32 0.03125, %v3232_v28 }
 0xb6b   : > { %v3223_v22 = vpop.xlane.xlu1 %3222 }
 0xb6c   : > { %v6278_v53 = vsub.f32 %v3216_v61, %v3248_v41  ;;  %v3245_v23 = vmul.f32 0.03125, %v3223_v22  ;;  %v3263_v37 = vmul.f32 %v6276_v10, %v6276_v10 }
 0xb6d   : > { %v3226_v25 = vpop.xlane.xlu0 %3225 }
 0xb6e   : > { %v6282_v29 = vsub.f32 %v3213_v45, %v3245_v23  ;;  %v3246_v30 = vmul.f32 0.03125, %v3226_v25  ;;  %v3275_v33 = vsel %vm1298_vm1, %v3263_v37, 0.0  ;;  %v3264_v55 = vmul.f32 %v6278_v53, %v6278_v53 }
 0xb6f   : > { %v3241_v3 = vpop.xlane.xlu1 %3240  ;;  %3276 = vadd.xlane.f32.xlu0 %v3275_v33 }
 0xb70   : > { %v6287_v34 = vsub.f32 %v3214_v63, %v3246_v30  ;;  %v3251_v13 = vmul.f32 0.03125, %v3241_v3  ;;  %v3278_v2 = vsel %vm1298_vm1, %v3264_v55, 0.0  ;;  %v3261_v16 = vmul.f32 %v6282_v29, %v6282_v29 }
 0xb71   : > { %3279 = vadd.xlane.f32.xlu1 %v3278_v2 }
 0xb72   : > { %v6292_v35 = vsub.f32 %v3219_v12, %v3251_v13  ;;  %v3238_v32 = vpop.xlane.xlu0 %3237  ;;  %v3269_v38 = vsel %vm1298_vm1, %v3261_v16, 0.0  ;;  %v3262_v42 = vmul.f32 %v6287_v34, %v6287_v34 }
 0xb73   : > { %v3250_v40 = vmul.f32 0.03125, %v3238_v32  ;;  %3270 = vadd.xlane.f32.xlu0 %v3269_v38  ;;  %v3235_v49 = vpop.xlane.xlu1 %3234 }
 0xb74   : > { %v3249_v47 = vmul.f32 0.03125, %v3235_v49  ;;  %v3272_v44 = vsel %vm1298_vm1, %v3262_v42, 0.0  ;;  %v3267_v48 = vmul.f32 %v6292_v35, %v6292_v35 }
 0xb75   : > { %v6300_v21 = vsub.f32 %v3218_v9, %v3250_v40  ;;  %3273 = vadd.xlane.f32.xlu1 %v3272_v44 }
 0xb76   : > { %v6302_v26 = vsub.f32 %v3217_v8, %v3249_v47  ;;  %v3244_v54 = vpop.xlane.xlu0 %3243  ;;  %v3287_v27 = vsel %vm1298_vm1, %v3267_v48, 0.0 }
 0xb77   : > { %v3252_v57 = vmul.f32 0.03125, %v3244_v54  ;;  %3288 = vadd.xlane.f32.xlu0 %v3287_v27  ;;  %v3200_v60 = vpop.xlane.xlu1 %3199  ;;  %v3266_v61 = vmul.f32 %v6300_v21, %v6300_v21 }
 0xb78   : > { %v3201_v45 = vmul.f32 0.03125, %v3200_v60  ;;  %v3265_v0 = vmul.f32 %v6302_v26, %v6302_v26 }
 0xb79   : > { %v6309_v63 = vsub.f32 %v3220_v14, %v3252_v57  ;;  %v3284_v56 = vsel %vm1298_vm1, %v3266_v61, 0.0 }
 0xb7a   : > { %v6312_v5 = vsub.f32 %v3197_v1, %v3201_v45  ;;  %3285 = vadd.xlane.f32.xlu1 %v3284_v56  ;;  %v3281_v7 = vsel %vm1298_vm1, %v3265_v0, 0.0 }
 0xb7b   : > { %3282 = vadd.xlane.f32.xlu0 %v3281_v7  ;;  %v3268_v6 = vmul.f32 %v6309_v63, %v6309_v63 }
 0xb7c   : > { %v3203_v59 = vmul.f32 %v6312_v5, %v6312_v5 }
 0xb7d   : > { %v3290_v58 = vsel %vm1298_vm1, %v3268_v6, 0.0 }
 0xb7e   : > { %3291 = vadd.xlane.f32.xlu1 %v3290_v58  ;;  %v3204_v31 = vsel %vm1298_vm1, %v3203_v59, 0.0 }
 0xb7f   : > { %3205 = vadd.xlane.f32.xlu0 %v3204_v31 }
 0xbfc   : > { %v3277_v46 = vpop.xlane.xlu0 %3276 }
 0xbfd   : > { %v3295_v17 = vmul.f32 0.03125, %v3277_v46 }
 0xbfe   : > { %v3280_v12 = vpop.xlane.xlu1 %3279 }
 0xbff   : > { %v3303_v50 = vadd.f32 1e-05, %v3295_v17  ;;  %v3296_v43 = vmul.f32 0.03125, %v3280_v12 }
 0xc00   : > { %v3271_v52 = vpop.xlane.xlu0 %3270 }
 0xc01   : > { %4443 = vrsqrt.f32 %v3303_v50  ;;  %v3304_v39 = vadd.f32 1e-05, %v3296_v43  ;;  %v3293_v8 = vmul.f32 0.03125, %v3271_v52 }
 0xc02   : > { %v3274_v9 = vpop.xlane.xlu1 %3273 }
 0xc03   : > { %4445 = vrsqrt.f32 %v3304_v39  ;;  %v3301_v11 = vadd.f32 1e-05, %v3293_v8  ;;  %v3294_v14 = vmul.f32 0.03125, %v3274_v9 }
 0xc04   : > { %v3289_v15 = vpop.xlane.xlu0 %3288 }
 0xc05   : > { %4447 = vrsqrt.f32 %v3301_v11  ;;  %v3302_v1 = vadd.f32 1e-05, %v3294_v14  ;;  %v3299_v36 = vmul.f32 0.03125, %v3289_v15 }
 0xc07   : > { %4449 = vrsqrt.f32 %v3302_v1  ;;  %v3307_v18 = vadd.f32 1e-05, %v3299_v36  ;;  %v3286_v20 = vpop.xlane.xlu1 %3285 }
 0xc08   : > { %v3298_v19 = vmul.f32 0.03125, %v3286_v20  ;;  %v3283_v28 = vpop.xlane.xlu0 %3282 }
 0xc09   : > { %4451 = vrsqrt.f32 %v3307_v18  ;;  %v3297_v41 = vmul.f32 0.03125, %v3283_v28 }
 0xc0a   : > { %v3306_v22 = vadd.f32 1e-05, %v3298_v19 }
 0xc0b   : > { %v4444_v23 = vpop.eup %4443  ;;  %v3305_v37 = vadd.f32 1e-05, %v3297_v41  ;;  %v3292_v25 = vpop.xlane.xlu1 %3291 }
 0xc0c   : > { %v3319_v30 = vmul.f32 %v4444_v23, %v6276_v10  ;;  %4453 = vrsqrt.f32 %v3306_v22  ;;  %v3300_v33 = vmul.f32 0.03125, %v3292_v25  ;;  %v3206_v55 = vpop.xlane.xlu0 %3205 }
 0xc0d   : > { %v4446_v3 = vpop.eup %4445  ;;  %4455 = vrsqrt.f32 %v3305_v37  ;;  %v3207_v13 = vmul.f32 0.03125, %v3206_v55 }
 0xc0e   : > { %v3327_v2 = vmul.f32 %v6186_v51, %v3319_v30  ;;  %v3320_v16 = vmul.f32 %v4446_v3, %v6278_v53  ;;  %v3308_v32 = vadd.f32 1e-05, %v3300_v33 }
 0xc0f   : > { %v4448_v38 = vpop.eup %4447  ;;  %v3208_v42 = vadd.f32 1e-05, %v3207_v13 }
 0xc10   : > { %v3335_v40 = vadd.f32 %v6192_v24, %v3327_v2  ;;  %v3328_v49 = vmul.f32 %v6186_v51, %v3320_v16  ;;  %v3317_v47 = vmul.f32 %v4448_v38, %v6282_v29  ;;  %4457 = vrsqrt.f32 %v3308_v32 }
 0xc11   : > { %v4450_v10 = vpop.eup %4449  ;;  %4459 = vrsqrt.f32 %v3208_v42 }
 0xc12   : > { %3344 = vst.msk [vmem:[%s6328_s12 + $0x10] sm:$0xff] %vm1298_vm1, %v3335_v40  ;;  %v3336_v53 = vadd.f32 %v6192_v24, %v3328_v49  ;;  %v3325_v44 = vmul.f32 %v6186_v51, %v3317_v47  ;;  %v3318_v48 = vmul.f32 %v4450_v10, %v6287_v34 }
 0xc13   : > { %v4452_v54 = vpop.eup %4451 }
 0xc14   : > { %3345 = vst.msk [vmem:[%s6328_s12 + $0x18] sm:$0xff] %vm1298_vm1, %v3336_v53  ;;  %v3333_v29 = vadd.f32 %v6192_v24, %v3325_v44  ;;  %v3326_v27 = vmul.f32 %v6186_v51, %v3318_v48  ;;  %v3323_v57 = vmul.f32 %v4452_v54, %v6292_v35 }
 0xc16   : > { %v4454_v60 = vpop.eup %4453  ;;  %3342 = vst.msk [vmem:[%s6328_s12] sm:$0xff] %vm1298_vm1, %v3333_v29  ;;  %v3334_v61 = vadd.f32 %v6192_v24, %v3326_v27  ;;  %v3331_v45 = vmul.f32 %v6186_v51, %v3323_v57 }
 0xc17   : > { %v4456_v34 = vpop.eup %4455  ;;  %v3322_v0 = vmul.f32 %v4454_v60, %v6300_v21 }
 0xc18   : > { %3343 = vst.msk [vmem:[%s6328_s12 + $0x8] sm:$0xff] %vm1298_vm1, %v3334_v61  ;;  %v3339_v56 = vadd.f32 %v6192_v24, %v3331_v45  ;;  %v3321_v7 = vmul.f32 %v4456_v34, %v6302_v26 }
 0xc19   : > { %v3330_v35 = vmul.f32 %v6186_v51, %v3322_v0 }
 0xc1a   : > { %v4458_v6 = vpop.eup %4457  ;;  %3348 = vst.msk [vmem:[%s6328_s12 + $0x30] sm:$0xff] %vm1298_vm1, %v3339_v56  ;;  %v3329_v21 = vmul.f32 %v6186_v51, %v3321_v7 }
 0xc1b   : > { %v4460_v59 = vpop.eup %4459  ;;  %v3338_v58 = vadd.f32 %v6192_v24, %v3330_v35  ;;  %v3324_v26 = vmul.f32 %v4458_v6, %v6309_v63 }
 0xc1c   : > { %v3337_v31 = vadd.f32 %v6192_v24, %v3329_v21  ;;  %v3210_v46 = vmul.f32 %v4460_v59, %v6312_v5 }
 0xc1d   : > { %3347 = vst.msk [vmem:[%s6328_s12 + $0x28] sm:$0xff] %vm1298_vm1, %v3338_v58  ;;  %v3332_v17 = vmul.f32 %v6186_v51, %v3324_v26 }
 0xc1e   : > { %3346 = vst.msk [vmem:[%s6328_s12 + $0x20] sm:$0xff] %vm1298_vm1, %v3337_v31  ;;  %v3211_v63 = vmul.f32 %v6174_v62, %v3210_v46 }
 0xc1f   : > { %v3340_v5 = vadd.f32 %v6192_v24, %v3332_v17 }
 0xc20   : > { %v3212_v12 = vadd.f32 %v6177_v4, %v3211_v63 }
 0xc21   : > { %3349 = vst.msk [vmem:[%s6328_s12 + $0x38] sm:$0xff] %vm1298_vm1, %v3340_v5 }
 0xc22   : > { %4958 = shalt.err (!%p4955_p2)
}
 0xc23   : > { %s4959_s3 = scalar_lea.hbm %s6358_s10, 1024  ;;  %s4963_s12 = scalar_lea.hbm %s6626_s28, 2048 }
 0xc24   : > { %p4960_p5 = scmp.ne.s32.totalorder %s6358_s10, %s4959_s3  ;;  %p4964_p1 = scmp.lt.u32.totalorder %s6358_s10, %s6626_s28 }
 0xc25   : > { %p4965_p6 = scmp.lt.u32.totalorder %s4963_s12, %s4959_s3  ;;  %p4967_p13 = scmp.lt.u32.totalorder %s4959_s3, %s6358_s10 }
 0xc26   : > { %p4961_p9 = pnand %p4960_p5, %p6630_p11 }
 0xc27   : > { %p4966_p4 = por %p4965_p6, %p4964_p1 }
 0xc28   : > { %p4962_p12 = pneg %p4961_p9 }
 0xc29   : > { %p4968_p8 = por %p4967_p13, %p4966_p4 }
 0xc2b   : > { %p4969_p3 = pnand %p4968_p8, %p4962_p12 }
 0xc2d   : > { %4972 = shalt.err (!%p4969_p3)
}
 0xc2e   : > { %s5183_s13 = smov 128   ;;  %s5184_s9 = smov 8  }
 0xc2f   : > { %4200 = dma.vmem_to_hbm [thread:$0]  (%p6630_p11), %s6362_s11, 1024, %s6358_s10, %s3356_s30, %s5183_s13, %s5183_s13, %s5184_s9  }
 0xc30   : > { %s6631_s7 = scalar_lea.vmem [#allocation29], %s5718_s1  ;;  %s3351_s18 = scalar_lea.sflag [#allocation4], %s5715_s17 }
 0xc31   : > { %3341 = vst.msk [vmem:[%s6631_s7] sm:$0xff] %vm1298_vm1, %v3212_v12  ;;  %s4973_s21 = scalar_lea.vmem %s6381_s29, 128  ;;  %s5185_s23 = smov [#allocation29]  }
 0xc32   : > { %p4974_p7 = scmp.ne.s32.totalorder %s6381_s29, %s4973_s21  ;;  %s4977_s3 = sshll.u32 %s5185_s23, 4  ;;  %s4978_s3 = int_to_ptr.vmem [resolvable:$false] %s4977_s3 }
 0xc33   : > { %s4979_s12 = scalar_lea.vmem %s4978_s3, 256  ;;  %p4980_p2 = scmp.lt.s32.totalorder %s6381_s29, %s4978_s3 }
 0xc34   : > { %p4975_p10 = pnand %p4974_p7, %p6630_p11  ;;  %p4981_p5 = scmp.lt.s32.totalorder %s4979_s12, %s4973_s21 }
 0xc36   : > { %p4976_p0 = pneg %p4975_p10  ;;  %p4982_p9 = por %p4981_p5, %p4980_p2 }
 0xc38   : > { %p4983_p12 = pnand %p4982_p9, %p4976_p0 }
 0xc3a   : > { %4986 = shalt.err (!%p4983_p12)
}
 0xc3b   : > { %s4987_s17 = scalar_lea.hbm %s6379_s6, 128  ;;  %s4991_s1 = scalar_lea.hbm %s6628_s2, 256 }
 0xc3c   : > { %p4988_p1 = scmp.ne.s32.totalorder %s6379_s6, %s4987_s17  ;;  %p4992_p13 = scmp.lt.u32.totalorder %s6379_s6, %s6628_s2 }
 0xc3d   : > { %p4993_p8 = scmp.lt.u32.totalorder %s4991_s1, %s4987_s17  ;;  %p4995_p7 = scmp.lt.u32.totalorder %s4987_s17, %s6379_s6 }
 0xc3e   : > { %p4989_p6 = pnand %p4988_p1, %p6630_p11 }
 0xc3f   : > { %p4994_p3 = por %p4993_p8, %p4992_p13 }
 0xc40   : > { %p4990_p4 = pneg %p4989_p6 }
 0xc41   : > { %p4996_p10 = por %p4995_p7, %p4994_p3 }
 0xc43   : > { %p4997_p0 = pnand %p4996_p10, %p4990_p4 }
 0xc45   : > { %5000 = shalt.err (!%p4997_p0)
}
 0xc46   : > { %4199 = dma.vmem_to_hbm [thread:$0]  (%p6630_p11), %s6381_s29, 128, %s6379_s6, %s3351_s18  }
 0xc47   : > { %s5001_s11 = scalar_lea.vmem %s6388_s4, 512  ;;  %s5186_s10 = smov [#allocation32]  }
 0xc48   : > { %p5002_p2 = scmp.ne.s32.totalorder %s6388_s4, %s5001_s11  ;;  %s5005_s7 = sshll.u32 %s5186_s10, 4  ;;  %s5006_s7 = int_to_ptr.vmem [resolvable:$false] %s5005_s7 }
 0xc49   : > { %s5007_s21 = scalar_lea.vmem %s5006_s7, 1024  ;;  %p5008_p12 = scmp.lt.s32.totalorder %s6388_s4, %s5006_s7 }
 0xc4a   : > { %p5003_p5 = pnand %p5002_p2, %p6630_p11  ;;  %p5009_p1 = scmp.lt.s32.totalorder %s5007_s21, %s5001_s11 }
 0xc4c   : > { %p5004_p9 = pneg %p5003_p5  ;;  %p5010_p6 = por %p5009_p1, %p5008_p12 }
 0xc4e   : > { %p5011_p4 = pnand %p5010_p6, %p5004_p9 }
 0xc50   : > { %5014 = shalt.err (!%p5011_p4)
}
 0xc51   : > { %s5015_s6 = scalar_lea.hbm %s6386_s8, 512  ;;  %s5019_s29 = scalar_lea.hbm %s6629_s19, 1024 }
 0xc52   : > { %p5016_p13 = scmp.ne.s32.totalorder %s6386_s8, %s5015_s6  ;;  %p5020_p7 = scmp.lt.u32.totalorder %s6386_s8, %s6629_s19 }
 0xc53   : > { %p5021_p10 = scmp.lt.u32.totalorder %s5019_s29, %s5015_s6  ;;  %p5023_p2 = scmp.lt.u32.totalorder %s5015_s6, %s6386_s8 }
 0xc54   : > { %p5017_p8 = pnand %p5016_p13, %p6630_p11 }
 0xc55   : > { %p5022_p0 = por %p5021_p10, %p5020_p7 }
 0xc56   : > { %p5018_p3 = pneg %p5017_p8 }
 0xc57   : > { %p5024_p5 = por %p5023_p2, %p5022_p0 }
 0xc59   : > { %p5025_p9 = pnand %p5024_p5, %p5018_p3 }
 0xc5b   : > { %5028 = shalt.err (!%p5025_p9)
}
 0xc5c   : > { %4201 = dma.vmem_to_hbm [thread:$0]  (%p6630_p11), %s6388_s4, 512, %s6386_s8, %s3356_s30, %s5183_s13, %s5183_s13, %s5184_s9  }
 0xc5d PF: > { %s6632_s18 = sld [smem:[#allocation72_spill]]  ;;  %s6633_s23 = sld [smem:[#allocation77_spill]] }
 0xc5e   : > { %p6635_p1 = scmp.ge.s32.totalorder %s5123_s16, 2 }
 0xc63   : > { %s3422_s3 = sand.u32 1, %s6632_s18   ;;  %p6634_p12 = scmp.ne.s32.totalorder %s6633_s23, 0 }
 0xc64   : > { %s3423_s12 = scalar_lea.sflag [#allocation4], %s3422_s3 }
 0xc65   : > { %p4259_p6 = pnand %p6635_p1, %p6634_p12 }
 0xc67   : > { %5094 = dma.done.wait (!%p4259_p6), %s3423_s12, 128  }
 0xc68   : > { %5096 = vsyncadd (!%p4259_p6), %s3423_s12, 4294967168  ;;  %s6636_s5 = sadd.s32 4294967294, %s5123_s16  }
 0xc69   : > { %s3431_s17 = sand.u32 1, %s6636_s5  }
 0xc6a   : > { %s3432_s1 = scalar_lea.sflag [#allocation31], %s3431_s17 }
 0xc6b   : > { %5098 = dma.done.wait (!%p4259_p6), %s3432_s1, 1536  }
 0xc6c   : > { %5100 = vsyncadd (!%p4259_p6), %s3432_s1, 4294965760  ;;  %s91_s16 = sadd.s32 1, %s5123_s16   ;;  %s6637_s4 = sld [smem:[#allocation73_spill]] }
 0xc6d   : > { %p88_p11 = scmp.ge.s32.totalorder %s91_s16, 4   ;;  %s6638_s10 = sld [smem:[#allocation76_spill]] }
 0xc6e   : > { %s6639_s22 = sld [smem:[#allocation75_spill]]  ;;  %s6640_s7 = smov %s5107_s0 }
 0xc6f   : > { %s6642_s11 = smov %s5119_s15  ;;  %90 = sbr.rel (!%p88_p11) target bundleno = 78 (0x4e), region = 329 }
 0xc72   : > { %s6641_s0 = smov %s6637_s4 }
 0xc74   : > { %s6643_s15 = smov %s6639_s22 }
 0xc76   :  { %3446 = vsyncpa [#allocation3], 1 }
 0xc77   :  { %3448 = vsyncpa [#allocation3 + $0x1], 1 }
 0xc78   :  { %3449 = vsyncpa [#allocation6], 1 }
 0xc79   :  { %3451 = vsyncpa [#allocation6 + $0x1], 1 }
 0xc7a   :  { %3452 = vsyncpa [#allocation9], 1 }
 0xc7b   :  { %3454 = vsyncpa [#allocation9 + $0x1], 1 }
 0xc7c   :  { %3455 = vsyncpa [#allocation12], 1 }
 0xc7d   :  { %3456 = vsyncpa [#allocation15], 1 }
 0xc7e   :  { %3457 = vsyncpa [#allocation18], 1 }
 0xc7f   :  { %3458 = vsyncpa [#allocation21], 1 }
 0xc80   :  { %3459 = vsyncpa [#allocation24], 1 }
 0xc81   :  { %3460 = vsyncpa [#allocation27], 1 }
 0xc82   :  { %3461 = vsyncpa [#allocation4], 1 }
 0xc83   :  { %3463 = vsyncpa [#allocation4 + $0x1], 1 }
 0xc84   :  { %3464 = vsyncpa [#allocation31], 1 }
 0xc85   :  { %3466 = vsyncpa [#allocation31 + $0x1], 1 }

</bundles_post_ra>
